<compile_context>
chip_gen: v7x
topology: tpu7x:2x2x1
jax: 0.10.0
libtpu: 0.0.40
codegen_flags: <defaults>
</compile_context>

<pallas_src>
import jax
import jax.numpy as jnp
from jax.experimental import pallas as pl
from jax.experimental.pallas import tpu as pltpu


# ----------------------------------------------------------------------------
# Fused GELAN kernel (whole RepNCSPELAN4 forward, one batch image per grid step)
# ----------------------------------------------------------------------------
def _make_gelan_kernel(num_bottlenecks, c_split, H, W, num_convs):
    HW = H * W

    def kernel(*refs):
        # refs = (x_ref, masks_ref, w0, b0, ..., w13, b13, out_ref)
        x_ref, masks_ref = refs[0], refs[1]
        out_ref = refs[-1]
        wb_refs = refs[2:-1]
        w_refs = wb_refs[0::2]
        b_refs = wb_refs[1::2]

        masks = masks_ref[...]            # (2, HW): row 0 -> dw=-1 valid, row 1 -> dw=+1 valid

        used = [0]

        def next_wb():
            i = used[0]
            used[0] += 1
            return w_refs[i][...], b_refs[i][...]

        def silu(v):
            return v * jax.nn.sigmoid(v)

        def shift_lanes(a, s):
            # t[:, m] = a[:, m + s] for m + s in [0, HW), zero-filled otherwise.
            if s == 0:
                return a
            c_rows = a.shape[0]
            z = jnp.zeros((c_rows, abs(s)), a.dtype)
            if s > 0:
                return jnp.concatenate([a[:, s:], z], axis=1)
            return jnp.concatenate([z, a[:, : HW + s]], axis=1)

        def conv1x1(a):
            # folded Conv(1x1)+BN, SiLU epilogue.  a: (Cin, HW) -> (Cout, HW)
            w, b = next_wb()              # (Cout, Cin), (Cout, 1)
            y = jnp.dot(w, a, preferred_element_type=jnp.float32) + b
            return silu(y)

        def conv3x3(a):
            # folded Conv(3x3)+BN (or fused VGGBlock), SiLU epilogue.
            # Taps are built in VMEM and fused into a single K = 9*Cin contraction.
            w, b = next_wb()              # (Cout, 9*Cin), (Cout, 1)
            taps = []
            for dh in (-1, 0, 1):
                for dw in (-1, 0, 1):
                    t = shift_lanes(a, dh * W + dw)
                    if dw == -1:
                        t = t * masks[0:1, :]
                    elif dw == 1:
                        t = t * masks[1:2, :]
                    taps.append(t)
            cols = jnp.concatenate(taps, axis=0)     # (9*Cin, HW), tap-major / cin-minor
            y = jnp.dot(w, cols, preferred_element_type=jnp.float32) + b
            return silu(y)

        def csp(a):
            a1 = conv1x1(a)                          # CSPLayer.conv1
            for _ in range(num_bottlenecks):
                a1 = conv3x3(a1)                     # VGGBlock (3x3 + padded 1x1) fused
            a2 = conv1x1(a)                          # CSPLayer.conv2
            return a1 + a2                           # residual add fused; conv3 == Identity

        x = x_ref[0]                                 # (c1, HW)
        t = conv1x1(x)                               # cv1
        y1 = t[:c_split, :]
        y2 = t[c_split:, :]
        y3 = conv3x3(csp(y2))                        # cv2 = CSPLayer + 3x3 ConvNormLayer_fuse
        y4 = conv3x3(csp(y3))                        # cv3
        cat = jnp.concatenate([y1, y2, y3, y4], axis=0)
        out = conv1x1(cat)                           # cv4
        out_ref[0] = out.astype(out_ref.dtype)

        # trace-time sanity check: every folded conv parameter was consumed exactly once
        assert used[0] == num_convs, (used[0], num_convs)

    return kernel


# ----------------------------------------------------------------------------
# Wrapper: one pallas_call over the batch
# ----------------------------------------------------------------------------
def repncspelan4_forward(x_nchw, params, num_bottlenecks, c_split):
    N, c1, H, W = x_nchw.shape
    HW = H * W
    x = x_nchw.reshape(N, c1, HW)                    # NCHW -> (N, C, H*W): pure reshape

    wb_flat = []
    for w, b in params:
        wb_flat.append(w)
        wb_flat.append(b)
    c2 = params[-1][0].shape[0]

    # Row-border validity masks for the horizontal taps (dw = -1 / +1) of every 3x3 conv.
    col = jnp.arange(HW, dtype=jnp.int32) % W
    masks = jnp.stack(
        [(col >= 1).astype(jnp.float32), (col <= W - 2).astype(jnp.float32)], axis=0
    )                                                # (2, HW)

    kernel = _make_gelan_kernel(num_bottlenecks, c_split, H, W, len(params))

    in_specs = [
        pl.BlockSpec((1, c1, HW), lambda b: (b, 0, 0)),   # per-image activation tile
        pl.BlockSpec((2, HW), lambda b: (0, 0)),          # tap masks (constant)
    ]
    for _ in wb_flat:                                     # all weights/biases are 2-D, constant
        in_specs.append(pl.BlockSpec(None, lambda b: (0, 0)) if False
                        else pl.BlockSpec(wb_flat[len(in_specs) - 2].shape, lambda b: (0, 0)))

    out = pl.pallas_call(
        kernel,
        out_shape=jax.ShapeDtypeStruct((N, c2, HW), x_nchw.dtype),
        grid=(N,),
        in_specs=in_specs,
        out_specs=pl.BlockSpec((1, c2, HW), lambda b: (b, 0, 0)),
        compiler_params=pltpu.CompilerParams(dimension_semantics=("parallel",)),
    )(x, masks, *wb_flat)

    return out.reshape(N, c2, H, W)                  # back to NCHW: pure reshape


# ----------------------------------------------------------------------------
# Deterministic parameter construction (conv + BN folded, VGGBlock branch-fused)
# ----------------------------------------------------------------------------
def _fold_conv_bn(key, cin, cout, k):
    """Random Conv2d(OIHW) + BatchNorm running stats, folded (eval mode)."""
    k1, k2, k3, k4, k5 = jax.random.split(key, 5)
    w = 0.1 * jax.random.normal(k1, (cout, cin, k, k), jnp.float32)
    gamma = 1.0 + 0.1 * jax.random.normal(k2, (cout,), jnp.float32)
    beta = 0.1 * jax.random.normal(k3, (cout,), jnp.float32)
    mean = 0.1 * jax.random.normal(k4, (cout,), jnp.float32)
    var = jax.random.uniform(k5, (cout,), jnp.float32, minval=0.5, maxval=1.5)
    scale = gamma / jnp.sqrt(var + 1e-5)
    return w * scale[:, None, None, None], beta - mean * scale


def _as_1x1(w, b):
    cout, cin = w.shape[:2]
    return w.reshape(cout, cin), b.reshape(cout, 1)


def _as_3x3(w, b):
    # OIHW (cout, cin, 3, 3) -> (cout, 9*cin), contraction ordered (kh, kw, cin)
    cout, cin = w.shape[:2]
    w = jnp.transpose(w, (0, 2, 3, 1)).reshape(cout, 9 * cin)
    return w, b.reshape(cout, 1)


def _vgg_fused(key, cin, cout):
    # VGGBlock: silu( conv3x3_bn(x) + conv1x1_bn(x) ) -> single 3x3 (deploy fusion)
    ka, kb = jax.random.split(key)
    w3, b3 = _fold_conv_bn(ka, cin, cout, 3)
    w1, b1 = _fold_conv_bn(kb, cin, cout, 1)
    w = w3 + jnp.pad(w1, ((0, 0), (0, 0), (1, 1), (1, 1)))
    return _as_3x3(w, b3 + b1)


def init_repncspelan4(key, c1, c2, c3, c4, n):
    """Returns params in the exact order the fused kernel consumes them."""
    c = c3 // 2
    keys = iter(jax.random.split(key, 64))
    nxt = lambda: next(keys)

    params = []
    params.append(_as_1x1(*_fold_conv_bn(nxt(), c1, c3, 1)))            # cv1

    def csp(cin, cout):
        params.append(_as_1x1(*_fold_conv_bn(nxt(), cin, cout, 1)))     # conv1
        for _ in range(n):
            params.append(_vgg_fused(nxt(), cout, cout))                # bottlenecks (VGG)
        params.append(_as_1x1(*_fold_conv_bn(nxt(), cin, cout, 1)))     # conv2

    csp(c, c4)
    params.append(_as_3x3(*_fold_conv_bn(nxt(), c4, c4, 3)))            # cv2 trailing 3x3
    csp(c4, c4)
    params.append(_as_3x3(*_fold_conv_bn(nxt(), c4, c4, 3)))            # cv3 trailing 3x3
    params.append(_as_1x1(*_fold_conv_bn(nxt(), c3 + 2 * c4, c2, 1)))   # cv4
    return params, c


# ----------------------------------------------------------------------------
if __name__ == "__main__":
    key = jax.random.PRNGKey(0)
    c1, c2, c3, c4, n = 16, 32, 16, 16, 3
    N, H, W = 2, 16, 16

    params, c_split = init_repncspelan4(key, c1, c2, c3, c4, n)
    x_nchw = jax.random.normal(jax.random.fold_in(key, 999), (N, c1, H, W), jnp.float32)

    fwd = jax.jit(lambda xx: repncspelan4_forward(xx, params, n, c_split))
    out = fwd(x_nchw)
    jax.block_until_ready(out)

    assert out.shape == (N, c2, H, W), out.shape
    assert bool(jnp.all(jnp.isfinite(out)))
    print("KERNEL_OK")
</pallas_src>

<mosaic_0001>
module attributes {stable_mosaic.version = 11 : i64} {
  func.func @kernel(%arg0: i32, %arg1: memref<1x16x256xf32, #tpu.memory_space<vmem>>, %arg2: memref<2x256xf32, #tpu.memory_space<vmem>>, %arg3: memref<16x16xf32, #tpu.memory_space<vmem>>, %arg4: memref<16x1xf32, #tpu.memory_space<vmem>>, %arg5: memref<16x8xf32, #tpu.memory_space<vmem>>, %arg6: memref<16x1xf32, #tpu.memory_space<vmem>>, %arg7: memref<16x144xf32, #tpu.memory_space<vmem>>, %arg8: memref<16x1xf32, #tpu.memory_space<vmem>>, %arg9: memref<16x144xf32, #tpu.memory_space<vmem>>, %arg10: memref<16x1xf32, #tpu.memory_space<vmem>>, %arg11: memref<16x144xf32, #tpu.memory_space<vmem>>, %arg12: memref<16x1xf32, #tpu.memory_space<vmem>>, %arg13: memref<16x8xf32, #tpu.memory_space<vmem>>, %arg14: memref<16x1xf32, #tpu.memory_space<vmem>>, %arg15: memref<16x144xf32, #tpu.memory_space<vmem>>, %arg16: memref<16x1xf32, #tpu.memory_space<vmem>>, %arg17: memref<16x16xf32, #tpu.memory_space<vmem>>, %arg18: memref<16x1xf32, #tpu.memory_space<vmem>>, %arg19: memref<16x144xf32, #tpu.memory_space<vmem>>, %arg20: memref<16x1xf32, #tpu.memory_space<vmem>>, %arg21: memref<16x144xf32, #tpu.memory_space<vmem>>, %arg22: memref<16x1xf32, #tpu.memory_space<vmem>>, %arg23: memref<16x144xf32, #tpu.memory_space<vmem>>, %arg24: memref<16x1xf32, #tpu.memory_space<vmem>>, %arg25: memref<16x16xf32, #tpu.memory_space<vmem>>, %arg26: memref<16x1xf32, #tpu.memory_space<vmem>>, %arg27: memref<16x144xf32, #tpu.memory_space<vmem>>, %arg28: memref<16x1xf32, #tpu.memory_space<vmem>>, %arg29: memref<32x48xf32, #tpu.memory_space<vmem>>, %arg30: memref<32x1xf32, #tpu.memory_space<vmem>>, %arg31: memref<1x32x256xf32, #tpu.memory_space<vmem>>) attributes {dimension_semantics = [#tpu.dimension_semantics<parallel>], iteration_bounds = array<i64: 2>, scalar_prefetch = 0 : i64, scratch_operands = 0 : i64, tpu.core_type = #tpu.core_type<tc>, window_params = [{transform_indices = @transform_0, window_bounds = array<i64: 1, 16, 256>}, {pipeline_mode = #tpu.pipeline_mode<synchronous>, transform_indices = @transform_1, window_bounds = array<i64: 2, 256>}, {pipeline_mode = #tpu.pipeline_mode<synchronous>, transform_indices = @transform_2, window_bounds = array<i64: 16, 16>}, {pipeline_mode = #tpu.pipeline_mode<synchronous>, transform_indices = @transform_3, window_bounds = array<i64: 16, 1>}, {pipeline_mode = #tpu.pipeline_mode<synchronous>, transform_indices = @transform_4, window_bounds = array<i64: 16, 8>}, {pipeline_mode = #tpu.pipeline_mode<synchronous>, transform_indices = @transform_5, window_bounds = array<i64: 16, 1>}, {pipeline_mode = #tpu.pipeline_mode<synchronous>, transform_indices = @transform_6, window_bounds = array<i64: 16, 144>}, {pipeline_mode = #tpu.pipeline_mode<synchronous>, transform_indices = @transform_7, window_bounds = array<i64: 16, 1>}, {pipeline_mode = #tpu.pipeline_mode<synchronous>, transform_indices = @transform_8, window_bounds = array<i64: 16, 144>}, {pipeline_mode = #tpu.pipeline_mode<synchronous>, transform_indices = @transform_9, window_bounds = array<i64: 16, 1>}, {pipeline_mode = #tpu.pipeline_mode<synchronous>, transform_indices = @transform_10, window_bounds = array<i64: 16, 144>}, {pipeline_mode = #tpu.pipeline_mode<synchronous>, transform_indices = @transform_11, window_bounds = array<i64: 16, 1>}, {pipeline_mode = #tpu.pipeline_mode<synchronous>, transform_indices = @transform_12, window_bounds = array<i64: 16, 8>}, {pipeline_mode = #tpu.pipeline_mode<synchronous>, transform_indices = @transform_13, window_bounds = array<i64: 16, 1>}, {pipeline_mode = #tpu.pipeline_mode<synchronous>, transform_indices = @transform_14, window_bounds = array<i64: 16, 144>}, {pipeline_mode = #tpu.pipeline_mode<synchronous>, transform_indices = @transform_15, window_bounds = array<i64: 16, 1>}, {pipeline_mode = #tpu.pipeline_mode<synchronous>, transform_indices = @transform_16, window_bounds = array<i64: 16, 16>}, {pipeline_mode = #tpu.pipeline_mode<synchronous>, transform_indices = @transform_17, window_bounds = array<i64: 16, 1>}, {pipeline_mode = #tpu.pipeline_mode<synchronous>, transform_indices = @transform_18, window_bounds = array<i64: 16, 144>}, {pipeline_mode = #tpu.pipeline_mode<synchronous>, transform_indices = @transform_19, window_bounds = array<i64: 16, 1>}, {pipeline_mode = #tpu.pipeline_mode<synchronous>, transform_indices = @transform_20, window_bounds = array<i64: 16, 144>}, {pipeline_mode = #tpu.pipeline_mode<synchronous>, transform_indices = @transform_21, window_bounds = array<i64: 16, 1>}, {pipeline_mode = #tpu.pipeline_mode<synchronous>, transform_indices = @transform_22, window_bounds = array<i64: 16, 144>}, {pipeline_mode = #tpu.pipeline_mode<synchronous>, transform_indices = @transform_23, window_bounds = array<i64: 16, 1>}, {pipeline_mode = #tpu.pipeline_mode<synchronous>, transform_indices = @transform_24, window_bounds = array<i64: 16, 16>}, {pipeline_mode = #tpu.pipeline_mode<synchronous>, transform_indices = @transform_25, window_bounds = array<i64: 16, 1>}, {pipeline_mode = #tpu.pipeline_mode<synchronous>, transform_indices = @transform_26, window_bounds = array<i64: 16, 144>}, {pipeline_mode = #tpu.pipeline_mode<synchronous>, transform_indices = @transform_27, window_bounds = array<i64: 16, 1>}, {pipeline_mode = #tpu.pipeline_mode<synchronous>, transform_indices = @transform_28, window_bounds = array<i64: 32, 48>}, {pipeline_mode = #tpu.pipeline_mode<synchronous>, transform_indices = @transform_29, window_bounds = array<i64: 32, 1>}, {transform_indices = @transform_30, window_bounds = array<i64: 1, 32, 256>}]} {
    %c0 = arith.constant 0 : index
    %c0_0 = arith.constant 0 : index
    %0 = vector.load %arg2[%c0, %c0_0] : memref<2x256xf32, #tpu.memory_space<vmem>>, vector<2x256xf32>
    %c0_1 = arith.constant 0 : index
    %c0_2 = arith.constant 0 : index
    %c0_3 = arith.constant 0 : index
    %1 = vector.load %arg1[%c0_1, %c0_2, %c0_3] : memref<1x16x256xf32, #tpu.memory_space<vmem>>, vector<1x16x256xf32>
    %2 = vector.shape_cast %1 : vector<1x16x256xf32> to vector<16x256xf32>
    %c0_4 = arith.constant 0 : index
    %c0_5 = arith.constant 0 : index
    %3 = vector.load %arg3[%c0_4, %c0_5] : memref<16x16xf32, #tpu.memory_space<vmem>>, vector<16x16xf32>
    %c0_6 = arith.constant 0 : index
    %c0_7 = arith.constant 0 : index
    %4 = vector.load %arg4[%c0_6, %c0_7] : memref<16x1xf32, #tpu.memory_space<vmem>>, vector<16x1xf32>
    %cst = arith.constant dense<0.000000e+00> : vector<16x256xf32>
    %5 = tpu.matmul %3, %2, %cst {dimension_numbers = #tpu.dot_dimension_numbers<[1], [0], [0], [1], [0, 0, 1, 1], [], []>} : vector<16x16xf32>, vector<16x256xf32>, vector<16x256xf32> -> vector<16x256xf32>
    %6 = vector.broadcast %4 : vector<16x1xf32> to vector<16x256xf32>
    %7 = arith.addf %5, %6 : vector<16x256xf32>
    %8 = arith.negf %7 : vector<16x256xf32>
    %9 = math.exp %8 : vector<16x256xf32>
    %cst_8 = arith.constant 1.000000e+00 : f32
    %10 = vector.broadcast %cst_8 : f32 to vector<16x256xf32>
    %11 = arith.addf %10, %9 : vector<16x256xf32>
    %12 = arith.divf %10, %11 : vector<16x256xf32>
    %13 = arith.mulf %7, %12 : vector<16x256xf32>
    %14 = vector.extract_strided_slice %13 {offsets = [0, 0], sizes = [8, 256], strides = [1, 1]} : vector<16x256xf32> to vector<8x256xf32>
    %15 = vector.extract_strided_slice %13 {offsets = [8, 0], sizes = [8, 256], strides = [1, 1]} : vector<16x256xf32> to vector<8x256xf32>
    %c0_9 = arith.constant 0 : index
    %c0_10 = arith.constant 0 : index
    %16 = vector.load %arg5[%c0_9, %c0_10] : memref<16x8xf32, #tpu.memory_space<vmem>>, vector<16x8xf32>
    %c0_11 = arith.constant 0 : index
    %c0_12 = arith.constant 0 : index
    %17 = vector.load %arg6[%c0_11, %c0_12] : memref<16x1xf32, #tpu.memory_space<vmem>>, vector<16x1xf32>
    %cst_13 = arith.constant dense<0.000000e+00> : vector<16x256xf32>
    %18 = tpu.matmul %16, %15, %cst_13 {dimension_numbers = #tpu.dot_dimension_numbers<[1], [0], [0], [1], [0, 0, 1, 1], [], []>} : vector<16x8xf32>, vector<8x256xf32>, vector<16x256xf32> -> vector<16x256xf32>
    %19 = vector.broadcast %17 : vector<16x1xf32> to vector<16x256xf32>
    %20 = arith.addf %18, %19 : vector<16x256xf32>
    %21 = arith.negf %20 : vector<16x256xf32>
    %22 = math.exp %21 : vector<16x256xf32>
    %cst_14 = arith.constant 1.000000e+00 : f32
    %23 = vector.broadcast %cst_14 : f32 to vector<16x256xf32>
    %24 = arith.addf %23, %22 : vector<16x256xf32>
    %25 = arith.divf %23, %24 : vector<16x256xf32>
    %26 = arith.mulf %20, %25 : vector<16x256xf32>
    %c0_15 = arith.constant 0 : index
    %c0_16 = arith.constant 0 : index
    %27 = vector.load %arg7[%c0_15, %c0_16] : memref<16x144xf32, #tpu.memory_space<vmem>>, vector<16x144xf32>
    %c0_17 = arith.constant 0 : index
    %c0_18 = arith.constant 0 : index
    %28 = vector.load %arg8[%c0_17, %c0_18] : memref<16x1xf32, #tpu.memory_space<vmem>>, vector<16x1xf32>
    %cst_19 = arith.constant 0.000000e+00 : f32
    %29 = vector.broadcast %cst_19 : f32 to vector<16x17xf32>
    %30 = vector.extract_strided_slice %26 {offsets = [0, 0], sizes = [16, 239], strides = [1, 1]} : vector<16x256xf32> to vector<16x239xf32>
    %31 = tpu.concatenate %29, %30 in 1 : vector<16x17xf32>, vector<16x239xf32> -> vector<16x256xf32>
    %32 = vector.extract_strided_slice %0 {offsets = [0, 0], sizes = [1, 256], strides = [1, 1]} : vector<2x256xf32> to vector<1x256xf32>
    %33 = vector.broadcast %32 : vector<1x256xf32> to vector<16x256xf32>
    %34 = arith.mulf %31, %33 : vector<16x256xf32>
    %cst_20 = arith.constant 0.000000e+00 : f32
    %35 = vector.broadcast %cst_20 : f32 to vector<16x16xf32>
    %36 = vector.extract_strided_slice %26 {offsets = [0, 0], sizes = [16, 240], strides = [1, 1]} : vector<16x256xf32> to vector<16x240xf32>
    %37 = tpu.concatenate %35, %36 in 1 : vector<16x16xf32>, vector<16x240xf32> -> vector<16x256xf32>
    %cst_21 = arith.constant 0.000000e+00 : f32
    %38 = vector.broadcast %cst_21 : f32 to vector<16x15xf32>
    %39 = vector.extract_strided_slice %26 {offsets = [0, 0], sizes = [16, 241], strides = [1, 1]} : vector<16x256xf32> to vector<16x241xf32>
    %40 = tpu.concatenate %38, %39 in 1 : vector<16x15xf32>, vector<16x241xf32> -> vector<16x256xf32>
    %41 = vector.extract_strided_slice %0 {offsets = [1, 0], sizes = [1, 256], strides = [1, 1]} : vector<2x256xf32> to vector<1x256xf32>
    %42 = vector.broadcast %41 : vector<1x256xf32> to vector<16x256xf32>
    %43 = arith.mulf %40, %42 : vector<16x256xf32>
    %cst_22 = arith.constant 0.000000e+00 : f32
    %44 = vector.broadcast %cst_22 : f32 to vector<16x1xf32>
    %45 = vector.extract_strided_slice %26 {offsets = [0, 0], sizes = [16, 255], strides = [1, 1]} : vector<16x256xf32> to vector<16x255xf32>
    %46 = tpu.concatenate %44, %45 in 1 : vector<16x1xf32>, vector<16x255xf32> -> vector<16x256xf32>
    %47 = vector.extract_strided_slice %0 {offsets = [0, 0], sizes = [1, 256], strides = [1, 1]} : vector<2x256xf32> to vector<1x256xf32>
    %48 = vector.broadcast %47 : vector<1x256xf32> to vector<16x256xf32>
    %49 = arith.mulf %46, %48 : vector<16x256xf32>
    %cst_23 = arith.constant 0.000000e+00 : f32
    %50 = vector.broadcast %cst_23 : f32 to vector<16x1xf32>
    %51 = vector.extract_strided_slice %26 {offsets = [0, 1], sizes = [16, 255], strides = [1, 1]} : vector<16x256xf32> to vector<16x255xf32>
    %52 = tpu.concatenate %51, %50 in 1 : vector<16x255xf32>, vector<16x1xf32> -> vector<16x256xf32>
    %53 = vector.extract_strided_slice %0 {offsets = [1, 0], sizes = [1, 256], strides = [1, 1]} : vector<2x256xf32> to vector<1x256xf32>
    %54 = vector.broadcast %53 : vector<1x256xf32> to vector<16x256xf32>
    %55 = arith.mulf %52, %54 : vector<16x256xf32>
    %cst_24 = arith.constant 0.000000e+00 : f32
    %56 = vector.broadcast %cst_24 : f32 to vector<16x15xf32>
    %57 = vector.extract_strided_slice %26 {offsets = [0, 15], sizes = [16, 241], strides = [1, 1]} : vector<16x256xf32> to vector<16x241xf32>
    %58 = tpu.concatenate %57, %56 in 1 : vector<16x241xf32>, vector<16x15xf32> -> vector<16x256xf32>
    %59 = vector.extract_strided_slice %0 {offsets = [0, 0], sizes = [1, 256], strides = [1, 1]} : vector<2x256xf32> to vector<1x256xf32>
    %60 = vector.broadcast %59 : vector<1x256xf32> to vector<16x256xf32>
    %61 = arith.mulf %58, %60 : vector<16x256xf32>
    %cst_25 = arith.constant 0.000000e+00 : f32
    %62 = vector.broadcast %cst_25 : f32 to vector<16x16xf32>
    %63 = vector.extract_strided_slice %26 {offsets = [0, 16], sizes = [16, 240], strides = [1, 1]} : vector<16x256xf32> to vector<16x240xf32>
    %64 = tpu.concatenate %63, %62 in 1 : vector<16x240xf32>, vector<16x16xf32> -> vector<16x256xf32>
    %cst_26 = arith.constant 0.000000e+00 : f32
    %65 = vector.broadcast %cst_26 : f32 to vector<16x17xf32>
    %66 = vector.extract_strided_slice %26 {offsets = [0, 17], sizes = [16, 239], strides = [1, 1]} : vector<16x256xf32> to vector<16x239xf32>
    %67 = tpu.concatenate %66, %65 in 1 : vector<16x239xf32>, vector<16x17xf32> -> vector<16x256xf32>
    %68 = vector.extract_strided_slice %0 {offsets = [1, 0], sizes = [1, 256], strides = [1, 1]} : vector<2x256xf32> to vector<1x256xf32>
    %69 = vector.broadcast %68 : vector<1x256xf32> to vector<16x256xf32>
    %70 = arith.mulf %67, %69 : vector<16x256xf32>
    %71 = tpu.concatenate %34, %37, %43, %49, %26, %55, %61, %64, %70 in 0 : vector<16x256xf32>, vector<16x256xf32>, vector<16x256xf32>, vector<16x256xf32>, vector<16x256xf32>, vector<16x256xf32>, vector<16x256xf32>, vector<16x256xf32>, vector<16x256xf32> -> vector<144x256xf32>
    %cst_27 = arith.constant dense<0.000000e+00> : vector<16x256xf32>
    %72 = tpu.matmul %27, %71, %cst_27 {dimension_numbers = #tpu.dot_dimension_numbers<[1], [0], [0], [1], [0, 0, 1, 1], [], []>} : vector<16x144xf32>, vector<144x256xf32>, vector<16x256xf32> -> vector<16x256xf32>
    %73 = vector.broadcast %28 : vector<16x1xf32> to vector<16x256xf32>
    %74 = arith.addf %72, %73 : vector<16x256xf32>
    %75 = arith.negf %74 : vector<16x256xf32>
    %76 = math.exp %75 : vector<16x256xf32>
    %cst_28 = arith.constant 1.000000e+00 : f32
    %77 = vector.broadcast %cst_28 : f32 to vector<16x256xf32>
    %78 = arith.addf %77, %76 : vector<16x256xf32>
    %79 = arith.divf %77, %78 : vector<16x256xf32>
    %80 = arith.mulf %74, %79 : vector<16x256xf32>
    %c0_29 = arith.constant 0 : index
    %c0_30 = arith.constant 0 : index
    %81 = vector.load %arg9[%c0_29, %c0_30] : memref<16x144xf32, #tpu.memory_space<vmem>>, vector<16x144xf32>
    %c0_31 = arith.constant 0 : index
    %c0_32 = arith.constant 0 : index
    %82 = vector.load %arg10[%c0_31, %c0_32] : memref<16x1xf32, #tpu.memory_space<vmem>>, vector<16x1xf32>
    %cst_33 = arith.constant 0.000000e+00 : f32
    %83 = vector.broadcast %cst_33 : f32 to vector<16x17xf32>
    %84 = vector.extract_strided_slice %80 {offsets = [0, 0], sizes = [16, 239], strides = [1, 1]} : vector<16x256xf32> to vector<16x239xf32>
    %85 = tpu.concatenate %83, %84 in 1 : vector<16x17xf32>, vector<16x239xf32> -> vector<16x256xf32>
    %86 = vector.extract_strided_slice %0 {offsets = [0, 0], sizes = [1, 256], strides = [1, 1]} : vector<2x256xf32> to vector<1x256xf32>
    %87 = vector.broadcast %86 : vector<1x256xf32> to vector<16x256xf32>
    %88 = arith.mulf %85, %87 : vector<16x256xf32>
    %cst_34 = arith.constant 0.000000e+00 : f32
    %89 = vector.broadcast %cst_34 : f32 to vector<16x16xf32>
    %90 = vector.extract_strided_slice %80 {offsets = [0, 0], sizes = [16, 240], strides = [1, 1]} : vector<16x256xf32> to vector<16x240xf32>
    %91 = tpu.concatenate %89, %90 in 1 : vector<16x16xf32>, vector<16x240xf32> -> vector<16x256xf32>
    %cst_35 = arith.constant 0.000000e+00 : f32
    %92 = vector.broadcast %cst_35 : f32 to vector<16x15xf32>
    %93 = vector.extract_strided_slice %80 {offsets = [0, 0], sizes = [16, 241], strides = [1, 1]} : vector<16x256xf32> to vector<16x241xf32>
    %94 = tpu.concatenate %92, %93 in 1 : vector<16x15xf32>, vector<16x241xf32> -> vector<16x256xf32>
    %95 = vector.extract_strided_slice %0 {offsets = [1, 0], sizes = [1, 256], strides = [1, 1]} : vector<2x256xf32> to vector<1x256xf32>
    %96 = vector.broadcast %95 : vector<1x256xf32> to vector<16x256xf32>
    %97 = arith.mulf %94, %96 : vector<16x256xf32>
    %cst_36 = arith.constant 0.000000e+00 : f32
    %98 = vector.broadcast %cst_36 : f32 to vector<16x1xf32>
    %99 = vector.extract_strided_slice %80 {offsets = [0, 0], sizes = [16, 255], strides = [1, 1]} : vector<16x256xf32> to vector<16x255xf32>
    %100 = tpu.concatenate %98, %99 in 1 : vector<16x1xf32>, vector<16x255xf32> -> vector<16x256xf32>
    %101 = vector.extract_strided_slice %0 {offsets = [0, 0], sizes = [1, 256], strides = [1, 1]} : vector<2x256xf32> to vector<1x256xf32>
    %102 = vector.broadcast %101 : vector<1x256xf32> to vector<16x256xf32>
    %103 = arith.mulf %100, %102 : vector<16x256xf32>
    %cst_37 = arith.constant 0.000000e+00 : f32
    %104 = vector.broadcast %cst_37 : f32 to vector<16x1xf32>
    %105 = vector.extract_strided_slice %80 {offsets = [0, 1], sizes = [16, 255], strides = [1, 1]} : vector<16x256xf32> to vector<16x255xf32>
    %106 = tpu.concatenate %105, %104 in 1 : vector<16x255xf32>, vector<16x1xf32> -> vector<16x256xf32>
    %107 = vector.extract_strided_slice %0 {offsets = [1, 0], sizes = [1, 256], strides = [1, 1]} : vector<2x256xf32> to vector<1x256xf32>
    %108 = vector.broadcast %107 : vector<1x256xf32> to vector<16x256xf32>
    %109 = arith.mulf %106, %108 : vector<16x256xf32>
    %cst_38 = arith.constant 0.000000e+00 : f32
    %110 = vector.broadcast %cst_38 : f32 to vector<16x15xf32>
    %111 = vector.extract_strided_slice %80 {offsets = [0, 15], sizes = [16, 241], strides = [1, 1]} : vector<16x256xf32> to vector<16x241xf32>
    %112 = tpu.concatenate %111, %110 in 1 : vector<16x241xf32>, vector<16x15xf32> -> vector<16x256xf32>
    %113 = vector.extract_strided_slice %0 {offsets = [0, 0], sizes = [1, 256], strides = [1, 1]} : vector<2x256xf32> to vector<1x256xf32>
    %114 = vector.broadcast %113 : vector<1x256xf32> to vector<16x256xf32>
    %115 = arith.mulf %112, %114 : vector<16x256xf32>
    %cst_39 = arith.constant 0.000000e+00 : f32
    %116 = vector.broadcast %cst_39 : f32 to vector<16x16xf32>
    %117 = vector.extract_strided_slice %80 {offsets = [0, 16], sizes = [16, 240], strides = [1, 1]} : vector<16x256xf32> to vector<16x240xf32>
    %118 = tpu.concatenate %117, %116 in 1 : vector<16x240xf32>, vector<16x16xf32> -> vector<16x256xf32>
    %cst_40 = arith.constant 0.000000e+00 : f32
    %119 = vector.broadcast %cst_40 : f32 to vector<16x17xf32>
    %120 = vector.extract_strided_slice %80 {offsets = [0, 17], sizes = [16, 239], strides = [1, 1]} : vector<16x256xf32> to vector<16x239xf32>
    %121 = tpu.concatenate %120, %119 in 1 : vector<16x239xf32>, vector<16x17xf32> -> vector<16x256xf32>
    %122 = vector.extract_strided_slice %0 {offsets = [1, 0], sizes = [1, 256], strides = [1, 1]} : vector<2x256xf32> to vector<1x256xf32>
    %123 = vector.broadcast %122 : vector<1x256xf32> to vector<16x256xf32>
    %124 = arith.mulf %121, %123 : vector<16x256xf32>
    %125 = tpu.concatenate %88, %91, %97, %103, %80, %109, %115, %118, %124 in 0 : vector<16x256xf32>, vector<16x256xf32>, vector<16x256xf32>, vector<16x256xf32>, vector<16x256xf32>, vector<16x256xf32>, vector<16x256xf32>, vector<16x256xf32>, vector<16x256xf32> -> vector<144x256xf32>
    %cst_41 = arith.constant dense<0.000000e+00> : vector<16x256xf32>
    %126 = tpu.matmul %81, %125, %cst_41 {dimension_numbers = #tpu.dot_dimension_numbers<[1], [0], [0], [1], [0, 0, 1, 1], [], []>} : vector<16x144xf32>, vector<144x256xf32>, vector<16x256xf32> -> vector<16x256xf32>
    %127 = vector.broadcast %82 : vector<16x1xf32> to vector<16x256xf32>
    %128 = arith.addf %126, %127 : vector<16x256xf32>
    %129 = arith.negf %128 : vector<16x256xf32>
    %130 = math.exp %129 : vector<16x256xf32>
    %cst_42 = arith.constant 1.000000e+00 : f32
    %131 = vector.broadcast %cst_42 : f32 to vector<16x256xf32>
    %132 = arith.addf %131, %130 : vector<16x256xf32>
    %133 = arith.divf %131, %132 : vector<16x256xf32>
    %134 = arith.mulf %128, %133 : vector<16x256xf32>
    %c0_43 = arith.constant 0 : index
    %c0_44 = arith.constant 0 : index
    %135 = vector.load %arg11[%c0_43, %c0_44] : memref<16x144xf32, #tpu.memory_space<vmem>>, vector<16x144xf32>
    %c0_45 = arith.constant 0 : index
    %c0_46 = arith.constant 0 : index
    %136 = vector.load %arg12[%c0_45, %c0_46] : memref<16x1xf32, #tpu.memory_space<vmem>>, vector<16x1xf32>
    %cst_47 = arith.constant 0.000000e+00 : f32
    %137 = vector.broadcast %cst_47 : f32 to vector<16x17xf32>
    %138 = vector.extract_strided_slice %134 {offsets = [0, 0], sizes = [16, 239], strides = [1, 1]} : vector<16x256xf32> to vector<16x239xf32>
    %139 = tpu.concatenate %137, %138 in 1 : vector<16x17xf32>, vector<16x239xf32> -> vector<16x256xf32>
    %140 = vector.extract_strided_slice %0 {offsets = [0, 0], sizes = [1, 256], strides = [1, 1]} : vector<2x256xf32> to vector<1x256xf32>
    %141 = vector.broadcast %140 : vector<1x256xf32> to vector<16x256xf32>
    %142 = arith.mulf %139, %141 : vector<16x256xf32>
    %cst_48 = arith.constant 0.000000e+00 : f32
    %143 = vector.broadcast %cst_48 : f32 to vector<16x16xf32>
    %144 = vector.extract_strided_slice %134 {offsets = [0, 0], sizes = [16, 240], strides = [1, 1]} : vector<16x256xf32> to vector<16x240xf32>
    %145 = tpu.concatenate %143, %144 in 1 : vector<16x16xf32>, vector<16x240xf32> -> vector<16x256xf32>
    %cst_49 = arith.constant 0.000000e+00 : f32
    %146 = vector.broadcast %cst_49 : f32 to vector<16x15xf32>
    %147 = vector.extract_strided_slice %134 {offsets = [0, 0], sizes = [16, 241], strides = [1, 1]} : vector<16x256xf32> to vector<16x241xf32>
    %148 = tpu.concatenate %146, %147 in 1 : vector<16x15xf32>, vector<16x241xf32> -> vector<16x256xf32>
    %149 = vector.extract_strided_slice %0 {offsets = [1, 0], sizes = [1, 256], strides = [1, 1]} : vector<2x256xf32> to vector<1x256xf32>
    %150 = vector.broadcast %149 : vector<1x256xf32> to vector<16x256xf32>
    %151 = arith.mulf %148, %150 : vector<16x256xf32>
    %cst_50 = arith.constant 0.000000e+00 : f32
    %152 = vector.broadcast %cst_50 : f32 to vector<16x1xf32>
    %153 = vector.extract_strided_slice %134 {offsets = [0, 0], sizes = [16, 255], strides = [1, 1]} : vector<16x256xf32> to vector<16x255xf32>
    %154 = tpu.concatenate %152, %153 in 1 : vector<16x1xf32>, vector<16x255xf32> -> vector<16x256xf32>
    %155 = vector.extract_strided_slice %0 {offsets = [0, 0], sizes = [1, 256], strides = [1, 1]} : vector<2x256xf32> to vector<1x256xf32>
    %156 = vector.broadcast %155 : vector<1x256xf32> to vector<16x256xf32>
    %157 = arith.mulf %154, %156 : vector<16x256xf32>
    %cst_51 = arith.constant 0.000000e+00 : f32
    %158 = vector.broadcast %cst_51 : f32 to vector<16x1xf32>
    %159 = vector.extract_strided_slice %134 {offsets = [0, 1], sizes = [16, 255], strides = [1, 1]} : vector<16x256xf32> to vector<16x255xf32>
    %160 = tpu.concatenate %159, %158 in 1 : vector<16x255xf32>, vector<16x1xf32> -> vector<16x256xf32>
    %161 = vector.extract_strided_slice %0 {offsets = [1, 0], sizes = [1, 256], strides = [1, 1]} : vector<2x256xf32> to vector<1x256xf32>
    %162 = vector.broadcast %161 : vector<1x256xf32> to vector<16x256xf32>
    %163 = arith.mulf %160, %162 : vector<16x256xf32>
    %cst_52 = arith.constant 0.000000e+00 : f32
    %164 = vector.broadcast %cst_52 : f32 to vector<16x15xf32>
    %165 = vector.extract_strided_slice %134 {offsets = [0, 15], sizes = [16, 241], strides = [1, 1]} : vector<16x256xf32> to vector<16x241xf32>
    %166 = tpu.concatenate %165, %164 in 1 : vector<16x241xf32>, vector<16x15xf32> -> vector<16x256xf32>
    %167 = vector.extract_strided_slice %0 {offsets = [0, 0], sizes = [1, 256], strides = [1, 1]} : vector<2x256xf32> to vector<1x256xf32>
    %168 = vector.broadcast %167 : vector<1x256xf32> to vector<16x256xf32>
    %169 = arith.mulf %166, %168 : vector<16x256xf32>
    %cst_53 = arith.constant 0.000000e+00 : f32
    %170 = vector.broadcast %cst_53 : f32 to vector<16x16xf32>
    %171 = vector.extract_strided_slice %134 {offsets = [0, 16], sizes = [16, 240], strides = [1, 1]} : vector<16x256xf32> to vector<16x240xf32>
    %172 = tpu.concatenate %171, %170 in 1 : vector<16x240xf32>, vector<16x16xf32> -> vector<16x256xf32>
    %cst_54 = arith.constant 0.000000e+00 : f32
    %173 = vector.broadcast %cst_54 : f32 to vector<16x17xf32>
    %174 = vector.extract_strided_slice %134 {offsets = [0, 17], sizes = [16, 239], strides = [1, 1]} : vector<16x256xf32> to vector<16x239xf32>
    %175 = tpu.concatenate %174, %173 in 1 : vector<16x239xf32>, vector<16x17xf32> -> vector<16x256xf32>
    %176 = vector.extract_strided_slice %0 {offsets = [1, 0], sizes = [1, 256], strides = [1, 1]} : vector<2x256xf32> to vector<1x256xf32>
    %177 = vector.broadcast %176 : vector<1x256xf32> to vector<16x256xf32>
    %178 = arith.mulf %175, %177 : vector<16x256xf32>
    %179 = tpu.concatenate %142, %145, %151, %157, %134, %163, %169, %172, %178 in 0 : vector<16x256xf32>, vector<16x256xf32>, vector<16x256xf32>, vector<16x256xf32>, vector<16x256xf32>, vector<16x256xf32>, vector<16x256xf32>, vector<16x256xf32>, vector<16x256xf32> -> vector<144x256xf32>
    %cst_55 = arith.constant dense<0.000000e+00> : vector<16x256xf32>
    %180 = tpu.matmul %135, %179, %cst_55 {dimension_numbers = #tpu.dot_dimension_numbers<[1], [0], [0], [1], [0, 0, 1, 1], [], []>} : vector<16x144xf32>, vector<144x256xf32>, vector<16x256xf32> -> vector<16x256xf32>
    %181 = vector.broadcast %136 : vector<16x1xf32> to vector<16x256xf32>
    %182 = arith.addf %180, %181 : vector<16x256xf32>
    %183 = arith.negf %182 : vector<16x256xf32>
    %184 = math.exp %183 : vector<16x256xf32>
    %cst_56 = arith.constant 1.000000e+00 : f32
    %185 = vector.broadcast %cst_56 : f32 to vector<16x256xf32>
    %186 = arith.addf %185, %184 : vector<16x256xf32>
    %187 = arith.divf %185, %186 : vector<16x256xf32>
    %188 = arith.mulf %182, %187 : vector<16x256xf32>
    %c0_57 = arith.constant 0 : index
    %c0_58 = arith.constant 0 : index
    %189 = vector.load %arg13[%c0_57, %c0_58] : memref<16x8xf32, #tpu.memory_space<vmem>>, vector<16x8xf32>
    %c0_59 = arith.constant 0 : index
    %c0_60 = arith.constant 0 : index
    %190 = vector.load %arg14[%c0_59, %c0_60] : memref<16x1xf32, #tpu.memory_space<vmem>>, vector<16x1xf32>
    %cst_61 = arith.constant dense<0.000000e+00> : vector<16x256xf32>
    %191 = tpu.matmul %189, %15, %cst_61 {dimension_numbers = #tpu.dot_dimension_numbers<[1], [0], [0], [1], [0, 0, 1, 1], [], []>} : vector<16x8xf32>, vector<8x256xf32>, vector<16x256xf32> -> vector<16x256xf32>
    %192 = vector.broadcast %190 : vector<16x1xf32> to vector<16x256xf32>
    %193 = arith.addf %191, %192 : vector<16x256xf32>
    %194 = arith.negf %193 : vector<16x256xf32>
    %195 = math.exp %194 : vector<16x256xf32>
    %cst_62 = arith.constant 1.000000e+00 : f32
    %196 = vector.broadcast %cst_62 : f32 to vector<16x256xf32>
    %197 = arith.addf %196, %195 : vector<16x256xf32>
    %198 = arith.divf %196, %197 : vector<16x256xf32>
    %199 = arith.mulf %193, %198 : vector<16x256xf32>
    %200 = arith.addf %188, %199 : vector<16x256xf32>
    %c0_63 = arith.constant 0 : index
    %c0_64 = arith.constant 0 : index
    %201 = vector.load %arg15[%c0_63, %c0_64] : memref<16x144xf32, #tpu.memory_space<vmem>>, vector<16x144xf32>
    %c0_65 = arith.constant 0 : index
    %c0_66 = arith.constant 0 : index
    %202 = vector.load %arg16[%c0_65, %c0_66] : memref<16x1xf32, #tpu.memory_space<vmem>>, vector<16x1xf32>
    %cst_67 = arith.constant 0.000000e+00 : f32
    %203 = vector.broadcast %cst_67 : f32 to vector<16x17xf32>
    %204 = vector.extract_strided_slice %200 {offsets = [0, 0], sizes = [16, 239], strides = [1, 1]} : vector<16x256xf32> to vector<16x239xf32>
    %205 = tpu.concatenate %203, %204 in 1 : vector<16x17xf32>, vector<16x239xf32> -> vector<16x256xf32>
    %206 = vector.extract_strided_slice %0 {offsets = [0, 0], sizes = [1, 256], strides = [1, 1]} : vector<2x256xf32> to vector<1x256xf32>
    %207 = vector.broadcast %206 : vector<1x256xf32> to vector<16x256xf32>
    %208 = arith.mulf %205, %207 : vector<16x256xf32>
    %cst_68 = arith.constant 0.000000e+00 : f32
    %209 = vector.broadcast %cst_68 : f32 to vector<16x16xf32>
    %210 = vector.extract_strided_slice %200 {offsets = [0, 0], sizes = [16, 240], strides = [1, 1]} : vector<16x256xf32> to vector<16x240xf32>
    %211 = tpu.concatenate %209, %210 in 1 : vector<16x16xf32>, vector<16x240xf32> -> vector<16x256xf32>
    %cst_69 = arith.constant 0.000000e+00 : f32
    %212 = vector.broadcast %cst_69 : f32 to vector<16x15xf32>
    %213 = vector.extract_strided_slice %200 {offsets = [0, 0], sizes = [16, 241], strides = [1, 1]} : vector<16x256xf32> to vector<16x241xf32>
    %214 = tpu.concatenate %212, %213 in 1 : vector<16x15xf32>, vector<16x241xf32> -> vector<16x256xf32>
    %215 = vector.extract_strided_slice %0 {offsets = [1, 0], sizes = [1, 256], strides = [1, 1]} : vector<2x256xf32> to vector<1x256xf32>
    %216 = vector.broadcast %215 : vector<1x256xf32> to vector<16x256xf32>
    %217 = arith.mulf %214, %216 : vector<16x256xf32>
    %cst_70 = arith.constant 0.000000e+00 : f32
    %218 = vector.broadcast %cst_70 : f32 to vector<16x1xf32>
    %219 = vector.extract_strided_slice %200 {offsets = [0, 0], sizes = [16, 255], strides = [1, 1]} : vector<16x256xf32> to vector<16x255xf32>
    %220 = tpu.concatenate %218, %219 in 1 : vector<16x1xf32>, vector<16x255xf32> -> vector<16x256xf32>
    %221 = vector.extract_strided_slice %0 {offsets = [0, 0], sizes = [1, 256], strides = [1, 1]} : vector<2x256xf32> to vector<1x256xf32>
    %222 = vector.broadcast %221 : vector<1x256xf32> to vector<16x256xf32>
    %223 = arith.mulf %220, %222 : vector<16x256xf32>
    %cst_71 = arith.constant 0.000000e+00 : f32
    %224 = vector.broadcast %cst_71 : f32 to vector<16x1xf32>
    %225 = vector.extract_strided_slice %200 {offsets = [0, 1], sizes = [16, 255], strides = [1, 1]} : vector<16x256xf32> to vector<16x255xf32>
    %226 = tpu.concatenate %225, %224 in 1 : vector<16x255xf32>, vector<16x1xf32> -> vector<16x256xf32>
    %227 = vector.extract_strided_slice %0 {offsets = [1, 0], sizes = [1, 256], strides = [1, 1]} : vector<2x256xf32> to vector<1x256xf32>
    %228 = vector.broadcast %227 : vector<1x256xf32> to vector<16x256xf32>
    %229 = arith.mulf %226, %228 : vector<16x256xf32>
    %cst_72 = arith.constant 0.000000e+00 : f32
    %230 = vector.broadcast %cst_72 : f32 to vector<16x15xf32>
    %231 = vector.extract_strided_slice %200 {offsets = [0, 15], sizes = [16, 241], strides = [1, 1]} : vector<16x256xf32> to vector<16x241xf32>
    %232 = tpu.concatenate %231, %230 in 1 : vector<16x241xf32>, vector<16x15xf32> -> vector<16x256xf32>
    %233 = vector.extract_strided_slice %0 {offsets = [0, 0], sizes = [1, 256], strides = [1, 1]} : vector<2x256xf32> to vector<1x256xf32>
    %234 = vector.broadcast %233 : vector<1x256xf32> to vector<16x256xf32>
    %235 = arith.mulf %232, %234 : vector<16x256xf32>
    %cst_73 = arith.constant 0.000000e+00 : f32
    %236 = vector.broadcast %cst_73 : f32 to vector<16x16xf32>
    %237 = vector.extract_strided_slice %200 {offsets = [0, 16], sizes = [16, 240], strides = [1, 1]} : vector<16x256xf32> to vector<16x240xf32>
    %238 = tpu.concatenate %237, %236 in 1 : vector<16x240xf32>, vector<16x16xf32> -> vector<16x256xf32>
    %cst_74 = arith.constant 0.000000e+00 : f32
    %239 = vector.broadcast %cst_74 : f32 to vector<16x17xf32>
    %240 = vector.extract_strided_slice %200 {offsets = [0, 17], sizes = [16, 239], strides = [1, 1]} : vector<16x256xf32> to vector<16x239xf32>
    %241 = tpu.concatenate %240, %239 in 1 : vector<16x239xf32>, vector<16x17xf32> -> vector<16x256xf32>
    %242 = vector.extract_strided_slice %0 {offsets = [1, 0], sizes = [1, 256], strides = [1, 1]} : vector<2x256xf32> to vector<1x256xf32>
    %243 = vector.broadcast %242 : vector<1x256xf32> to vector<16x256xf32>
    %244 = arith.mulf %241, %243 : vector<16x256xf32>
    %245 = tpu.concatenate %208, %211, %217, %223, %200, %229, %235, %238, %244 in 0 : vector<16x256xf32>, vector<16x256xf32>, vector<16x256xf32>, vector<16x256xf32>, vector<16x256xf32>, vector<16x256xf32>, vector<16x256xf32>, vector<16x256xf32>, vector<16x256xf32> -> vector<144x256xf32>
    %cst_75 = arith.constant dense<0.000000e+00> : vector<16x256xf32>
    %246 = tpu.matmul %201, %245, %cst_75 {dimension_numbers = #tpu.dot_dimension_numbers<[1], [0], [0], [1], [0, 0, 1, 1], [], []>} : vector<16x144xf32>, vector<144x256xf32>, vector<16x256xf32> -> vector<16x256xf32>
    %247 = vector.broadcast %202 : vector<16x1xf32> to vector<16x256xf32>
    %248 = arith.addf %246, %247 : vector<16x256xf32>
    %249 = arith.negf %248 : vector<16x256xf32>
    %250 = math.exp %249 : vector<16x256xf32>
    %cst_76 = arith.constant 1.000000e+00 : f32
    %251 = vector.broadcast %cst_76 : f32 to vector<16x256xf32>
    %252 = arith.addf %251, %250 : vector<16x256xf32>
    %253 = arith.divf %251, %252 : vector<16x256xf32>
    %254 = arith.mulf %248, %253 : vector<16x256xf32>
    %c0_77 = arith.constant 0 : index
    %c0_78 = arith.constant 0 : index
    %255 = vector.load %arg17[%c0_77, %c0_78] : memref<16x16xf32, #tpu.memory_space<vmem>>, vector<16x16xf32>
    %c0_79 = arith.constant 0 : index
    %c0_80 = arith.constant 0 : index
    %256 = vector.load %arg18[%c0_79, %c0_80] : memref<16x1xf32, #tpu.memory_space<vmem>>, vector<16x1xf32>
    %cst_81 = arith.constant dense<0.000000e+00> : vector<16x256xf32>
    %257 = tpu.matmul %255, %254, %cst_81 {dimension_numbers = #tpu.dot_dimension_numbers<[1], [0], [0], [1], [0, 0, 1, 1], [], []>} : vector<16x16xf32>, vector<16x256xf32>, vector<16x256xf32> -> vector<16x256xf32>
    %258 = vector.broadcast %256 : vector<16x1xf32> to vector<16x256xf32>
    %259 = arith.addf %257, %258 : vector<16x256xf32>
    %260 = arith.negf %259 : vector<16x256xf32>
    %261 = math.exp %260 : vector<16x256xf32>
    %cst_82 = arith.constant 1.000000e+00 : f32
    %262 = vector.broadcast %cst_82 : f32 to vector<16x256xf32>
    %263 = arith.addf %262, %261 : vector<16x256xf32>
    %264 = arith.divf %262, %263 : vector<16x256xf32>
    %265 = arith.mulf %259, %264 : vector<16x256xf32>
    %c0_83 = arith.constant 0 : index
    %c0_84 = arith.constant 0 : index
    %266 = vector.load %arg19[%c0_83, %c0_84] : memref<16x144xf32, #tpu.memory_space<vmem>>, vector<16x144xf32>
    %c0_85 = arith.constant 0 : index
    %c0_86 = arith.constant 0 : index
    %267 = vector.load %arg20[%c0_85, %c0_86] : memref<16x1xf32, #tpu.memory_space<vmem>>, vector<16x1xf32>
    %cst_87 = arith.constant 0.000000e+00 : f32
    %268 = vector.broadcast %cst_87 : f32 to vector<16x17xf32>
    %269 = vector.extract_strided_slice %265 {offsets = [0, 0], sizes = [16, 239], strides = [1, 1]} : vector<16x256xf32> to vector<16x239xf32>
    %270 = tpu.concatenate %268, %269 in 1 : vector<16x17xf32>, vector<16x239xf32> -> vector<16x256xf32>
    %271 = vector.extract_strided_slice %0 {offsets = [0, 0], sizes = [1, 256], strides = [1, 1]} : vector<2x256xf32> to vector<1x256xf32>
    %272 = vector.broadcast %271 : vector<1x256xf32> to vector<16x256xf32>
    %273 = arith.mulf %270, %272 : vector<16x256xf32>
    %cst_88 = arith.constant 0.000000e+00 : f32
    %274 = vector.broadcast %cst_88 : f32 to vector<16x16xf32>
    %275 = vector.extract_strided_slice %265 {offsets = [0, 0], sizes = [16, 240], strides = [1, 1]} : vector<16x256xf32> to vector<16x240xf32>
    %276 = tpu.concatenate %274, %275 in 1 : vector<16x16xf32>, vector<16x240xf32> -> vector<16x256xf32>
    %cst_89 = arith.constant 0.000000e+00 : f32
    %277 = vector.broadcast %cst_89 : f32 to vector<16x15xf32>
    %278 = vector.extract_strided_slice %265 {offsets = [0, 0], sizes = [16, 241], strides = [1, 1]} : vector<16x256xf32> to vector<16x241xf32>
    %279 = tpu.concatenate %277, %278 in 1 : vector<16x15xf32>, vector<16x241xf32> -> vector<16x256xf32>
    %280 = vector.extract_strided_slice %0 {offsets = [1, 0], sizes = [1, 256], strides = [1, 1]} : vector<2x256xf32> to vector<1x256xf32>
    %281 = vector.broadcast %280 : vector<1x256xf32> to vector<16x256xf32>
    %282 = arith.mulf %279, %281 : vector<16x256xf32>
    %cst_90 = arith.constant 0.000000e+00 : f32
    %283 = vector.broadcast %cst_90 : f32 to vector<16x1xf32>
    %284 = vector.extract_strided_slice %265 {offsets = [0, 0], sizes = [16, 255], strides = [1, 1]} : vector<16x256xf32> to vector<16x255xf32>
    %285 = tpu.concatenate %283, %284 in 1 : vector<16x1xf32>, vector<16x255xf32> -> vector<16x256xf32>
    %286 = vector.extract_strided_slice %0 {offsets = [0, 0], sizes = [1, 256], strides = [1, 1]} : vector<2x256xf32> to vector<1x256xf32>
    %287 = vector.broadcast %286 : vector<1x256xf32> to vector<16x256xf32>
    %288 = arith.mulf %285, %287 : vector<16x256xf32>
    %cst_91 = arith.constant 0.000000e+00 : f32
    %289 = vector.broadcast %cst_91 : f32 to vector<16x1xf32>
    %290 = vector.extract_strided_slice %265 {offsets = [0, 1], sizes = [16, 255], strides = [1, 1]} : vector<16x256xf32> to vector<16x255xf32>
    %291 = tpu.concatenate %290, %289 in 1 : vector<16x255xf32>, vector<16x1xf32> -> vector<16x256xf32>
    %292 = vector.extract_strided_slice %0 {offsets = [1, 0], sizes = [1, 256], strides = [1, 1]} : vector<2x256xf32> to vector<1x256xf32>
    %293 = vector.broadcast %292 : vector<1x256xf32> to vector<16x256xf32>
    %294 = arith.mulf %291, %293 : vector<16x256xf32>
    %cst_92 = arith.constant 0.000000e+00 : f32
    %295 = vector.broadcast %cst_92 : f32 to vector<16x15xf32>
    %296 = vector.extract_strided_slice %265 {offsets = [0, 15], sizes = [16, 241], strides = [1, 1]} : vector<16x256xf32> to vector<16x241xf32>
    %297 = tpu.concatenate %296, %295 in 1 : vector<16x241xf32>, vector<16x15xf32> -> vector<16x256xf32>
    %298 = vector.extract_strided_slice %0 {offsets = [0, 0], sizes = [1, 256], strides = [1, 1]} : vector<2x256xf32> to vector<1x256xf32>
    %299 = vector.broadcast %298 : vector<1x256xf32> to vector<16x256xf32>
    %300 = arith.mulf %297, %299 : vector<16x256xf32>
    %cst_93 = arith.constant 0.000000e+00 : f32
    %301 = vector.broadcast %cst_93 : f32 to vector<16x16xf32>
    %302 = vector.extract_strided_slice %265 {offsets = [0, 16], sizes = [16, 240], strides = [1, 1]} : vector<16x256xf32> to vector<16x240xf32>
    %303 = tpu.concatenate %302, %301 in 1 : vector<16x240xf32>, vector<16x16xf32> -> vector<16x256xf32>
    %cst_94 = arith.constant 0.000000e+00 : f32
    %304 = vector.broadcast %cst_94 : f32 to vector<16x17xf32>
    %305 = vector.extract_strided_slice %265 {offsets = [0, 17], sizes = [16, 239], strides = [1, 1]} : vector<16x256xf32> to vector<16x239xf32>
    %306 = tpu.concatenate %305, %304 in 1 : vector<16x239xf32>, vector<16x17xf32> -> vector<16x256xf32>
    %307 = vector.extract_strided_slice %0 {offsets = [1, 0], sizes = [1, 256], strides = [1, 1]} : vector<2x256xf32> to vector<1x256xf32>
    %308 = vector.broadcast %307 : vector<1x256xf32> to vector<16x256xf32>
    %309 = arith.mulf %306, %308 : vector<16x256xf32>
    %310 = tpu.concatenate %273, %276, %282, %288, %265, %294, %300, %303, %309 in 0 : vector<16x256xf32>, vector<16x256xf32>, vector<16x256xf32>, vector<16x256xf32>, vector<16x256xf32>, vector<16x256xf32>, vector<16x256xf32>, vector<16x256xf32>, vector<16x256xf32> -> vector<144x256xf32>
    %cst_95 = arith.constant dense<0.000000e+00> : vector<16x256xf32>
    %311 = tpu.matmul %266, %310, %cst_95 {dimension_numbers = #tpu.dot_dimension_numbers<[1], [0], [0], [1], [0, 0, 1, 1], [], []>} : vector<16x144xf32>, vector<144x256xf32>, vector<16x256xf32> -> vector<16x256xf32>
    %312 = vector.broadcast %267 : vector<16x1xf32> to vector<16x256xf32>
    %313 = arith.addf %311, %312 : vector<16x256xf32>
    %314 = arith.negf %313 : vector<16x256xf32>
    %315 = math.exp %314 : vector<16x256xf32>
    %cst_96 = arith.constant 1.000000e+00 : f32
    %316 = vector.broadcast %cst_96 : f32 to vector<16x256xf32>
    %317 = arith.addf %316, %315 : vector<16x256xf32>
    %318 = arith.divf %316, %317 : vector<16x256xf32>
    %319 = arith.mulf %313, %318 : vector<16x256xf32>
    %c0_97 = arith.constant 0 : index
    %c0_98 = arith.constant 0 : index
    %320 = vector.load %arg21[%c0_97, %c0_98] : memref<16x144xf32, #tpu.memory_space<vmem>>, vector<16x144xf32>
    %c0_99 = arith.constant 0 : index
    %c0_100 = arith.constant 0 : index
    %321 = vector.load %arg22[%c0_99, %c0_100] : memref<16x1xf32, #tpu.memory_space<vmem>>, vector<16x1xf32>
    %cst_101 = arith.constant 0.000000e+00 : f32
    %322 = vector.broadcast %cst_101 : f32 to vector<16x17xf32>
    %323 = vector.extract_strided_slice %319 {offsets = [0, 0], sizes = [16, 239], strides = [1, 1]} : vector<16x256xf32> to vector<16x239xf32>
    %324 = tpu.concatenate %322, %323 in 1 : vector<16x17xf32>, vector<16x239xf32> -> vector<16x256xf32>
    %325 = vector.extract_strided_slice %0 {offsets = [0, 0], sizes = [1, 256], strides = [1, 1]} : vector<2x256xf32> to vector<1x256xf32>
    %326 = vector.broadcast %325 : vector<1x256xf32> to vector<16x256xf32>
    %327 = arith.mulf %324, %326 : vector<16x256xf32>
    %cst_102 = arith.constant 0.000000e+00 : f32
    %328 = vector.broadcast %cst_102 : f32 to vector<16x16xf32>
    %329 = vector.extract_strided_slice %319 {offsets = [0, 0], sizes = [16, 240], strides = [1, 1]} : vector<16x256xf32> to vector<16x240xf32>
    %330 = tpu.concatenate %328, %329 in 1 : vector<16x16xf32>, vector<16x240xf32> -> vector<16x256xf32>
    %cst_103 = arith.constant 0.000000e+00 : f32
    %331 = vector.broadcast %cst_103 : f32 to vector<16x15xf32>
    %332 = vector.extract_strided_slice %319 {offsets = [0, 0], sizes = [16, 241], strides = [1, 1]} : vector<16x256xf32> to vector<16x241xf32>
    %333 = tpu.concatenate %331, %332 in 1 : vector<16x15xf32>, vector<16x241xf32> -> vector<16x256xf32>
    %334 = vector.extract_strided_slice %0 {offsets = [1, 0], sizes = [1, 256], strides = [1, 1]} : vector<2x256xf32> to vector<1x256xf32>
    %335 = vector.broadcast %334 : vector<1x256xf32> to vector<16x256xf32>
    %336 = arith.mulf %333, %335 : vector<16x256xf32>
    %cst_104 = arith.constant 0.000000e+00 : f32
    %337 = vector.broadcast %cst_104 : f32 to vector<16x1xf32>
    %338 = vector.extract_strided_slice %319 {offsets = [0, 0], sizes = [16, 255], strides = [1, 1]} : vector<16x256xf32> to vector<16x255xf32>
    %339 = tpu.concatenate %337, %338 in 1 : vector<16x1xf32>, vector<16x255xf32> -> vector<16x256xf32>
    %340 = vector.extract_strided_slice %0 {offsets = [0, 0], sizes = [1, 256], strides = [1, 1]} : vector<2x256xf32> to vector<1x256xf32>
    %341 = vector.broadcast %340 : vector<1x256xf32> to vector<16x256xf32>
    %342 = arith.mulf %339, %341 : vector<16x256xf32>
    %cst_105 = arith.constant 0.000000e+00 : f32
    %343 = vector.broadcast %cst_105 : f32 to vector<16x1xf32>
    %344 = vector.extract_strided_slice %319 {offsets = [0, 1], sizes = [16, 255], strides = [1, 1]} : vector<16x256xf32> to vector<16x255xf32>
    %345 = tpu.concatenate %344, %343 in 1 : vector<16x255xf32>, vector<16x1xf32> -> vector<16x256xf32>
    %346 = vector.extract_strided_slice %0 {offsets = [1, 0], sizes = [1, 256], strides = [1, 1]} : vector<2x256xf32> to vector<1x256xf32>
    %347 = vector.broadcast %346 : vector<1x256xf32> to vector<16x256xf32>
    %348 = arith.mulf %345, %347 : vector<16x256xf32>
    %cst_106 = arith.constant 0.000000e+00 : f32
    %349 = vector.broadcast %cst_106 : f32 to vector<16x15xf32>
    %350 = vector.extract_strided_slice %319 {offsets = [0, 15], sizes = [16, 241], strides = [1, 1]} : vector<16x256xf32> to vector<16x241xf32>
    %351 = tpu.concatenate %350, %349 in 1 : vector<16x241xf32>, vector<16x15xf32> -> vector<16x256xf32>
    %352 = vector.extract_strided_slice %0 {offsets = [0, 0], sizes = [1, 256], strides = [1, 1]} : vector<2x256xf32> to vector<1x256xf32>
    %353 = vector.broadcast %352 : vector<1x256xf32> to vector<16x256xf32>
    %354 = arith.mulf %351, %353 : vector<16x256xf32>
    %cst_107 = arith.constant 0.000000e+00 : f32
    %355 = vector.broadcast %cst_107 : f32 to vector<16x16xf32>
    %356 = vector.extract_strided_slice %319 {offsets = [0, 16], sizes = [16, 240], strides = [1, 1]} : vector<16x256xf32> to vector<16x240xf32>
    %357 = tpu.concatenate %356, %355 in 1 : vector<16x240xf32>, vector<16x16xf32> -> vector<16x256xf32>
    %cst_108 = arith.constant 0.000000e+00 : f32
    %358 = vector.broadcast %cst_108 : f32 to vector<16x17xf32>
    %359 = vector.extract_strided_slice %319 {offsets = [0, 17], sizes = [16, 239], strides = [1, 1]} : vector<16x256xf32> to vector<16x239xf32>
    %360 = tpu.concatenate %359, %358 in 1 : vector<16x239xf32>, vector<16x17xf32> -> vector<16x256xf32>
    %361 = vector.extract_strided_slice %0 {offsets = [1, 0], sizes = [1, 256], strides = [1, 1]} : vector<2x256xf32> to vector<1x256xf32>
    %362 = vector.broadcast %361 : vector<1x256xf32> to vector<16x256xf32>
    %363 = arith.mulf %360, %362 : vector<16x256xf32>
    %364 = tpu.concatenate %327, %330, %336, %342, %319, %348, %354, %357, %363 in 0 : vector<16x256xf32>, vector<16x256xf32>, vector<16x256xf32>, vector<16x256xf32>, vector<16x256xf32>, vector<16x256xf32>, vector<16x256xf32>, vector<16x256xf32>, vector<16x256xf32> -> vector<144x256xf32>
    %cst_109 = arith.constant dense<0.000000e+00> : vector<16x256xf32>
    %365 = tpu.matmul %320, %364, %cst_109 {dimension_numbers = #tpu.dot_dimension_numbers<[1], [0], [0], [1], [0, 0, 1, 1], [], []>} : vector<16x144xf32>, vector<144x256xf32>, vector<16x256xf32> -> vector<16x256xf32>
    %366 = vector.broadcast %321 : vector<16x1xf32> to vector<16x256xf32>
    %367 = arith.addf %365, %366 : vector<16x256xf32>
    %368 = arith.negf %367 : vector<16x256xf32>
    %369 = math.exp %368 : vector<16x256xf32>
    %cst_110 = arith.constant 1.000000e+00 : f32
    %370 = vector.broadcast %cst_110 : f32 to vector<16x256xf32>
    %371 = arith.addf %370, %369 : vector<16x256xf32>
    %372 = arith.divf %370, %371 : vector<16x256xf32>
    %373 = arith.mulf %367, %372 : vector<16x256xf32>
    %c0_111 = arith.constant 0 : index
    %c0_112 = arith.constant 0 : index
    %374 = vector.load %arg23[%c0_111, %c0_112] : memref<16x144xf32, #tpu.memory_space<vmem>>, vector<16x144xf32>
    %c0_113 = arith.constant 0 : index
    %c0_114 = arith.constant 0 : index
    %375 = vector.load %arg24[%c0_113, %c0_114] : memref<16x1xf32, #tpu.memory_space<vmem>>, vector<16x1xf32>
    %cst_115 = arith.constant 0.000000e+00 : f32
    %376 = vector.broadcast %cst_115 : f32 to vector<16x17xf32>
    %377 = vector.extract_strided_slice %373 {offsets = [0, 0], sizes = [16, 239], strides = [1, 1]} : vector<16x256xf32> to vector<16x239xf32>
    %378 = tpu.concatenate %376, %377 in 1 : vector<16x17xf32>, vector<16x239xf32> -> vector<16x256xf32>
    %379 = vector.extract_strided_slice %0 {offsets = [0, 0], sizes = [1, 256], strides = [1, 1]} : vector<2x256xf32> to vector<1x256xf32>
    %380 = vector.broadcast %379 : vector<1x256xf32> to vector<16x256xf32>
    %381 = arith.mulf %378, %380 : vector<16x256xf32>
    %cst_116 = arith.constant 0.000000e+00 : f32
    %382 = vector.broadcast %cst_116 : f32 to vector<16x16xf32>
    %383 = vector.extract_strided_slice %373 {offsets = [0, 0], sizes = [16, 240], strides = [1, 1]} : vector<16x256xf32> to vector<16x240xf32>
    %384 = tpu.concatenate %382, %383 in 1 : vector<16x16xf32>, vector<16x240xf32> -> vector<16x256xf32>
    %cst_117 = arith.constant 0.000000e+00 : f32
    %385 = vector.broadcast %cst_117 : f32 to vector<16x15xf32>
    %386 = vector.extract_strided_slice %373 {offsets = [0, 0], sizes = [16, 241], strides = [1, 1]} : vector<16x256xf32> to vector<16x241xf32>
    %387 = tpu.concatenate %385, %386 in 1 : vector<16x15xf32>, vector<16x241xf32> -> vector<16x256xf32>
    %388 = vector.extract_strided_slice %0 {offsets = [1, 0], sizes = [1, 256], strides = [1, 1]} : vector<2x256xf32> to vector<1x256xf32>
    %389 = vector.broadcast %388 : vector<1x256xf32> to vector<16x256xf32>
    %390 = arith.mulf %387, %389 : vector<16x256xf32>
    %cst_118 = arith.constant 0.000000e+00 : f32
    %391 = vector.broadcast %cst_118 : f32 to vector<16x1xf32>
    %392 = vector.extract_strided_slice %373 {offsets = [0, 0], sizes = [16, 255], strides = [1, 1]} : vector<16x256xf32> to vector<16x255xf32>
    %393 = tpu.concatenate %391, %392 in 1 : vector<16x1xf32>, vector<16x255xf32> -> vector<16x256xf32>
    %394 = vector.extract_strided_slice %0 {offsets = [0, 0], sizes = [1, 256], strides = [1, 1]} : vector<2x256xf32> to vector<1x256xf32>
    %395 = vector.broadcast %394 : vector<1x256xf32> to vector<16x256xf32>
    %396 = arith.mulf %393, %395 : vector<16x256xf32>
    %cst_119 = arith.constant 0.000000e+00 : f32
    %397 = vector.broadcast %cst_119 : f32 to vector<16x1xf32>
    %398 = vector.extract_strided_slice %373 {offsets = [0, 1], sizes = [16, 255], strides = [1, 1]} : vector<16x256xf32> to vector<16x255xf32>
    %399 = tpu.concatenate %398, %397 in 1 : vector<16x255xf32>, vector<16x1xf32> -> vector<16x256xf32>
    %400 = vector.extract_strided_slice %0 {offsets = [1, 0], sizes = [1, 256], strides = [1, 1]} : vector<2x256xf32> to vector<1x256xf32>
    %401 = vector.broadcast %400 : vector<1x256xf32> to vector<16x256xf32>
    %402 = arith.mulf %399, %401 : vector<16x256xf32>
    %cst_120 = arith.constant 0.000000e+00 : f32
    %403 = vector.broadcast %cst_120 : f32 to vector<16x15xf32>
    %404 = vector.extract_strided_slice %373 {offsets = [0, 15], sizes = [16, 241], strides = [1, 1]} : vector<16x256xf32> to vector<16x241xf32>
    %405 = tpu.concatenate %404, %403 in 1 : vector<16x241xf32>, vector<16x15xf32> -> vector<16x256xf32>
    %406 = vector.extract_strided_slice %0 {offsets = [0, 0], sizes = [1, 256], strides = [1, 1]} : vector<2x256xf32> to vector<1x256xf32>
    %407 = vector.broadcast %406 : vector<1x256xf32> to vector<16x256xf32>
    %408 = arith.mulf %405, %407 : vector<16x256xf32>
    %cst_121 = arith.constant 0.000000e+00 : f32
    %409 = vector.broadcast %cst_121 : f32 to vector<16x16xf32>
    %410 = vector.extract_strided_slice %373 {offsets = [0, 16], sizes = [16, 240], strides = [1, 1]} : vector<16x256xf32> to vector<16x240xf32>
    %411 = tpu.concatenate %410, %409 in 1 : vector<16x240xf32>, vector<16x16xf32> -> vector<16x256xf32>
    %cst_122 = arith.constant 0.000000e+00 : f32
    %412 = vector.broadcast %cst_122 : f32 to vector<16x17xf32>
    %413 = vector.extract_strided_slice %373 {offsets = [0, 17], sizes = [16, 239], strides = [1, 1]} : vector<16x256xf32> to vector<16x239xf32>
    %414 = tpu.concatenate %413, %412 in 1 : vector<16x239xf32>, vector<16x17xf32> -> vector<16x256xf32>
    %415 = vector.extract_strided_slice %0 {offsets = [1, 0], sizes = [1, 256], strides = [1, 1]} : vector<2x256xf32> to vector<1x256xf32>
    %416 = vector.broadcast %415 : vector<1x256xf32> to vector<16x256xf32>
    %417 = arith.mulf %414, %416 : vector<16x256xf32>
    %418 = tpu.concatenate %381, %384, %390, %396, %373, %402, %408, %411, %417 in 0 : vector<16x256xf32>, vector<16x256xf32>, vector<16x256xf32>, vector<16x256xf32>, vector<16x256xf32>, vector<16x256xf32>, vector<16x256xf32>, vector<16x256xf32>, vector<16x256xf32> -> vector<144x256xf32>
    %cst_123 = arith.constant dense<0.000000e+00> : vector<16x256xf32>
    %419 = tpu.matmul %374, %418, %cst_123 {dimension_numbers = #tpu.dot_dimension_numbers<[1], [0], [0], [1], [0, 0, 1, 1], [], []>} : vector<16x144xf32>, vector<144x256xf32>, vector<16x256xf32> -> vector<16x256xf32>
    %420 = vector.broadcast %375 : vector<16x1xf32> to vector<16x256xf32>
    %421 = arith.addf %419, %420 : vector<16x256xf32>
    %422 = arith.negf %421 : vector<16x256xf32>
    %423 = math.exp %422 : vector<16x256xf32>
    %cst_124 = arith.constant 1.000000e+00 : f32
    %424 = vector.broadcast %cst_124 : f32 to vector<16x256xf32>
    %425 = arith.addf %424, %423 : vector<16x256xf32>
    %426 = arith.divf %424, %425 : vector<16x256xf32>
    %427 = arith.mulf %421, %426 : vector<16x256xf32>
    %c0_125 = arith.constant 0 : index
    %c0_126 = arith.constant 0 : index
    %428 = vector.load %arg25[%c0_125, %c0_126] : memref<16x16xf32, #tpu.memory_space<vmem>>, vector<16x16xf32>
    %c0_127 = arith.constant 0 : index
    %c0_128 = arith.constant 0 : index
    %429 = vector.load %arg26[%c0_127, %c0_128] : memref<16x1xf32, #tpu.memory_space<vmem>>, vector<16x1xf32>
    %cst_129 = arith.constant dense<0.000000e+00> : vector<16x256xf32>
    %430 = tpu.matmul %428, %254, %cst_129 {dimension_numbers = #tpu.dot_dimension_numbers<[1], [0], [0], [1], [0, 0, 1, 1], [], []>} : vector<16x16xf32>, vector<16x256xf32>, vector<16x256xf32> -> vector<16x256xf32>
    %431 = vector.broadcast %429 : vector<16x1xf32> to vector<16x256xf32>
    %432 = arith.addf %430, %431 : vector<16x256xf32>
    %433 = arith.negf %432 : vector<16x256xf32>
    %434 = math.exp %433 : vector<16x256xf32>
    %cst_130 = arith.constant 1.000000e+00 : f32
    %435 = vector.broadcast %cst_130 : f32 to vector<16x256xf32>
    %436 = arith.addf %435, %434 : vector<16x256xf32>
    %437 = arith.divf %435, %436 : vector<16x256xf32>
    %438 = arith.mulf %432, %437 : vector<16x256xf32>
    %439 = arith.addf %427, %438 : vector<16x256xf32>
    %c0_131 = arith.constant 0 : index
    %c0_132 = arith.constant 0 : index
    %440 = vector.load %arg27[%c0_131, %c0_132] : memref<16x144xf32, #tpu.memory_space<vmem>>, vector<16x144xf32>
    %c0_133 = arith.constant 0 : index
    %c0_134 = arith.constant 0 : index
    %441 = vector.load %arg28[%c0_133, %c0_134] : memref<16x1xf32, #tpu.memory_space<vmem>>, vector<16x1xf32>
    %cst_135 = arith.constant 0.000000e+00 : f32
    %442 = vector.broadcast %cst_135 : f32 to vector<16x17xf32>
    %443 = vector.extract_strided_slice %439 {offsets = [0, 0], sizes = [16, 239], strides = [1, 1]} : vector<16x256xf32> to vector<16x239xf32>
    %444 = tpu.concatenate %442, %443 in 1 : vector<16x17xf32>, vector<16x239xf32> -> vector<16x256xf32>
    %445 = vector.extract_strided_slice %0 {offsets = [0, 0], sizes = [1, 256], strides = [1, 1]} : vector<2x256xf32> to vector<1x256xf32>
    %446 = vector.broadcast %445 : vector<1x256xf32> to vector<16x256xf32>
    %447 = arith.mulf %444, %446 : vector<16x256xf32>
    %cst_136 = arith.constant 0.000000e+00 : f32
    %448 = vector.broadcast %cst_136 : f32 to vector<16x16xf32>
    %449 = vector.extract_strided_slice %439 {offsets = [0, 0], sizes = [16, 240], strides = [1, 1]} : vector<16x256xf32> to vector<16x240xf32>
    %450 = tpu.concatenate %448, %449 in 1 : vector<16x16xf32>, vector<16x240xf32> -> vector<16x256xf32>
    %cst_137 = arith.constant 0.000000e+00 : f32
    %451 = vector.broadcast %cst_137 : f32 to vector<16x15xf32>
    %452 = vector.extract_strided_slice %439 {offsets = [0, 0], sizes = [16, 241], strides = [1, 1]} : vector<16x256xf32> to vector<16x241xf32>
    %453 = tpu.concatenate %451, %452 in 1 : vector<16x15xf32>, vector<16x241xf32> -> vector<16x256xf32>
    %454 = vector.extract_strided_slice %0 {offsets = [1, 0], sizes = [1, 256], strides = [1, 1]} : vector<2x256xf32> to vector<1x256xf32>
    %455 = vector.broadcast %454 : vector<1x256xf32> to vector<16x256xf32>
    %456 = arith.mulf %453, %455 : vector<16x256xf32>
    %cst_138 = arith.constant 0.000000e+00 : f32
    %457 = vector.broadcast %cst_138 : f32 to vector<16x1xf32>
    %458 = vector.extract_strided_slice %439 {offsets = [0, 0], sizes = [16, 255], strides = [1, 1]} : vector<16x256xf32> to vector<16x255xf32>
    %459 = tpu.concatenate %457, %458 in 1 : vector<16x1xf32>, vector<16x255xf32> -> vector<16x256xf32>
    %460 = vector.extract_strided_slice %0 {offsets = [0, 0], sizes = [1, 256], strides = [1, 1]} : vector<2x256xf32> to vector<1x256xf32>
    %461 = vector.broadcast %460 : vector<1x256xf32> to vector<16x256xf32>
    %462 = arith.mulf %459, %461 : vector<16x256xf32>
    %cst_139 = arith.constant 0.000000e+00 : f32
    %463 = vector.broadcast %cst_139 : f32 to vector<16x1xf32>
    %464 = vector.extract_strided_slice %439 {offsets = [0, 1], sizes = [16, 255], strides = [1, 1]} : vector<16x256xf32> to vector<16x255xf32>
    %465 = tpu.concatenate %464, %463 in 1 : vector<16x255xf32>, vector<16x1xf32> -> vector<16x256xf32>
    %466 = vector.extract_strided_slice %0 {offsets = [1, 0], sizes = [1, 256], strides = [1, 1]} : vector<2x256xf32> to vector<1x256xf32>
    %467 = vector.broadcast %466 : vector<1x256xf32> to vector<16x256xf32>
    %468 = arith.mulf %465, %467 : vector<16x256xf32>
    %cst_140 = arith.constant 0.000000e+00 : f32
    %469 = vector.broadcast %cst_140 : f32 to vector<16x15xf32>
    %470 = vector.extract_strided_slice %439 {offsets = [0, 15], sizes = [16, 241], strides = [1, 1]} : vector<16x256xf32> to vector<16x241xf32>
    %471 = tpu.concatenate %470, %469 in 1 : vector<16x241xf32>, vector<16x15xf32> -> vector<16x256xf32>
    %472 = vector.extract_strided_slice %0 {offsets = [0, 0], sizes = [1, 256], strides = [1, 1]} : vector<2x256xf32> to vector<1x256xf32>
    %473 = vector.broadcast %472 : vector<1x256xf32> to vector<16x256xf32>
    %474 = arith.mulf %471, %473 : vector<16x256xf32>
    %cst_141 = arith.constant 0.000000e+00 : f32
    %475 = vector.broadcast %cst_141 : f32 to vector<16x16xf32>
    %476 = vector.extract_strided_slice %439 {offsets = [0, 16], sizes = [16, 240], strides = [1, 1]} : vector<16x256xf32> to vector<16x240xf32>
    %477 = tpu.concatenate %476, %475 in 1 : vector<16x240xf32>, vector<16x16xf32> -> vector<16x256xf32>
    %cst_142 = arith.constant 0.000000e+00 : f32
    %478 = vector.broadcast %cst_142 : f32 to vector<16x17xf32>
    %479 = vector.extract_strided_slice %439 {offsets = [0, 17], sizes = [16, 239], strides = [1, 1]} : vector<16x256xf32> to vector<16x239xf32>
    %480 = tpu.concatenate %479, %478 in 1 : vector<16x239xf32>, vector<16x17xf32> -> vector<16x256xf32>
    %481 = vector.extract_strided_slice %0 {offsets = [1, 0], sizes = [1, 256], strides = [1, 1]} : vector<2x256xf32> to vector<1x256xf32>
    %482 = vector.broadcast %481 : vector<1x256xf32> to vector<16x256xf32>
    %483 = arith.mulf %480, %482 : vector<16x256xf32>
    %484 = tpu.concatenate %447, %450, %456, %462, %439, %468, %474, %477, %483 in 0 : vector<16x256xf32>, vector<16x256xf32>, vector<16x256xf32>, vector<16x256xf32>, vector<16x256xf32>, vector<16x256xf32>, vector<16x256xf32>, vector<16x256xf32>, vector<16x256xf32> -> vector<144x256xf32>
    %cst_143 = arith.constant dense<0.000000e+00> : vector<16x256xf32>
    %485 = tpu.matmul %440, %484, %cst_143 {dimension_numbers = #tpu.dot_dimension_numbers<[1], [0], [0], [1], [0, 0, 1, 1], [], []>} : vector<16x144xf32>, vector<144x256xf32>, vector<16x256xf32> -> vector<16x256xf32>
    %486 = vector.broadcast %441 : vector<16x1xf32> to vector<16x256xf32>
    %487 = arith.addf %485, %486 : vector<16x256xf32>
    %488 = arith.negf %487 : vector<16x256xf32>
    %489 = math.exp %488 : vector<16x256xf32>
    %cst_144 = arith.constant 1.000000e+00 : f32
    %490 = vector.broadcast %cst_144 : f32 to vector<16x256xf32>
    %491 = arith.addf %490, %489 : vector<16x256xf32>
    %492 = arith.divf %490, %491 : vector<16x256xf32>
    %493 = arith.mulf %487, %492 : vector<16x256xf32>
    %494 = tpu.concatenate %14, %15, %254, %493 in 0 : vector<8x256xf32>, vector<8x256xf32>, vector<16x256xf32>, vector<16x256xf32> -> vector<48x256xf32>
    %c0_145 = arith.constant 0 : index
    %c0_146 = arith.constant 0 : index
    %495 = vector.load %arg29[%c0_145, %c0_146] : memref<32x48xf32, #tpu.memory_space<vmem>>, vector<32x48xf32>
    %c0_147 = arith.constant 0 : index
    %c0_148 = arith.constant 0 : index
    %496 = vector.load %arg30[%c0_147, %c0_148] : memref<32x1xf32, #tpu.memory_space<vmem>>, vector<32x1xf32>
    %cst_149 = arith.constant dense<0.000000e+00> : vector<32x256xf32>
    %497 = tpu.matmul %495, %494, %cst_149 {dimension_numbers = #tpu.dot_dimension_numbers<[1], [0], [0], [1], [0, 0, 1, 1], [], []>} : vector<32x48xf32>, vector<48x256xf32>, vector<32x256xf32> -> vector<32x256xf32>
    %498 = vector.broadcast %496 : vector<32x1xf32> to vector<32x256xf32>
    %499 = arith.addf %497, %498 : vector<32x256xf32>
    %500 = arith.negf %499 : vector<32x256xf32>
    %501 = math.exp %500 : vector<32x256xf32>
    %cst_150 = arith.constant 1.000000e+00 : f32
    %502 = vector.broadcast %cst_150 : f32 to vector<32x256xf32>
    %503 = arith.addf %502, %501 : vector<32x256xf32>
    %504 = arith.divf %502, %503 : vector<32x256xf32>
    %505 = arith.mulf %499, %504 : vector<32x256xf32>
    %c0_151 = arith.constant 0 : index
    %c0_152 = arith.constant 0 : index
    %c0_153 = arith.constant 0 : index
    %506 = vector.load %arg31[%c0_151, %c0_152, %c0_153] : memref<1x32x256xf32, #tpu.memory_space<vmem>>, vector<1x32x256xf32>
    %507 = vector.shape_cast %506 : vector<1x32x256xf32> to vector<32x256xf32>
    %508 = vector.shape_cast %505 : vector<32x256xf32> to vector<1x32x256xf32>
    tpu.vector_store %arg31[%c0_151, %c0_152, %c0_153], %508 {strides = array<i32>} : memref<1x32x256xf32, #tpu.memory_space<vmem>>, vector<1x32x256xf32>,
    return
  }
  func.func @transform_0(%arg0: i32) -> (i32, i32, i32) {
    %c0_i32 = arith.constant 0 : i32
    %c0_i32_0 = arith.constant 0 : i32
    %c0_i32_1 = arith.constant 0 : i32
    return %arg0, %c0_i32, %c0_i32_0 : i32, i32, i32
  }
  func.func @transform_1(%arg0: i32) -> (i32, i32) {
    %c0_i32 = arith.constant 0 : i32
    %c0_i32_0 = arith.constant 0 : i32
    %c0_i32_1 = arith.constant 0 : i32
    return %c0_i32, %c0_i32_0 : i32, i32
  }
  func.func @transform_2(%arg0: i32) -> (i32, i32) {
    %c0_i32 = arith.constant 0 : i32
    %c0_i32_0 = arith.constant 0 : i32
    %c0_i32_1 = arith.constant 0 : i32
    return %c0_i32, %c0_i32_0 : i32, i32
  }
  func.func @transform_3(%arg0: i32) -> (i32, i32) {
    %c0_i32 = arith.constant 0 : i32
    %c0_i32_0 = arith.constant 0 : i32
    %c0_i32_1 = arith.constant 0 : i32
    return %c0_i32, %c0_i32_0 : i32, i32
  }
  func.func @transform_4(%arg0: i32) -> (i32, i32) {
    %c0_i32 = arith.constant 0 : i32
    %c0_i32_0 = arith.constant 0 : i32
    %c0_i32_1 = arith.constant 0 : i32
    return %c0_i32, %c0_i32_0 : i32, i32
  }
  func.func @transform_5(%arg0: i32) -> (i32, i32) {
    %c0_i32 = arith.constant 0 : i32
    %c0_i32_0 = arith.constant 0 : i32
    %c0_i32_1 = arith.constant 0 : i32
    return %c0_i32, %c0_i32_0 : i32, i32
  }
  func.func @transform_6(%arg0: i32) -> (i32, i32) {
    %c0_i32 = arith.constant 0 : i32
    %c0_i32_0 = arith.constant 0 : i32
    %c0_i32_1 = arith.constant 0 : i32
    return %c0_i32, %c0_i32_0 : i32, i32
  }
  func.func @transform_7(%arg0: i32) -> (i32, i32) {
    %c0_i32 = arith.constant 0 : i32
    %c0_i32_0 = arith.constant 0 : i32
    %c0_i32_1 = arith.constant 0 : i32
    return %c0_i32, %c0_i32_0 : i32, i32
  }
  func.func @transform_8(%arg0: i32) -> (i32, i32) {
    %c0_i32 = arith.constant 0 : i32
    %c0_i32_0 = arith.constant 0 : i32
    %c0_i32_1 = arith.constant 0 : i32
    return %c0_i32, %c0_i32_0 : i32, i32
  }
  func.func @transform_9(%arg0: i32) -> (i32, i32) {
    %c0_i32 = arith.constant 0 : i32
    %c0_i32_0 = arith.constant 0 : i32
    %c0_i32_1 = arith.constant 0 : i32
    return %c0_i32, %c0_i32_0 : i32, i32
  }
  func.func @transform_10(%arg0: i32) -> (i32, i32) {
    %c0_i32 = arith.constant 0 : i32
    %c0_i32_0 = arith.constant 0 : i32
    %c0_i32_1 = arith.constant 0 : i32
    return %c0_i32, %c0_i32_0 : i32, i32
  }
  func.func @transform_11(%arg0: i32) -> (i32, i32) {
    %c0_i32 = arith.constant 0 : i32
    %c0_i32_0 = arith.constant 0 : i32
    %c0_i32_1 = arith.constant 0 : i32
    return %c0_i32, %c0_i32_0 : i32, i32
  }
  func.func @transform_12(%arg0: i32) -> (i32, i32) {
    %c0_i32 = arith.constant 0 : i32
    %c0_i32_0 = arith.constant 0 : i32
    %c0_i32_1 = arith.constant 0 : i32
    return %c0_i32, %c0_i32_0 : i32, i32
  }
  func.func @transform_13(%arg0: i32) -> (i32, i32) {
    %c0_i32 = arith.constant 0 : i32
    %c0_i32_0 = arith.constant 0 : i32
    %c0_i32_1 = arith.constant 0 : i32
    return %c0_i32, %c0_i32_0 : i32, i32
  }
  func.func @transform_14(%arg0: i32) -> (i32, i32) {
    %c0_i32 = arith.constant 0 : i32
    %c0_i32_0 = arith.constant 0 : i32
    %c0_i32_1 = arith.constant 0 : i32
    return %c0_i32, %c0_i32_0 : i32, i32
  }
  func.func @transform_15(%arg0: i32) -> (i32, i32) {
    %c0_i32 = arith.constant 0 : i32
    %c0_i32_0 = arith.constant 0 : i32
    %c0_i32_1 = arith.constant 0 : i32
    return %c0_i32, %c0_i32_0 : i32, i32
  }
  func.func @transform_16(%arg0: i32) -> (i32, i32) {
    %c0_i32 = arith.constant 0 : i32
    %c0_i32_0 = arith.constant 0 : i32
    %c0_i32_1 = arith.constant 0 : i32
    return %c0_i32, %c0_i32_0 : i32, i32
  }
  func.func @transform_17(%arg0: i32) -> (i32, i32) {
    %c0_i32 = arith.constant 0 : i32
    %c0_i32_0 = arith.constant 0 : i32
    %c0_i32_1 = arith.constant 0 : i32
    return %c0_i32, %c0_i32_0 : i32, i32
  }
  func.func @transform_18(%arg0: i32) -> (i32, i32) {
    %c0_i32 = arith.constant 0 : i32
    %c0_i32_0 = arith.constant 0 : i32
    %c0_i32_1 = arith.constant 0 : i32
    return %c0_i32, %c0_i32_0 : i32, i32
  }
  func.func @transform_19(%arg0: i32) -> (i32, i32) {
    %c0_i32 = arith.constant 0 : i32
    %c0_i32_0 = arith.constant 0 : i32
    %c0_i32_1 = arith.constant 0 : i32
    return %c0_i32, %c0_i32_0 : i32, i32
  }
  func.func @transform_20(%arg0: i32) -> (i32, i32) {
    %c0_i32 = arith.constant 0 : i32
    %c0_i32_0 = arith.constant 0 : i32
    %c0_i32_1 = arith.constant 0 : i32
    return %c0_i32, %c0_i32_0 : i32, i32
  }
  func.func @transform_21(%arg0: i32) -> (i32, i32) {
    %c0_i32 = arith.constant 0 : i32
    %c0_i32_0 = arith.constant 0 : i32
    %c0_i32_1 = arith.constant 0 : i32
    return %c0_i32, %c0_i32_0 : i32, i32
  }
  func.func @transform_22(%arg0: i32) -> (i32, i32) {
    %c0_i32 = arith.constant 0 : i32
    %c0_i32_0 = arith.constant 0 : i32
    %c0_i32_1 = arith.constant 0 : i32
    return %c0_i32, %c0_i32_0 : i32, i32
  }
  func.func @transform_23(%arg0: i32) -> (i32, i32) {
    %c0_i32 = arith.constant 0 : i32
    %c0_i32_0 = arith.constant 0 : i32
    %c0_i32_1 = arith.constant 0 : i32
    return %c0_i32, %c0_i32_0 : i32, i32
  }
  func.func @transform_24(%arg0: i32) -> (i32, i32) {
    %c0_i32 = arith.constant 0 : i32
    %c0_i32_0 = arith.constant 0 : i32
    %c0_i32_1 = arith.constant 0 : i32
    return %c0_i32, %c0_i32_0 : i32, i32
  }
  func.func @transform_25(%arg0: i32) -> (i32, i32) {
    %c0_i32 = arith.constant 0 : i32
    %c0_i32_0 = arith.constant 0 : i32
    %c0_i32_1 = arith.constant 0 : i32
    return %c0_i32, %c0_i32_0 : i32, i32
  }
  func.func @transform_26(%arg0: i32) -> (i32, i32) {
    %c0_i32 = arith.constant 0 : i32
    %c0_i32_0 = arith.constant 0 : i32
    %c0_i32_1 = arith.constant 0 : i32
    return %c0_i32, %c0_i32_0 : i32, i32
  }
  func.func @transform_27(%arg0: i32) -> (i32, i32) {
    %c0_i32 = arith.constant 0 : i32
    %c0_i32_0 = arith.constant 0 : i32
    %c0_i32_1 = arith.constant 0 : i32
    return %c0_i32, %c0_i32_0 : i32, i32
  }
  func.func @transform_28(%arg0: i32) -> (i32, i32) {
    %c0_i32 = arith.constant 0 : i32
    %c0_i32_0 = arith.constant 0 : i32
    %c0_i32_1 = arith.constant 0 : i32
    return %c0_i32, %c0_i32_0 : i32, i32
  }
  func.func @transform_29(%arg0: i32) -> (i32, i32) {
    %c0_i32 = arith.constant 0 : i32
    %c0_i32_0 = arith.constant 0 : i32
    %c0_i32_1 = arith.constant 0 : i32
    return %c0_i32, %c0_i32_0 : i32, i32
  }
  func.func @transform_30(%arg0: i32) -> (i32, i32, i32) {
    %c0_i32 = arith.constant 0 : i32
    %c0_i32_0 = arith.constant 0 : i32
    %c0_i32_1 = arith.constant 0 : i32
    return %arg0, %c0_i32, %c0_i32_0 : i32, i32, i32
  }
}

</mosaic_0001>

<bundles_post_ra>
// kernel: _lambda_.1
= control target key start
LH: loop header
LB: loop body
LE: loop exit
PB: predicated region body
PF: predicated region fallthrough
CT: control target
= control target key end

     0   :  { %s5169_s6 = smov 1   ;;  %s5170_s10 = smov 2   ;;  %s6684_s0 = inlined_call_operand.smem [shape: u32[31], index: -1, kind: input, shape index: {}] }
   0x1   :  { %s5220_s5 = sld [smem:[%s6684_s0]]   ;;  %s5171_s14 = smov 3  }
   0x2   :  { %s5225_s9 = sld [smem:[%s6684_s0 + %s5169_s6]]   ;;  %s5172_s18 = smov 4  }
   0x3   :  { %s5230_s13 = sld [smem:[%s6684_s0 + %s5170_s10]]   ;;  %s5173_s22 = smov 5  }
   0x4   :  { %s5235_s17 = sld [smem:[%s6684_s0 + %s5171_s14]]   ;;  %s5174_s26 = smov 6  }
   0x5   :  { %s5240_s21 = sld [smem:[%s6684_s0 + %s5172_s18]]   ;;  %s5175_s30 = smov 7  }
   0x6   :  { %s5245_s25 = sld [smem:[%s6684_s0 + %s5173_s22]]   ;;  %s5176_s4 = smov 8  }
   0x7   :  { %6725 = sst [smem:[#allocation5_spill]] %s5220_s5  ;;  %s5177_s10 = smov 9  }
   0x8   :  { %s5250_s29 = sld [smem:[%s6684_s0 + %s5174_s26]]   ;;  %s5178_s15 = smov 10  }
   0x9   :  { %s5255_s3 = sld [smem:[%s6684_s0 + %s5175_s30]]   ;;  %s5179_s20 = smov 11  }
   0xa   :  { %s5260_s8 = sld [smem:[%s6684_s0 + %s5176_s4]]   ;;  %s5180_s26 = smov 12  }
   0xb   :  { %s5265_s14 = sld [smem:[%s6684_s0 + %s5177_s10]]   ;;  %s5181_s1 = smov 13  }
   0xc   :  { %s5270_s19 = sld [smem:[%s6684_s0 + %s5178_s15]]   ;;  %s5182_s7 = smov 14  }
   0xd   :  { %s5275_s24 = sld [smem:[%s6684_s0 + %s5179_s20]]   ;;  %s5183_s15 = smov 15  }
   0xe   :  { %s5280_s30 = sld [smem:[%s6684_s0 + %s5180_s26]]   ;;  %s5184_s22 = smov 16  }
   0xf   :  { %6726 = sst [smem:[#allocation6_spill]] %s5255_s3  ;;  %s5185_s28 = smov 17  }
  0x10   :  { %s5285_s6 = sld [smem:[%s6684_s0 + %s5181_s1]]  }
  0x11   :  { %s5290_s12 = sld [smem:[%s6684_s0 + %s5182_s7]]   ;;  %s5186_s7 = smov 18  }
  0x12   :  { %s5295_s20 = sld [smem:[%s6684_s0 + %s5183_s15]]   ;;  %s5187_s15 = smov 19  }
  0x13   :  { %s5300_s27 = sld [smem:[%s6684_s0 + %s5184_s22]]   ;;  %s5188_s22 = smov 20  }
  0x14   :  { %s5305_s4 = sld [smem:[%s6684_s0 + %s5185_s28]]   ;;  %s5189_s28 = smov 21  }
  0x16   :  { %6727 = sst [smem:[#allocation7_spill]] %s5285_s6 }
  0x17   :  { %6728 = sst [smem:[#allocation8_spill]] %s5290_s12 }
  0x18   :  { %6729 = sst [smem:[#allocation9_spill]] %s5295_s20 }
  0x19   :  { %6730 = sst [smem:[#allocation10_spill]] %s5300_s27 }
  0x1a   :  { %6731 = sst [smem:[#allocation11_spill]] %s5305_s4 }
  0x1b   :  { %s5310_s12 = sld [smem:[%s6684_s0 + %s5186_s7]]   ;;  %s5190_s7 = smov 22  }
  0x1c   :  { %s5315_s20 = sld [smem:[%s6684_s0 + %s5187_s15]]   ;;  %s5191_s15 = smov 23  }
  0x1d   :  { %s5320_s27 = sld [smem:[%s6684_s0 + %s5188_s22]]   ;;  %s5192_s22 = smov 24  }
  0x1e   :  { %s5325_s4 = sld [smem:[%s6684_s0 + %s5189_s28]]   ;;  %s5193_s28 = smov 25  }
  0x21   :  { %6732 = sst [smem:[#allocation12_spill]] %s5310_s12 }
  0x22   :  { %6733 = sst [smem:[#allocation13_spill]] %s5315_s20 }
  0x23   :  { %6734 = sst [smem:[#allocation14_spill]] %s5320_s27 }
  0x24   :  { %6735 = sst [smem:[#allocation15_spill]] %s5325_s4 }
  0x25   :  { %s5330_s12 = sld [smem:[%s6684_s0 + %s5190_s7]]   ;;  %s5194_s7 = smov 26  }
  0x26   :  { %s5335_s20 = sld [smem:[%s6684_s0 + %s5191_s15]]   ;;  %s5195_s15 = smov 27  }
  0x27   :  { %s5340_s27 = sld [smem:[%s6684_s0 + %s5192_s22]]   ;;  %s5196_s22 = smov 28  }
  0x28   :  { %s5345_s4 = sld [smem:[%s6684_s0 + %s5193_s28]]   ;;  %s5197_s28 = smov 29  }
  0x2b   :  { %6736 = sst [smem:[#allocation16_spill]] %s5330_s12 }
  0x2c   :  { %6737 = sst [smem:[#allocation17_spill]] %s5335_s20 }
  0x2d   :  { %6738 = sst [smem:[#allocation18_spill]] %s5340_s27 }
  0x2e   :  { %6739 = sst [smem:[#allocation19_spill]] %s5345_s4 }
  0x2f   :  { %s5350_s12 = sld [smem:[%s6684_s0 + %s5194_s7]]   ;;  %s5198_s7 = smov 30  }
  0x30   :  { %s5355_s20 = sld [smem:[%s6684_s0 + %s5195_s15]]  }
  0x31   :  { %s5360_s27 = sld [smem:[%s6684_s0 + %s5196_s22]]  }
  0x32   :  { %s5365_s4 = sld [smem:[%s6684_s0 + %s5197_s28]]  }
  0x35   :  { %6740 = sst [smem:[#allocation20_spill]] %s5350_s12 }
  0x36   :  { %s5370_s12 = sld [smem:[%s6684_s0 + %s5198_s7]]  }
  0x37   :  { %66 = vsyncpa [#allocation3], 0  ;;  %s5372_s15 = smov 0  }
  0x38 LB: > { %s6741_s6 = sld [smem:[#allocation7_spill]]  ;;  %s6742_s3 = sld [smem:[#allocation6_spill]]  ;;  %s5167_s15 = sphi %s5372_s15, %s72_s15  }
  0x39   : > { %s5378_s16 = sadd.s32 4294967295, %s5167_s15   ;;  %p4187_p0 = scmp.ge.s32.totalorder %s5167_s15, 1 }
  0x3a   : > { %p738_p1 = scmp.lt.s32.totalorder %s5167_s15, 3  ;;  %s5199_s0 = smov [#allocation2]  }
  0x3b   : > { %s753_s18 = sshll.u32 %s5199_s0, 4  ;;  %p6699_p3 = scmp.eq.s32.totalorder %s5378_s16, 0  ;;  %s754_s18 = int_to_ptr.vmem [resolvable:$true] %s753_s18 }
  0x3c   : > { %p5382_p2 = pnand %p4187_p0, %p738_p1  ;;  %s5129_s26 = scalar_lea.hbm %s5230_s13, 256 }
  0x3d   : > { %p5130_p6 = scmp.ne.s32.totalorder %s5230_s13, %s5129_s26  ;;  %p5136_p10 = scmp.lt.u32.totalorder %s5129_s26, %s5230_s13 }
  0x3e   : > { %s6743_s22 = scalar_select %p5382_p2, 1, 0 }
  0x3f   : > { %p4670_p4 = pneg %p5382_p2 }
  0x41   : > { %p5391_p5 = pnand %p6699_p3, %p4670_p4 }
  0x43   : > { %p5131_p7 = pneg %p5391_p5 }
  0x45   : > { %p5132_p8 = pnand %p5131_p7, %p5130_p6 }
  0x47   : > { %p5133_p9 = pneg %p5132_p8 }
  0x49   : > { %p5138_p11 = pnand %p5136_p10, %p5133_p9 }
  0x4b   : > { %5141 = shalt.err (!%p5138_p11)
}
  0x4c   : > { %s5142_s28 = scalar_lea.vmem %s754_s18, 256  ;;  %p5150_p1 = scmp.lt.s32.totalorder %s754_s18, %s754_s18 }
  0x4d   : > { %p5143_p12 = scmp.ne.s32.totalorder %s754_s18, %s5142_s28  ;;  %p5151_p2 = scmp.lt.s32.totalorder %s5142_s28, %s5142_s28 }
  0x4f   : > { %p5145_p13 = pnand %p5143_p12, %p5131_p7  ;;  %p5152_p4 = por %p5151_p2, %p5150_p1 }
  0x51   : > { %p5146_p0 = pneg %p5145_p13 }
  0x53   : > { %p5153_p3 = pnand %p5152_p4, %p5146_p0 }
  0x55   : > { %5156 = shalt.err (!%p5153_p3)
}
  0x56   : > { %s5200_s1 = smov 128   ;;  %s5201_s2 = smov 8  }
  0x57   : > { %4673 = dma.hbm_to_vmem [thread:$0]  (!%p5391_p5), %s5230_s13, 256, %s754_s18, [#allocation3], %s5200_s1, %s5200_s1, %s5201_s2  }
  0x58   : > { %p6745_p6 = scmp.ne.s32.totalorder %s6743_s22, 0 }
  0x59   : > { %p6746_p8 = scmp.eq.s32.totalorder (!%p6745_p6), %s5378_s16, 0 }
  0x5a   : > { %858 = sbr.rel (%p6745_p6) target bundleno = 4473 (0x1179), region = 140 }
  0x61   : > { %5162 = dma.done.wait (%p6746_p8), [#allocation3], 256   ;;  %p6747_p7 = pmov %p6746_p8 }
  0x62   : > { %s6748_s5 = sld [smem:[#allocation5_spill]]  ;;  %p936_p2 = scmp.lt.s32.totalorder %s5378_s16, 1  ;;  %v5202_v0 = vmov 0.0   ;;  %v5203_v1 = vmov 0   ;;  %v954_v8 = vld [vmem:[%s5235_s17 + $0x8] sm:$0xff]  ;;  %v951_v9 = vld [vmem:[#allocation2] sm:$0xff] }
  0x63   : > { %5164 = vsyncadd (%p6747_p7), [#allocation3], 4294967040  ;;  %1036 = vmatprep.mubr.f32.mxu0 %v5202_v0  ;;  %4727 = vset.pattern.permute.xlu0 %v5203_v1  ;;  %vm965_vm0 = vcmask 130048   ;;  %v1079_v10 = vld [vmem:[%s5245_s25] sm:$0xff]  ;;  %v952_v11 = vld [vmem:[#allocation2 + $0x8] sm:$0xff]  ;;  %vm1091_vm1 = vcmask 64512  }
  0x64   : > { %s6775_s16 = smov (!%p936_p2, %s5378_s16), 1  ;;  %4728 = vset.pattern.permute.xlu1 %v5203_v1  ;;  %962 = vperm.xlu0 %4727, %v954_v8   ;;  %v1080_v12 = vld [vmem:[%s5245_s25 + $0x8] sm:$0xff]  ;;  %v1077_v30 = vld [vmem:[%s5240_s21] sm:$0xff]  ;;  %s6706_s11 = smov 17   ;;  %vm1221_vm2 = vcmask 138240   ;;  %vm1277_vm3 = vcmask 121856   ;;  %vm4208_vm4 = vmneg %vm965_vm0 }
  0x65   : > { %s4336_s7 = sshll.u32 %s6775_s16, 5  ;;  %1088 = vperm.xlu1 %4728, %v1080_v12   ;;  %v1078_v31 = vld [vmem:[%s5240_s21 + $0x8] sm:$0xff]  ;;  %s6717_s0 = smov 15   ;;  %vm1316_vm5 = vcmask 7168   ;;  %vm5535_vm6 = vmpackc.low %vm4208_vm4, %vm4208_vm4  ;;  %vm1337_vm7 = vcmask 1039360   ;;  %vm1358_vm8 = vcmask 924672  }
  0x66   : > { %s6710_s18 = smov 1   ;;  %s6708_s22 = smov 16   ;;  %vm1379_vm9 = vcmask 916480   ;;  %vm1396_vm10 = vcmask 908288   ;;  %vm3922_vm12 = vcmask 392192  }
  0x67   : > { %s6712_s23 = smov 127   ;;  %s6704_s26 = smov 113   ;;  %vm5579_vm11 = vmpackc.low %vm1379_vm9, %vm1379_vm9 }
  0x68   : > { %s940_s10 = scalar_lea.vmem %s6748_s5, %s4336_s7  ;;  %1083 = vperm.xlu0 %4727, %v1079_v10   ;;  %s6702_s28 = smov 112  }
  0x69   : > { %v948_v2 = vld [vmem:[%s940_s10 + $0x8] sm:$0xff]  ;;  %v950_v3 = vld [vmem:[%s940_s10 + $0x18] sm:$0xff]  ;;  %v947_v4 = vld [vmem:[%s940_s10] sm:$0xff]  ;;  %s6700_s1 = smov 111   ;;  %s6753_s2 = sld [smem:[#allocation8_spill]] }
  0x6a   : > { %v4338_v5 = vpack.c.bf16 %v950_v3, %v948_v2  ;;  %v949_v6 = vld [vmem:[%s940_s10 + $0x10] sm:$0xff]  ;;  %v1204_v3 = vld [vmem:[%s5250_s29 + $0x8] sm:$0xff]  ;;  %s6754_s7 = sld [smem:[#allocation9_spill]]  ;;  %s6755_s10 = sld [smem:[#allocation11_spill]] }
  0x6b   : > { %v4340_v7 = vpack.c.bf16 %v949_v6, %v947_v4  ;;  %4214 = vmatprep.mubr.msk.f32.mxu1 %vm965_vm0, %v1204_v3  ;;  %v1207_v4 = vld [vmem:[%s6742_s3] sm:$0xff]  ;;  %v1231_v6 = vlaneseq  ;;  %s6767_s5 = smov 15  }
  0x6c   : > { %4339 = vmatprep.subr.bf16.mxu0 %v4338_v5  ;;  %v1208_v5 = vld [vmem:[%s6742_s3 + $0x8] sm:$0xff]  ;;  %s6765_s3 = smov 127  }
  0x6d   : > { %4341 = vmatpush1.bf16.msra.mxu0 %v4340_v7 }
  0x70   : > { %4196 = vmatmul.mubr.msk.f32.vlgmr.msra.gmra.mrb[0].mxu0 %vm965_vm0, %v951_v9  ;;  %v1232_v9 = vshrl.u32 %v1231_v6, 7 }
  0x71   : > { %1042 = vmatprep.mubr.f32.mxu0 %v5202_v0 }
  0x72   : > { %v1237_v12 = vsub.s32 2, %v1232_v9 }
  0x74   : > { %4197 = vmatmul.mubr.msk.f32.gmra.mrb[2].mxu0 %vm965_vm0, %v952_v11 }
  0x75   : > { %1162 = vmatprep.mubr.f32.mxu0 %v5202_v0 }
  0xe3   : > { %v963_v15 = vpop.permute.xlu0 %962 }
  0xe4   : > { %v1089_v37 = vpop.permute.xlu1 %1088 }
  0xe7   : > { %v1084_v32 = vpop.permute.xlu0 %1083 }
 0x143   : > { %v5423_v13 = vpop.f32.mrb[0].mxu0 }
 0x144   : > { %v5425_v14 = vpop.f32.mrb[1].mxu0 }
 0x147   : > { %v1044_v16 = vpop.f32.mrb[2].mxu0 }
 0x148   : > { %v1045_v17 = vadd.f32 %v1044_v16, %v963_v15  ;;  %v1046_v18 = vpop.f32.mrb[3].mxu0  ;;  %v1233_v16 = vsub.s32 0, %v1232_v9 }
 0x149   : > { %v1047_v19 = vadd.f32 %v1046_v18, %v963_v15  ;;  %v946_v15 = vld [vmem:[%s5225_s9] sm:$0xf] }
 0x14a   : > { %v4200_v20 = vmul.f32 -1.442695, %v1045_v17 }
 0x14b   : > { %v4201_v21 = vmul.f32 -1.442695, %v1047_v19 }
 0x14c   : > { %4889 = vpow2.f32 %v4200_v20  ;;  %v1234_v20 = vrot.slane %v946_v15, %v1233_v16 }
 0x14d   : > { %4891 = vpow2.f32 %v4201_v21 }
 0x156   : > { %v4890_v22 = vpop.eup %4889 }
 0x157   : > { %v4892_v23 = vpop.eup %4891  ;;  %v1063_v24 = vadd.f32 1.0, %v4890_v22 }
 0x158   : > { %v1064_v25 = vadd.f32 1.0, %v4892_v23  ;;  %v1292_v23 = vsub.s32 3, %v1232_v9 }
 0x159   : > { %4893 = vrcp.f32 %v1063_v24 }
 0x15a   : > { %4895 = vrcp.f32 %v1064_v25 }
 0x163   : > { %v4894_v26 = vpop.eup %4893 }
 0x164   : > { %v4896_v27 = vpop.eup %4895  ;;  %v5429_v29 = vmul.f32 %v4894_v26, %v1045_v17  ;;  %v1288_v26 = vsub.s32 1, %v1232_v9 }
 0x165   : > { %v5427_v28 = vmul.f32 %v4896_v27, %v1047_v19  ;;  %v1238_v19 = vrot.slane %v946_v15, %v1237_v12  ;;  %v5516_v27 = vrot.slane %v1234_v20, %v1233_v16 }
 0x167   : > { %1098 = vmatprep.subr.mxu0 %v5427_v28  ;;  %v5513_v24 = vrot.slane %v1238_v19, %v1233_v16 }
 0x168   : > { %1099 = vmatpush1.msra.mxu0 %v5429_v29 }
 0x169   : > { %4202 = vmatmul.mubr.msk.f32.vlgmr.msra.gmra.mrb[4].mxu0 %vm1091_vm1, %v1077_v30 }
 0x16a   : > { %1168 = vmatprep.mubr.f32.mxu0 %v5202_v0 }
 0x16d   : > { %4203 = vmatmul.mubr.msk.f32.gmra.mrb[6].mxu0 %vm1091_vm1, %v1078_v31 }
 0x23c   : > { %v1164_v33 = vpop.f32.mrb[4].mxu0 }
 0x23d   : > { %v1165_v34 = vadd.f32 %v1164_v33, %v1084_v32  ;;  %v1166_v35 = vpop.f32.mrb[5].mxu0 }
 0x23e   : > { %v1167_v36 = vadd.f32 %v1166_v35, %v1084_v32 }
 0x23f   : > { %v4204_v38 = vmul.f32 -1.442695, %v1165_v34 }
 0x240   : > { %v4205_v39 = vmul.f32 -1.442695, %v1167_v36  ;;  %v1170_v40 = vpop.f32.mrb[6].mxu0 }
 0x241   : > { %4897 = vpow2.f32 %v4204_v38  ;;  %v1171_v41 = vadd.f32 %v1170_v40, %v1089_v37  ;;  %v1172_v42 = vpop.f32.mrb[7].mxu0 }
 0x242   : > { %4899 = vpow2.f32 %v4205_v39  ;;  %v1173_v43 = vadd.f32 %v1172_v42, %v1089_v37  ;;  %v1289_v39 = vrot.slane %v946_v15, %v1288_v26 }
 0x243   : > { %v4206_v44 = vmul.f32 -1.442695, %v1171_v41 }
 0x244   : > { %v4207_v45 = vmul.f32 -1.442695, %v1173_v43 }
 0x245   : > { %4901 = vpow2.f32 %v4206_v44 }
 0x246   : > { %4903 = vpow2.f32 %v4207_v45 }
 0x24b   : > { %v4898_v46 = vpop.eup %4897 }
 0x24c   : > { %v4900_v47 = vpop.eup %4899  ;;  %v1187_v48 = vadd.f32 1.0, %v4898_v46 }
 0x24d   : > { %v1188_v49 = vadd.f32 1.0, %v4900_v47 }
 0x24e   : > { %4905 = vrcp.f32 %v1187_v48 }
 0x24f   : > { %v4902_v50 = vpop.eup %4901  ;;  %4907 = vrcp.f32 %v1188_v49 }
 0x250   : > { %v4904_v51 = vpop.eup %4903  ;;  %v1189_v52 = vadd.f32 1.0, %v4902_v50  ;;  %v5528_v50 = vrot.slane %v1289_v39, %v1288_v26 }
 0x251   : > { %v1190_v53 = vadd.f32 1.0, %v4904_v51 }
 0x252   : > { %4909 = vrcp.f32 %v1189_v52 }
 0x253   : > { %4911 = vrcp.f32 %v1190_v53 }
 0x258   : > { %v4906_v54 = vpop.eup %4905 }
 0x259   : > { %v4908_v55 = vpop.eup %4907  ;;  %v5438_v56 = vmul.f32 %v4906_v54, %v1165_v34 }
 0x25a   : > { %v5440_v57 = vmul.f32 %v4908_v55, %v1167_v36  ;;  %v1293_v36 = vrot.slane %v946_v15, %v1292_v23 }
 0x25b   : > { %1213 = vrot.lane.b32.xlu1 %v5438_v56, %s6706_s11 }
 0x25c   : > { %v4910_v58 = vpop.eup %4909  ;;  %1215 = vrot.lane.b32.xlu0 %v5440_v57, %s6706_s11  ;;  %v4729_v59 = vpack.i.bf16 %v5440_v57, %v5438_v56  ;;  %v5526_v49 = vrot.slane %v1293_v36, %v1288_v26 }
 0x25d   : > { %v4912_v60 = vpop.eup %4911  ;;  %v5448_v61 = vmul.f32 %v4910_v58, %v1171_v41 }
 0x25e   : > { %v5450_v62 = vmul.f32 %v4912_v60, %v1173_v43 }
 0x25f   : > { %1269 = vrot.lane.b32.xlu1 %v5438_v56, %s6717_s0  ;;  %v4361_v63 = vpack.c.bf16 %v5448_v61, %v5438_v56 }
 0x260   : > { %1271 = vrot.lane.b32.xlu0 %v5440_v57, %s6717_s0  ;;  %v4734_v1 = vpack.i.bf16 %v5450_v62, %v5448_v61  ;;  %v4359_v2 = vpack.c.bf16 %v5450_v62, %v5440_v57 }
 0x263   : > { %1308 = vrot.lane.b32.xlu1 %v5438_v56, %s6710_s18 }
 0x264   : > { %1310 = vrot.lane.b32.xlu0 %v5440_v57, %s6710_s18 }
 0x267   : > { %4730 = vrot.lane.b32.xlu1 %v4729_v59, %s6708_s22 }
 0x268   : > { %1333 = vrot.lane.b32.xlu0 %v5448_v61, %s6712_s23 }
 0x26b   : > { %1217 = vrot.lane.b32.xlu1 %v5448_v61, %s6706_s11 }
 0x26c   : > { %1219 = vrot.lane.b32.xlu0 %v5450_v62, %s6706_s11 }
 0x26f   : > { %1331 = vrot.lane.b32.xlu1 %v5440_v57, %s6712_s23 }
 0x270   : > { %4735 = vrot.lane.b32.xlu0 %v4734_v1, %s6708_s22 }
 0x273   : > { %1273 = vrot.lane.b32.xlu1 %v5448_v61, %s6717_s0 }
 0x274   : > { %1275 = vrot.lane.b32.xlu0 %v5450_v62, %s6717_s0 }
 0x277   : > { %1312 = vrot.lane.b32.xlu1 %v5448_v61, %s6710_s18 }
 0x278   : > { %1314 = vrot.lane.b32.xlu0 %v5450_v62, %s6710_s18 }
 0x27b   : > { %1329 = vrot.lane.b32.xlu1 %v5438_v56, %s6712_s23 }
 0x27c   : > { %1354 = vrot.lane.b32.xlu0 %v5448_v61, %s6704_s26 }
 0x27f   : > { %1352 = vrot.lane.b32.xlu1 %v5440_v57, %s6704_s26 }
 0x280   : > { %1335 = vrot.lane.b32.xlu0 %v5450_v62, %s6712_s23 }
 0x283   : > { %1350 = vrot.lane.b32.xlu1 %v5438_v56, %s6704_s26 }
 0x284   : > { %1356 = vrot.lane.b32.xlu0 %v5450_v62, %s6704_s26 }
 0x287   : > { %4740 = vrot.lane.b32.xlu1 %v4729_v59, %s6702_s28 }
 0x288   : > { %4745 = vrot.lane.b32.xlu0 %v4734_v1, %s6702_s28 }
 0x28b   : > { %1390 = vrot.lane.b32.xlu1 %v5440_v57, %s6700_s1 }
 0x28c   : > { %1394 = vrot.lane.b32.xlu0 %v5450_v62, %s6700_s1 }
 0x28f   : > { %1388 = vrot.lane.b32.xlu1 %v5438_v56, %s6700_s1 }
 0x290   : > { %1392 = vrot.lane.b32.xlu0 %v5448_v61, %s6700_s1 }
 0x293   : > { %1411 = vperm.xlu1 %4728, %v1207_v4  }
 0x294   : > { %1416 = vperm.xlu0 %4727, %v1208_v5  }
 0x2cd   : > { %v1214_v7 = vpop.permute.xlu1 %1213 }
 0x2ce   : > { %v1216_v8 = vpop.permute.xlu0 %1215  ;;  %v1228_v31 = vsel %vm1221_vm2, 0.0, %v1214_v7 }
 0x2cf   : > { %v1222_v25 = vsel %vm1221_vm2, %v1214_v7, %v1216_v8  ;;  %v1249_v43 = vmul.f32 %v5516_v27, %v1228_v31 }
 0x2d0   : > { %v1250_v37 = vmul.f32 %v5513_v24, %v1222_v25 }
 0x2d1   : > { %v1270_v10 = vpop.permute.xlu1 %1269 }
 0x2d2   : > { %v1272_v11 = vpop.permute.xlu0 %1271  ;;  %v1284_v55 = vsel %vm1277_vm3, 0.0, %v1270_v10 }
 0x2d3   : > { %v1278_v51 = vsel %vm1277_vm3, %v1270_v10, %v1272_v11  ;;  %v1304_v8 = vmul.f32 %v5528_v50, %v1284_v55 }
 0x2d4   : > { %v1305_v6 = vmul.f32 %v5526_v49, %v1278_v51 }
 0x2d5   : > { %v1309_v17 = vpop.permute.xlu1 %1308 }
 0x2d6   : > { %v1311_v18 = vpop.permute.xlu0 %1310  ;;  %v1323_v11 = vsel %vm1316_vm5, 0.0, %v1309_v17 }
 0x2d7   : > { %v1317_v9 = vsel %vm1316_vm5, %v1309_v17, %v1311_v18  ;;  %v1325_v18 = vmul.f32 %v1323_v11, %v5516_v27 }
 0x2d8   : > { %v1326_v23 = vmul.f32 %v1317_v9, %v5513_v24 }
 0x2d9   : > { %v4731_v21 = vpop.permute.xlu1 %4730 }
 0x2da   : > { %v5511_v22 = vpop.permute.xlu0 %1333  ;;  %v4733_v40 = vunpack.i.h.bf16 %v4731_v21  ;;  %v4732_v41 = vunpack.i.l.bf16 %v4731_v21 }
 0x2dc   : > { %v1261_v53 = vsel %vm965_vm0, %v4732_v41, %v4733_v40 }
 0x2dd   : > { %v1218_v30 = vpop.permute.xlu1 %1217 }
 0x2de   : > { %v1229_v32 = vsel %vm1221_vm2, 0.0, %v1218_v30  ;;  %v1220_v33 = vpop.permute.xlu0 %1219 }
 0x2df   : > { %v1223_v34 = vsel %vm1221_vm2, %v1218_v30, %v1220_v33  ;;  %v1251_v35 = vmul.f32 %v5516_v27, %v1229_v32 }
 0x2e0   : > { %v1252_v38 = vmul.f32 %v5513_v24, %v1223_v34 }
 0x2e1   : > { %v1332_v42 = vpop.permute.xlu1 %1331  ;;  %v4344_v48 = vpack.c.bf16 %v1251_v35, %v1249_v43 }
 0x2e2   : > { %v4736_v44 = vpop.permute.xlu0 %4735  ;;  %v4342_v45 = vpack.c.bf16 %v1252_v38, %v1250_v37  ;;  %v1344_v32 = vsel %vm1337_vm7, %v1332_v42, 0.0 }
 0x2e3   : > { %v4738_v46 = vunpack.i.h.bf16 %v4736_v44  ;;  %v4737_v47 = vunpack.i.l.bf16 %v4736_v44  ;;  %v1347_v38 = vmul.f32 %v1344_v32, %v5526_v49 }
 0x2e4   : > { %4343 = vmatprep.subr.bf16.mxu1 %v4342_v45 }
 0x2e5   : > { %v1274_v52 = vpop.permute.xlu1 %1273  ;;  %4345 = vmatpush1.bf16.msra.mxu1 %v4344_v48  ;;  %v1262_v54 = vsel %vm965_vm0, %v4737_v47, %v4738_v46  ;;  %v4348_v3 = vpack.c.bf16 %v4737_v47, %v4732_v41 }
 0x2e6   : > { %v1285_v58 = vsel %vm1277_vm3, 0.0, %v1274_v52  ;;  %v1276_v59 = vpop.permute.xlu0 %1275  ;;  %v4346_v60 = vpack.c.bf16 %v1262_v54, %v1261_v53 }
 0x2e7   : > { %v1306_v4 = vmul.f32 %v5528_v50, %v1285_v58  ;;  %v1279_v5 = vsel %vm1277_vm3, %v1274_v52, %v1276_v59 }
 0x2e8   : > { %v1307_v7 = vmul.f32 %v5526_v49, %v1279_v5  ;;  %4347 = vmatprep.subr.bf16.mxu1 %v4346_v60 }
 0x2e9   : > { %v1313_v10 = vpop.permute.xlu1 %1312  ;;  %4350 = vmatpush1.bf16.msk.msra.mxu1 %vm5535_vm6, %v4348_v3  ;;  %v4353_v21 = vpack.c.bf16 %v1306_v4, %v1304_v8 }
 0x2ea   : > { %v1324_v12 = vsel %vm1316_vm5, 0.0, %v1313_v10  ;;  %v1315_v15 = vpop.permute.xlu0 %1314  ;;  %v4351_v16 = vpack.c.bf16 %v1307_v7, %v1305_v6 }
 0x2eb   : > { %v1327_v19 = vmul.f32 %v1324_v12, %v5516_v27  ;;  %v1318_v20 = vsel %vm1316_vm5, %v1313_v10, %v1315_v15 }
 0x2ec   : > { %v1328_v25 = vmul.f32 %v1318_v20, %v5513_v24  ;;  %4352 = vmatprep.subr.bf16.mxu1 %v4351_v16 }
 0x2ed   : > { %v1330_v26 = vpop.permute.xlu1 %1329  ;;  %4354 = vmatpush1.bf16.msra.mxu1 %v4353_v21  ;;  %v4357_v31 = vpack.c.bf16 %v1327_v19, %v1325_v18  ;;  %v1203_v18 = vld [vmem:[%s5250_s29] sm:$0xff] }
 0x2ee   : > { %v1355_v17 = vpop.permute.xlu0 %1354  ;;  %v4355_v30 = vpack.c.bf16 %v1328_v25, %v1326_v23  ;;  %v1338_v33 = vsel %vm1337_vm7, %v1330_v26, %v1332_v42  ;;  %v1206_v26 = vld [vmem:[%s5250_s29 + $0x18] sm:$0xff] }
 0x2ef   : > { %v1346_v39 = vmul.f32 %v1338_v33, %v5528_v50 }
 0x2f0   : > { %4356 = vmatprep.subr.bf16.mxu1 %v4355_v30 }
 0x2f1   : > { %v1353_v34 = vpop.permute.xlu1 %1352  ;;  %4358 = vmatpush1.bf16.msra.mxu1 %v4357_v31 }
 0x2f2   : > { %v1336_v35 = vpop.permute.xlu0 %1335  ;;  %4360 = vmatprep.subr.bf16.mxu1 %v4359_v2  ;;  %v1365_v42 = vsel %vm1358_vm8, %v1353_v34, 0.0 }
 0x2f3   : > { %v1339_v36 = vsel %vm1337_vm7, %v5511_v22, %v1336_v35  ;;  %v1345_v37 = vsel %vm1337_vm7, %v1336_v35, 0.0  ;;  %v1368_v47 = vmul.f32 %v1365_v42, %v5513_v24 }
 0x2f4   : > { %v1348_v40 = vmul.f32 %v1339_v36, %v5528_v50  ;;  %v1349_v41 = vmul.f32 %v1345_v37, %v5526_v49 }
 0x2f5   : > { %v1351_v43 = vpop.permute.xlu1 %1350  ;;  %4362 = vmatpush1.bf16.msra.mxu1 %v4361_v63 }
 0x2f6   : > { %v1359_v57 = vsel %vm1358_vm8, %v1351_v43, %v1353_v34  ;;  %v1357_v62 = vpop.permute.xlu0 %1356  ;;  %v4363_v2 = vpack.c.bf16 %v1349_v41, %v1347_v38  ;;  %v4365_v22 = vpack.c.bf16 %v1348_v40, %v1346_v39 }
 0x2f7   : > { %v1367_v44 = vmul.f32 %v1359_v57, %v5516_v27  ;;  %v1360_v45 = vsel %vm1358_vm8, %v1355_v17, %v1357_v62  ;;  %v1366_v46 = vsel %vm1358_vm8, %v1357_v62, 0.0  ;;  %v1205_v17 = vld [vmem:[%s5250_s29 + $0x10] sm:$0xff] }
 0x2f8   : > { %v1369_v48 = vmul.f32 %v1360_v45, %v5516_v27  ;;  %v1370_v51 = vmul.f32 %v1366_v46, %v5513_v24  ;;  %4364 = vmatprep.subr.bf16.mxu1 %v4363_v2 }
 0x2f9   : > { %v4741_v56 = vpop.permute.xlu1 %4740  ;;  %4366 = vmatpush1.bf16.msra.mxu1 %v4365_v22 }
 0x2fa   : > { %v4743_v61 = vunpack.i.h.bf16 %v4741_v56  ;;  %v4742_v63 = vunpack.i.l.bf16 %v4741_v56  ;;  %v4746_v52 = vpop.permute.xlu0 %4745  ;;  %v4367_v53 = vpack.c.bf16 %v1370_v51, %v1368_v47  ;;  %v4369_v54 = vpack.c.bf16 %v1369_v48, %v1367_v44 }
 0x2fb   : > { %v4748_v55 = vunpack.i.h.bf16 %v4746_v52  ;;  %v4747_v58 = vunpack.i.l.bf16 %v4746_v52 }
 0x2fc   : > { %4368 = vmatprep.subr.bf16.mxu1 %v4367_v53  ;;  %v1380_v60 = vsel %vm1379_vm9, %v4742_v63, %v4743_v61 }
 0x2fd   : > { %v4371_v3 = vpack.c.bf16 %v4748_v55, %v4743_v61  ;;  %v1391_v4 = vpop.permute.xlu1 %1390  ;;  %4370 = vmatpush1.bf16.msra.mxu1 %v4369_v54  ;;  %v1381_v5 = vsel %vm1379_vm9, %v4747_v58, %v4748_v55 }
 0x2fe   : > { %v1403_v6 = vsel %vm1396_vm10, %v1391_v4, 0.0  ;;  %v1395_v7 = vpop.permute.xlu0 %1394  ;;  %v4374_v8 = vpack.c.bf16 %v1381_v5, %v1380_v60  ;;  %v1534_v5 = vld [vmem:[%s5265_s14] sm:$0xff] }
 0x2ff   : > { %v1406_v9 = vmul.f32 %v1403_v6, %v5526_v49  ;;  %v1404_v10 = vsel %vm1396_vm10, %v1395_v7, 0.0  ;;  %4373 = vmatprep.subr.msk.bf16.mxu1 %vm5579_vm11, %v4371_v3  ;;  %v1535_v6 = vld [vmem:[%s5265_s14 + $0x8] sm:$0xff] }
 0x300   : > { %v1408_v11 = vmul.f32 %v1404_v10, %v5526_v49 }
 0x301   : > { %v1389_v12 = vpop.permute.xlu1 %1388  ;;  %4375 = vmatpush1.bf16.msra.mxu1 %v4374_v8 }
 0x302   : > { %v1397_v15 = vsel %vm1396_vm10, %v1389_v12, %v1391_v4  ;;  %v1393_v16 = vpop.permute.xlu0 %1392  ;;  %v4376_v19 = vpack.c.bf16 %v1408_v11, %v1406_v9  ;;  %v1531_v4 = vld [vmem:[%s5260_s8 + $0x8] sm:$0xff] }
 0x303   : > { %v1405_v20 = vmul.f32 %v1397_v15, %v5528_v50  ;;  %v1398_v21 = vsel %vm1396_vm10, %v1393_v16, %v1395_v7  ;;  %4226 = vmatprep.mubr.msk.f32.mxu0 %vm965_vm0, %v1531_v4 }
 0x304   : > { %v1407_v23 = vmul.f32 %v1398_v21, %v5528_v50  ;;  %4377 = vmatprep.subr.bf16.mxu1 %v4376_v19 }
 0x306   : > { %v4378_v25 = vpack.c.bf16 %v1407_v23, %v1405_v20 }
 0x308   : > { %4379 = vmatpush1.bf16.msra.mxu1 %v4378_v25 }
 0x30b   : > { %1490 = vmatmul.mubr.f32.vlgmr.msra.gmra.mrb[0].mxu1 %v1203_v18 }
 0x30c   : > { %4215 = vmatprep.mubr.msk.f32.mxu1 %vm965_vm0, %v1206_v26 }
 0x30f   : > { %1496 = vmatmul.mubr.f32.gmra.mrb[2].mxu1 %v1205_v17 }
 0x312   : > { %v1412_v30 = vpop.permute.xlu1 %1411 }
 0x313   : > { %v1417_v36 = vpop.permute.xlu0 %1416 }
 0x3de   : > { %v1491_v31 = vpop.f32.mrb[0].mxu1 }
 0x3df   : > { %v1492_v32 = vadd.f32 %v1491_v31, %v1412_v30  ;;  %v1493_v33 = vpop.f32.mrb[1].mxu1 }
 0x3e0   : > { %v1494_v34 = vadd.f32 %v1493_v33, %v1412_v30 }
 0x3e1   : > { %v4216_v35 = vmul.f32 -1.442695, %v1492_v32 }
 0x3e2   : > { %v4217_v37 = vmul.f32 -1.442695, %v1494_v34  ;;  %v1497_v38 = vpop.f32.mrb[2].mxu1 }
 0x3e3   : > { %4913 = vpow2.f32 %v4216_v35  ;;  %v1498_v39 = vadd.f32 %v1497_v38, %v1417_v36  ;;  %v1499_v40 = vpop.f32.mrb[3].mxu1 }
 0x3e4   : > { %4915 = vpow2.f32 %v4217_v37  ;;  %v1500_v41 = vadd.f32 %v1499_v40, %v1417_v36 }
 0x3e5   : > { %v4218_v42 = vmul.f32 -1.442695, %v1498_v39 }
 0x3e6   : > { %v4219_v43 = vmul.f32 -1.442695, %v1500_v41 }
 0x3e7   : > { %4917 = vpow2.f32 %v4218_v42 }
 0x3e8   : > { %4919 = vpow2.f32 %v4219_v43 }
 0x3ed   : > { %v4914_v57 = vpop.eup %4913 }
 0x3ee   : > { %v4916_v62 = vpop.eup %4915  ;;  %v1514_v2 = vadd.f32 1.0, %v4914_v57 }
 0x3ef   : > { %v1515_v22 = vadd.f32 1.0, %v4916_v62 }
 0x3f0   : > { %4921 = vrcp.f32 %v1514_v2 }
 0x3f1   : > { %v4918_v44 = vpop.eup %4917  ;;  %4923 = vrcp.f32 %v1515_v22 }
 0x3f2   : > { %v4920_v45 = vpop.eup %4919  ;;  %v1516_v46 = vadd.f32 1.0, %v4918_v44 }
 0x3f3   : > { %v1517_v47 = vadd.f32 1.0, %v4920_v45 }
 0x3f4   : > { %4925 = vrcp.f32 %v1516_v46 }
 0x3f5   : > { %4927 = vrcp.f32 %v1517_v47 }
 0x3fa   : > { %v4922_v48 = vpop.eup %4921 }
 0x3fb   : > { %v4924_v51 = vpop.eup %4923  ;;  %v5599_v56 = vmul.f32 %v4922_v48, %v1492_v32 }
 0x3fc   : > { %v5601_v61 = vmul.f32 %v4924_v51, %v1494_v34 }
 0x3fd   : > { %1540 = vrot.lane.b32.xlu1 %v5599_v56, %s6706_s11 }
 0x3fe   : > { %v4926_v63 = vpop.eup %4925  ;;  %1542 = vrot.lane.b32.xlu0 %v5601_v61, %s6706_s11  ;;  %v4749_v52 = vpack.i.bf16 %v5601_v61, %v5599_v56 }
 0x3ff   : > { %v4928_v53 = vpop.eup %4927  ;;  %v5609_v54 = vmul.f32 %v4926_v63, %v1498_v39 }
 0x400   : > { %v5611_v55 = vmul.f32 %v4928_v53, %v1500_v41 }
 0x401   : > { %1576 = vrot.lane.b32.xlu1 %v5599_v56, %s6717_s0  ;;  %v4399_v58 = vpack.c.bf16 %v5609_v54, %v5599_v56 }
 0x402   : > { %1578 = vrot.lane.b32.xlu0 %v5601_v61, %s6717_s0  ;;  %v4754_v60 = vpack.i.bf16 %v5611_v55, %v5609_v54  ;;  %v4397_v3 = vpack.c.bf16 %v5611_v55, %v5601_v61 }
 0x405   : > { %1596 = vrot.lane.b32.xlu1 %v5599_v56, %s6710_s18 }
 0x406   : > { %1598 = vrot.lane.b32.xlu0 %v5601_v61, %s6710_s18 }
 0x409   : > { %4750 = vrot.lane.b32.xlu1 %v4749_v52, %s6708_s22 }
 0x40a   : > { %1620 = vrot.lane.b32.xlu0 %v5609_v54, %s6712_s23 }
 0x40d   : > { %1544 = vrot.lane.b32.xlu1 %v5609_v54, %s6706_s11 }
 0x40e   : > { %1546 = vrot.lane.b32.xlu0 %v5611_v55, %s6706_s11 }
 0x411   : > { %1618 = vrot.lane.b32.xlu1 %v5601_v61, %s6712_s23 }
 0x412   : > { %4755 = vrot.lane.b32.xlu0 %v4754_v60, %s6708_s22 }
 0x415   : > { %1580 = vrot.lane.b32.xlu1 %v5609_v54, %s6717_s0 }
 0x416   : > { %1582 = vrot.lane.b32.xlu0 %v5611_v55, %s6717_s0 }
 0x419   : > { %1600 = vrot.lane.b32.xlu1 %v5609_v54, %s6710_s18 }
 0x41a   : > { %1602 = vrot.lane.b32.xlu0 %v5611_v55, %s6710_s18 }
 0x41d   : > { %1616 = vrot.lane.b32.xlu1 %v5599_v56, %s6712_s23 }
 0x41e   : > { %1640 = vrot.lane.b32.xlu0 %v5609_v54, %s6704_s26 }
 0x421   : > { %1638 = vrot.lane.b32.xlu1 %v5601_v61, %s6704_s26 }
 0x422   : > { %1622 = vrot.lane.b32.xlu0 %v5611_v55, %s6712_s23 }
 0x425   : > { %1636 = vrot.lane.b32.xlu1 %v5599_v56, %s6704_s26 }
 0x426   : > { %1642 = vrot.lane.b32.xlu0 %v5611_v55, %s6704_s26 }
 0x429   : > { %4760 = vrot.lane.b32.xlu1 %v4749_v52, %s6702_s28 }
 0x42a   : > { %4765 = vrot.lane.b32.xlu0 %v4754_v60, %s6702_s28 }
 0x42d   : > { %1674 = vrot.lane.b32.xlu1 %v5601_v61, %s6700_s1 }
 0x42e   : > { %1678 = vrot.lane.b32.xlu0 %v5611_v55, %s6700_s1 }
 0x431   : > { %1672 = vrot.lane.b32.xlu1 %v5599_v56, %s6700_s1 }
 0x432   : > { %1676 = vrot.lane.b32.xlu0 %v5609_v54, %s6700_s1 }
 0x435   : > { %1694 = vperm.xlu1 %4728, %v1534_v5  }
 0x436   : > { %1699 = vperm.xlu0 %4727, %v1535_v6  }
 0x46f   : > { %v1541_v7 = vpop.permute.xlu1 %1540 }
 0x470   : > { %v1543_v8 = vpop.permute.xlu0 %1542  ;;  %v1554_v21 = vsel %vm1221_vm2, 0.0, %v1541_v7 }
 0x471   : > { %v1548_v19 = vsel %vm1221_vm2, %v1541_v7, %v1543_v8  ;;  %v1556_v31 = vmul.f32 %v1554_v21, %v5516_v27 }
 0x472   : > { %v1557_v17 = vmul.f32 %v1548_v19, %v5513_v24 }
 0x473   : > { %v1577_v9 = vpop.permute.xlu1 %1576 }
 0x474   : > { %v1579_v10 = vpop.permute.xlu0 %1578  ;;  %v1590_v57 = vsel %vm1277_vm3, 0.0, %v1577_v9 }
 0x475   : > { %v1584_v40 = vsel %vm1277_vm3, %v1577_v9, %v1579_v10  ;;  %v1592_v51 = vmul.f32 %v1590_v57, %v5528_v50 }
 0x476   : > { %v1593_v47 = vmul.f32 %v1584_v40, %v5526_v49 }
 0x477   : > { %v1597_v11 = vpop.permute.xlu1 %1596 }
 0x478   : > { %v1599_v12 = vpop.permute.xlu0 %1598  ;;  %v1610_v53 = vsel %vm1316_vm5, 0.0, %v1597_v11 }
 0x479   : > { %v1604_v63 = vsel %vm1316_vm5, %v1597_v11, %v1599_v12  ;;  %v1612_v12 = vmul.f32 %v1610_v53, %v5516_v27 }
 0x47a   : > { %v1613_v9 = vmul.f32 %v1604_v63, %v5513_v24 }
 0x47b   : > { %v4751_v15 = vpop.permute.xlu1 %4750 }
 0x47c   : > { %v5671_v16 = vpop.permute.xlu0 %1620  ;;  %v4753_v32 = vunpack.i.h.bf16 %v4751_v15  ;;  %v4752_v33 = vunpack.i.l.bf16 %v4751_v15 }
 0x47e   : > { %v1568_v42 = vsel %vm965_vm0, %v4752_v33, %v4753_v32 }
 0x47f   : > { %v1545_v20 = vpop.permute.xlu1 %1544 }
 0x480   : > { %v1555_v23 = vsel %vm1221_vm2, 0.0, %v1545_v20  ;;  %v1547_v25 = vpop.permute.xlu0 %1546 }
 0x481   : > { %v1558_v18 = vmul.f32 %v1555_v23, %v5516_v27  ;;  %v1549_v26 = vsel %vm1221_vm2, %v1545_v20, %v1547_v25 }
 0x482   : > { %v1559_v30 = vmul.f32 %v1549_v26, %v5513_v24 }
 0x483   : > { %v1619_v34 = vpop.permute.xlu1 %1618  ;;  %v4382_v37 = vpack.c.bf16 %v1558_v18, %v1556_v31 }
 0x484   : > { %v4756_v35 = vpop.permute.xlu0 %4755  ;;  %v4380_v36 = vpack.c.bf16 %v1559_v30, %v1557_v17  ;;  %v1630_v21 = vsel %vm1337_vm7, %v1619_v34, 0.0 }
 0x485   : > { %v4758_v38 = vunpack.i.h.bf16 %v4756_v35  ;;  %v4757_v39 = vunpack.i.l.bf16 %v4756_v35  ;;  %v1633_v30 = vmul.f32 %v1630_v21, %v5526_v49 }
 0x486   : > { %4381 = vmatprep.subr.bf16.mxu0 %v4380_v36 }
 0x487   : > { %4383 = vmatpush1.bf16.msra.mxu0 %v4382_v37  ;;  %v1581_v41 = vpop.permute.xlu1 %1580  ;;  %v1569_v43 = vsel %vm965_vm0, %v4757_v39, %v4758_v38  ;;  %v4386_v44 = vpack.c.bf16 %v4757_v39, %v4752_v33 }
 0x488   : > { %v1591_v62 = vsel %vm1277_vm3, 0.0, %v1581_v41  ;;  %v1583_v2 = vpop.permute.xlu0 %1582  ;;  %v4384_v22 = vpack.c.bf16 %v1569_v43, %v1568_v42 }
 0x489   : > { %v1594_v45 = vmul.f32 %v1591_v62, %v5528_v50  ;;  %v1585_v46 = vsel %vm1277_vm3, %v1581_v41, %v1583_v2 }
 0x48a   : > { %v1595_v48 = vmul.f32 %v1585_v46, %v5526_v49  ;;  %4385 = vmatprep.subr.bf16.mxu0 %v4384_v22 }
 0x48b   : > { %v1601_v52 = vpop.permute.xlu1 %1600  ;;  %4388 = vmatpush1.bf16.msk.msra.mxu0 %vm5535_vm6, %v4386_v44  ;;  %v4391_v6 = vpack.c.bf16 %v1594_v45, %v1592_v51 }
 0x48c   : > { %v1611_v60 = vsel %vm1316_vm5, 0.0, %v1601_v52  ;;  %v1603_v4 = vpop.permute.xlu0 %1602  ;;  %v4389_v5 = vpack.c.bf16 %v1595_v48, %v1593_v47 }
 0x48d   : > { %v1614_v7 = vmul.f32 %v1611_v60, %v5516_v27  ;;  %v1605_v8 = vsel %vm1316_vm5, %v1601_v52, %v1603_v4 }
 0x48e   : > { %v1615_v10 = vmul.f32 %v1605_v8, %v5513_v24  ;;  %4390 = vmatprep.subr.bf16.mxu0 %v4389_v5 }
 0x48f   : > { %v1617_v15 = vpop.permute.xlu1 %1616  ;;  %4392 = vmatpush1.bf16.msra.mxu0 %v4391_v6  ;;  %v4395_v20 = vpack.c.bf16 %v1614_v7, %v1612_v12  ;;  %v1530_v12 = vld [vmem:[%s5260_s8] sm:$0xff] }
 0x490   : > { %v1641_v19 = vpop.permute.xlu0 %1640  ;;  %v4393_v11 = vpack.c.bf16 %v1615_v10, %v1613_v9  ;;  %v1624_v23 = vsel %vm1337_vm7, %v1617_v15, %v1619_v34  ;;  %v1533_v15 = vld [vmem:[%s5260_s8 + $0x18] sm:$0xff] }
 0x491   : > { %v1632_v31 = vmul.f32 %v1624_v23, %v5528_v50 }
 0x492   : > { %4394 = vmatprep.subr.bf16.mxu0 %v4393_v11  ;;  %v2096_v11 = vld [vmem:[%s5280_s30] sm:$0xff] }
 0x493   : > { %v1639_v25 = vpop.permute.xlu1 %1638  ;;  %4396 = vmatpush1.bf16.msra.mxu0 %v4395_v20  ;;  %v2097_v20 = vld [vmem:[%s5280_s30 + $0x8] sm:$0xff] }
 0x494   : > { %v1623_v18 = vpop.permute.xlu0 %1622  ;;  %4398 = vmatprep.subr.bf16.mxu0 %v4397_v3  ;;  %v1650_v34 = vsel %vm1358_vm8, %v1639_v25, 0.0 }
 0x495   : > { %v1625_v26 = vsel %vm1337_vm7, %v5671_v16, %v1623_v18  ;;  %v1631_v17 = vsel %vm1337_vm7, %v1623_v18, 0.0  ;;  %v1653_v39 = vmul.f32 %v1650_v34, %v5513_v24 }
 0x496   : > { %v1634_v32 = vmul.f32 %v1625_v26, %v5528_v50  ;;  %v1635_v33 = vmul.f32 %v1631_v17, %v5526_v49 }
 0x497   : > { %v1637_v35 = vpop.permute.xlu1 %1636  ;;  %4400 = vmatpush1.bf16.msra.mxu0 %v4399_v58 }
 0x498   : > { %v4403_v61 = vpack.c.bf16 %v1634_v32, %v1632_v31  ;;  %v1644_v55 = vsel %vm1358_vm8, %v1637_v35, %v1639_v25  ;;  %v1643_v3 = vpop.permute.xlu0 %1642  ;;  %v4401_v16 = vpack.c.bf16 %v1635_v33, %v1633_v30 }
 0x499   : > { %v1652_v36 = vmul.f32 %v1644_v55, %v5516_v27  ;;  %v1645_v37 = vsel %vm1358_vm8, %v1641_v19, %v1643_v3  ;;  %v1651_v38 = vsel %vm1358_vm8, %v1643_v3, 0.0  ;;  %v1532_v19 = vld [vmem:[%s5260_s8 + $0x10] sm:$0xff] }
 0x49a   : > { %v1654_v40 = vmul.f32 %v1645_v37, %v5516_v27  ;;  %v1655_v41 = vmul.f32 %v1651_v38, %v5513_v24  ;;  %4402 = vmatprep.subr.bf16.mxu0 %v4401_v16 }
 0x49b   : > { %v4761_v56 = vpop.permute.xlu1 %4760  ;;  %4404 = vmatpush1.bf16.msra.mxu0 %v4403_v61 }
 0x49c   : > { %v4407_v54 = vpack.c.bf16 %v1654_v40, %v1652_v36  ;;  %v4763_v58 = vunpack.i.h.bf16 %v4761_v56  ;;  %v4762_v42 = vunpack.i.l.bf16 %v4761_v56  ;;  %v4766_v43 = vpop.permute.xlu0 %4765  ;;  %v4405_v57 = vpack.c.bf16 %v1655_v41, %v1653_v39 }
 0x49d   : > { %v4768_v62 = vunpack.i.h.bf16 %v4766_v43  ;;  %v4767_v2 = vunpack.i.l.bf16 %v4766_v43 }
 0x49e   : > { %v1664_v22 = vsel %vm1379_vm9, %v4762_v42, %v4763_v58  ;;  %4406 = vmatprep.subr.bf16.mxu0 %v4405_v57 }
 0x49f   : > { %v1665_v44 = vsel %vm1379_vm9, %v4767_v2, %v4768_v62  ;;  %v4409_v45 = vpack.c.bf16 %v4768_v62, %v4763_v58  ;;  %v1675_v46 = vpop.permute.xlu1 %1674  ;;  %4408 = vmatpush1.bf16.msra.mxu0 %v4407_v54 }
 0x4a0   : > { %v1686_v47 = vsel %vm1396_vm10, %v1675_v46, 0.0  ;;  %v1679_v48 = vpop.permute.xlu0 %1678  ;;  %v4412_v51 = vpack.c.bf16 %v1665_v44, %v1664_v22 }
 0x4a1   : > { %v1689_v63 = vmul.f32 %v1686_v47, %v5526_v49  ;;  %v1687_v52 = vsel %vm1396_vm10, %v1679_v48, 0.0  ;;  %4411 = vmatprep.subr.msk.bf16.mxu0 %vm5579_vm11, %v4409_v45  ;;  %v1814_v47 = vld [vmem:[%s5270_s19 + $0x8] sm:$0xff] }
 0x4a2   : > { %v1691_v53 = vmul.f32 %v1687_v52, %v5526_v49  ;;  %4238 = vmatprep.mubr.msk.f32.mxu1 %vm965_vm0, %v1814_v47  ;;  %v2098_v52 = vld [vmem:[%s6741_s6] sm:$0xff] }
 0x4a3   : > { %v1673_v60 = vpop.permute.xlu1 %1672  ;;  %4413 = vmatpush1.bf16.msra.mxu0 %v4412_v51  ;;  %v1818_v51 = vld [vmem:[%s5275_s24 + $0x8] sm:$0xff] }
 0x4a4   : > { %v1680_v4 = vsel %vm1396_vm10, %v1673_v60, %v1675_v46  ;;  %v1677_v5 = vpop.permute.xlu0 %1676  ;;  %v4414_v6 = vpack.c.bf16 %v1691_v53, %v1689_v63  ;;  %v2099_v60 = vld [vmem:[%s6741_s6 + $0x8] sm:$0xff]  ;;  %s6768_s6 = sld [smem:[#allocation15_spill]] }
 0x4a5   : > { %v1688_v7 = vmul.f32 %v1680_v4, %v5528_v50  ;;  %v1681_v8 = vsel %vm1396_vm10, %v1677_v5, %v1679_v48  ;;  %v1817_v48 = vld [vmem:[%s5275_s24] sm:$0xff] }
 0x4a6   : > { %v1690_v9 = vmul.f32 %v1681_v8, %v5528_v50  ;;  %4415 = vmatprep.subr.bf16.mxu0 %v4414_v6 }
 0x4a8   : > { %v4416_v10 = vpack.c.bf16 %v1690_v9, %v1688_v7 }
 0x4aa   : > { %4417 = vmatpush1.bf16.msra.mxu0 %v4416_v10 }
 0x4ab   : > { %2116 = vmatprep.subr.mxu0 %v5427_v28 }
 0x4ad   : > { %1773 = vmatmul.mubr.f32.vlgmr.msra.gmra.mrb[8].mxu0 %v1530_v12 }
 0x4ae   : > { %2117 = vmatpush1.msra.mxu0 %v5429_v29  ;;  %4227 = vmatprep.mubr.msk.f32.mxu0 %vm965_vm0, %v1533_v15 }
 0x4b1   : > { %1779 = vmatmul.mubr.f32.gmra.mrb[10].mxu0 %v1532_v19 }
 0x4b2   : > { %2180 = vmatprep.mubr.f32.mxu0 %v5202_v0 }
 0x4b4   : > { %v1695_v21 = vpop.permute.xlu1 %1694 }
 0x4b5   : > { %4244 = vmatmul.mubr.msk.f32.vlgmr.msra.gmra.mrb[12].mxu0 %vm1091_vm1, %v2096_v11  ;;  %v1700_v30 = vpop.permute.xlu0 %1699 }
 0x4b6   : > { %2186 = vmatprep.mubr.f32.mxu0 %v5202_v0 }
 0x4b9   : > { %4245 = vmatmul.mubr.msk.f32.gmra.mrb[14].mxu0 %vm1091_vm1, %v2097_v20 }
 0x580   : > { %v1774_v23 = vpop.f32.mrb[8].mxu0 }
 0x581   : > { %v1775_v25 = vadd.f32 %v1774_v23, %v1695_v21  ;;  %v1776_v18 = vpop.f32.mrb[9].mxu0 }
 0x582   : > { %v1777_v26 = vadd.f32 %v1776_v18, %v1695_v21 }
 0x583   : > { %v4228_v17 = vmul.f32 -1.442695, %v1775_v25 }
 0x584   : > { %v4229_v31 = vmul.f32 -1.442695, %v1777_v26  ;;  %v1780_v32 = vpop.f32.mrb[10].mxu0 }
 0x585   : > { %4929 = vpow2.f32 %v4228_v17  ;;  %v1781_v33 = vadd.f32 %v1780_v32, %v1700_v30  ;;  %v1782_v34 = vpop.f32.mrb[11].mxu0 }
 0x586   : > { %4931 = vpow2.f32 %v4229_v31  ;;  %v1783_v35 = vadd.f32 %v1782_v34, %v1700_v30 }
 0x587   : > { %v4230_v61 = vmul.f32 -1.442695, %v1781_v33 }
 0x588   : > { %v4231_v55 = vmul.f32 -1.442695, %v1783_v35  ;;  %v5820_v63 = vpop.f32.mrb[12].mxu0 }
 0x589   : > { %4933 = vpow2.f32 %v4230_v61  ;;  %v5823_v53 = vpop.f32.mrb[13].mxu0 }
 0x58a   : > { %4935 = vpow2.f32 %v4231_v55 }
 0x58c   : > { %v5826_v4 = vpop.f32.mrb[14].mxu0 }
 0x58d   : > { %v5828_v5 = vpop.f32.mrb[15].mxu0 }
 0x58f   : > { %v4930_v3 = vpop.eup %4929 }
 0x590   : > { %v4932_v16 = vpop.eup %4931  ;;  %v1797_v36 = vadd.f32 1.0, %v4930_v3 }
 0x591   : > { %v1798_v37 = vadd.f32 1.0, %v4932_v16 }
 0x592   : > { %4937 = vrcp.f32 %v1797_v36 }
 0x593   : > { %v4934_v38 = vpop.eup %4933  ;;  %4939 = vrcp.f32 %v1798_v37 }
 0x594   : > { %v4936_v39 = vpop.eup %4935  ;;  %v1799_v40 = vadd.f32 1.0, %v4934_v38 }
 0x595   : > { %v1800_v41 = vadd.f32 1.0, %v4936_v39 }
 0x596   : > { %4941 = vrcp.f32 %v1799_v40 }
 0x597   : > { %4943 = vrcp.f32 %v1800_v41 }
 0x59c   : > { %v4938_v56 = vpop.eup %4937 }
 0x59d   : > { %v4940_v54 = vpop.eup %4939  ;;  %v5748_v58 = vmul.f32 %v4938_v56, %v1775_v25 }
 0x59e   : > { %v5750_v42 = vmul.f32 %v4940_v54, %v1777_v26 }
 0x59f   : > { %1823 = vrot.lane.b32.xlu1 %v5748_v58, %s6706_s11 }
 0x5a0   : > { %v4942_v43 = vpop.eup %4941  ;;  %1825 = vrot.lane.b32.xlu0 %v5750_v42, %s6706_s11  ;;  %v4769_v57 = vpack.i.bf16 %v5750_v42, %v5748_v58 }
 0x5a1   : > { %v4944_v62 = vpop.eup %4943  ;;  %v5758_v2 = vmul.f32 %v4942_v43, %v1781_v33 }
 0x5a2   : > { %v5760_v22 = vmul.f32 %v4944_v62, %v1783_v35 }
 0x5a3   : > { %1859 = vrot.lane.b32.xlu1 %v5748_v58, %s6717_s0  ;;  %v4437_v44 = vpack.c.bf16 %v5758_v2, %v5748_v58 }
 0x5a4   : > { %1861 = vrot.lane.b32.xlu0 %v5750_v42, %s6717_s0  ;;  %v4774_v45 = vpack.i.bf16 %v5760_v22, %v5758_v2  ;;  %v4435_v46 = vpack.c.bf16 %v5760_v22, %v5750_v42 }
 0x5a7   : > { %1879 = vrot.lane.b32.xlu1 %v5748_v58, %s6710_s18 }
 0x5a8   : > { %1881 = vrot.lane.b32.xlu0 %v5750_v42, %s6710_s18 }
 0x5ab   : > { %4770 = vrot.lane.b32.xlu1 %v4769_v57, %s6708_s22 }
 0x5ac   : > { %1903 = vrot.lane.b32.xlu0 %v5758_v2, %s6712_s23 }
 0x5af   : > { %1827 = vrot.lane.b32.xlu1 %v5758_v2, %s6706_s11 }
 0x5b0   : > { %1829 = vrot.lane.b32.xlu0 %v5760_v22, %s6706_s11 }
 0x5b3   : > { %1901 = vrot.lane.b32.xlu1 %v5750_v42, %s6712_s23 }
 0x5b4   : > { %4775 = vrot.lane.b32.xlu0 %v4774_v45, %s6708_s22 }
 0x5b7   : > { %1863 = vrot.lane.b32.xlu1 %v5758_v2, %s6717_s0 }
 0x5b8   : > { %1865 = vrot.lane.b32.xlu0 %v5760_v22, %s6717_s0 }
 0x5bb   : > { %1883 = vrot.lane.b32.xlu1 %v5758_v2, %s6710_s18 }
 0x5bc   : > { %1885 = vrot.lane.b32.xlu0 %v5760_v22, %s6710_s18 }
 0x5bf   : > { %1899 = vrot.lane.b32.xlu1 %v5748_v58, %s6712_s23 }
 0x5c0   : > { %1923 = vrot.lane.b32.xlu0 %v5758_v2, %s6704_s26 }
 0x5c3   : > { %1921 = vrot.lane.b32.xlu1 %v5750_v42, %s6704_s26 }
 0x5c4   : > { %1905 = vrot.lane.b32.xlu0 %v5760_v22, %s6712_s23 }
 0x5c7   : > { %1919 = vrot.lane.b32.xlu1 %v5748_v58, %s6704_s26 }
 0x5c8   : > { %1925 = vrot.lane.b32.xlu0 %v5760_v22, %s6704_s26 }
 0x5cb   : > { %4780 = vrot.lane.b32.xlu1 %v4769_v57, %s6702_s28 }
 0x5cc   : > { %4785 = vrot.lane.b32.xlu0 %v4774_v45, %s6702_s28 }
 0x5cf   : > { %1957 = vrot.lane.b32.xlu1 %v5750_v42, %s6700_s1 }
 0x5d0   : > { %1961 = vrot.lane.b32.xlu0 %v5760_v22, %s6700_s1 }
 0x5d3   : > { %1955 = vrot.lane.b32.xlu1 %v5748_v58, %s6700_s1 }
 0x5d4   : > { %1959 = vrot.lane.b32.xlu0 %v5758_v2, %s6700_s1 }
 0x5d7   : > { %1977 = vperm.xlu1 %4728, %v1817_v48  }
 0x5d8   : > { %1982 = vperm.xlu0 %4727, %v1818_v51  }
 0x5db   : > { %2102 = vperm.xlu1 %4728, %v2098_v52  }
 0x5dc   : > { %2107 = vperm.xlu0 %4727, %v2099_v60  }
 0x611   : > { %v1824_v6 = vpop.permute.xlu1 %1823 }
 0x612   : > { %v1826_v7 = vpop.permute.xlu0 %1825  ;;  %v1837_v21 = vsel %vm1221_vm2, 0.0, %v1824_v6 }
 0x613   : > { %v1831_v11 = vsel %vm1221_vm2, %v1824_v6, %v1826_v7  ;;  %v1839_v31 = vmul.f32 %v1837_v21, %v5516_v27 }
 0x614   : > { %v1840_v17 = vmul.f32 %v1831_v11, %v5513_v24 }
 0x615   : > { %v1860_v8 = vpop.permute.xlu1 %1859 }
 0x616   : > { %v1862_v9 = vpop.permute.xlu0 %1861  ;;  %v1873_v40 = vsel %vm1277_vm3, 0.0, %v1860_v8 }
 0x617   : > { %v1867_v36 = vsel %vm1277_vm3, %v1860_v8, %v1862_v9  ;;  %v1875_v48 = vmul.f32 %v1873_v40, %v5528_v50 }
 0x618   : > { %v1876_v45 = vmul.f32 %v1867_v36, %v5526_v49 }
 0x619   : > { %v1880_v10 = vpop.permute.xlu1 %1879 }
 0x61a   : > { %v1882_v12 = vpop.permute.xlu0 %1881  ;;  %v1893_v60 = vsel %vm1316_vm5, 0.0, %v1880_v10 }
 0x61b   : > { %v1887_v51 = vsel %vm1316_vm5, %v1880_v10, %v1882_v12  ;;  %v1895_v12 = vmul.f32 %v1893_v60, %v5516_v27 }
 0x61d   : > { %v4771_v15 = vpop.permute.xlu1 %4770 }
 0x61e   : > { %v5830_v19 = vpop.permute.xlu0 %1903  ;;  %v4773_v32 = vunpack.i.h.bf16 %v4771_v15  ;;  %v4772_v33 = vunpack.i.l.bf16 %v4771_v15 }
 0x620   : > { %v1851_v38 = vsel %vm965_vm0, %v4772_v33, %v4773_v32 }
 0x621   : > { %v1828_v20 = vpop.permute.xlu1 %1827 }
 0x622   : > { %v1838_v23 = vsel %vm1221_vm2, 0.0, %v1828_v20  ;;  %v1830_v25 = vpop.permute.xlu0 %1829 }
 0x623   : > { %v1841_v18 = vmul.f32 %v1838_v23, %v5516_v27  ;;  %v1832_v26 = vsel %vm1221_vm2, %v1828_v20, %v1830_v25  ;;  %v1896_v20 = vmul.f32 %v1887_v51, %v5513_v24 }
 0x624   : > { %v1842_v30 = vmul.f32 %v1832_v26, %v5513_v24 }
 0x625   : > { %v1902_v34 = vpop.permute.xlu1 %1901  ;;  %v4420_v55 = vpack.c.bf16 %v1841_v18, %v1839_v31 }
 0x626   : > { %v4776_v35 = vpop.permute.xlu0 %4775  ;;  %v4418_v61 = vpack.c.bf16 %v1842_v30, %v1840_v17  ;;  %v1913_v26 = vsel %vm1337_vm7, %v1902_v34, 0.0 }
 0x627   : > { %v4778_v3 = vunpack.i.h.bf16 %v4776_v35  ;;  %v4777_v16 = vunpack.i.l.bf16 %v4776_v35  ;;  %v1916_v35 = vmul.f32 %v1913_v26, %v5526_v49  ;;  %v1816_v26 = vld [vmem:[%s5270_s19 + $0x18] sm:$0xff] }
 0x628   : > { %4419 = vmatprep.subr.bf16.mxu1 %v4418_v61 }
 0x629   : > { %4421 = vmatpush1.bf16.msra.mxu1 %v4420_v55  ;;  %v1864_v37 = vpop.permute.xlu1 %1863  ;;  %v1852_v39 = vsel %vm965_vm0, %v4777_v16, %v4778_v3  ;;  %v4424_v43 = vpack.c.bf16 %v4777_v16, %v4772_v33 }
 0x62a   : > { %v1874_v41 = vsel %vm1277_vm3, 0.0, %v1864_v37  ;;  %v1866_v56 = vpop.permute.xlu0 %1865  ;;  %v4422_v54 = vpack.c.bf16 %v1852_v39, %v1851_v38 }
 0x62b   : > { %v1877_v57 = vmul.f32 %v1874_v41, %v5528_v50  ;;  %v1868_v62 = vsel %vm1277_vm3, %v1864_v37, %v1866_v56 }
 0x62c   : > { %v1878_v47 = vmul.f32 %v1868_v62, %v5526_v49  ;;  %4423 = vmatprep.subr.bf16.mxu1 %v4422_v54 }
 0x62d   : > { %v1884_v52 = vpop.permute.xlu1 %1883  ;;  %4426 = vmatpush1.bf16.msk.msra.mxu1 %vm5535_vm6, %v4424_v43  ;;  %v4429_v9 = vpack.c.bf16 %v1877_v57, %v1875_v48 }
 0x62e   : > { %v1894_v6 = vsel %vm1316_vm5, 0.0, %v1884_v52  ;;  %v1886_v7 = vpop.permute.xlu0 %1885  ;;  %v4427_v8 = vpack.c.bf16 %v1878_v47, %v1876_v45 }
 0x62f   : > { %v1897_v15 = vmul.f32 %v1894_v6, %v5516_v27  ;;  %v1888_v11 = vsel %vm1316_vm5, %v1884_v52, %v1886_v7 }
 0x630   : > { %v1898_v21 = vmul.f32 %v1888_v11, %v5513_v24  ;;  %4428 = vmatprep.subr.bf16.mxu1 %v4427_v8 }
 0x631   : > { %v1900_v23 = vpop.permute.xlu1 %1899  ;;  %4430 = vmatpush1.bf16.msra.mxu1 %v4429_v9  ;;  %v4433_v18 = vpack.c.bf16 %v1897_v15, %v1895_v12 }
 0x632   : > { %v1924_v25 = vpop.permute.xlu0 %1923  ;;  %v4431_v10 = vpack.c.bf16 %v1898_v21, %v1896_v20  ;;  %v1907_v17 = vsel %vm1337_vm7, %v1900_v23, %v1902_v34 }
 0x633   : > { %v1915_v61 = vmul.f32 %v1907_v17, %v5528_v50  ;;  %v1815_v17 = vld [vmem:[%s5270_s19 + $0x10] sm:$0xff] }
 0x634   : > { %4432 = vmatprep.subr.bf16.mxu1 %v4431_v10 }
 0x635   : > { %v1922_v30 = vpop.permute.xlu1 %1921  ;;  %4434 = vmatpush1.bf16.msra.mxu1 %v4433_v18  ;;  %v1813_v18 = vld [vmem:[%s5270_s19] sm:$0xff] }
 0x636   : > { %v1906_v31 = vpop.permute.xlu0 %1905  ;;  %4436 = vmatprep.subr.bf16.mxu1 %v4435_v46  ;;  %v1933_v3 = vsel %vm1358_vm8, %v1922_v30, 0.0 }
 0x637   : > { %v1908_v32 = vsel %vm1337_vm7, %v5830_v19, %v1906_v31  ;;  %v1914_v33 = vsel %vm1337_vm7, %v1906_v31, 0.0  ;;  %v1936_v39 = vmul.f32 %v1933_v3, %v5513_v24 }
 0x638   : > { %v1917_v55 = vmul.f32 %v1908_v32, %v5528_v50  ;;  %v1918_v34 = vmul.f32 %v1914_v33, %v5526_v49 }
 0x639   : > { %v1920_v16 = vpop.permute.xlu1 %1919  ;;  %4438 = vmatpush1.bf16.msra.mxu1 %v4437_v44 }
 0x63a   : > { %v4441_v42 = vpack.c.bf16 %v1917_v55, %v1915_v61  ;;  %v1927_v22 = vsel %vm1358_vm8, %v1920_v16, %v1922_v30  ;;  %v1926_v46 = vpop.permute.xlu0 %1925  ;;  %v4439_v19 = vpack.c.bf16 %v1918_v34, %v1916_v35 }
 0x63b   : > { %v1935_v36 = vmul.f32 %v1927_v22, %v5516_v27  ;;  %v1928_v37 = vsel %vm1358_vm8, %v1924_v25, %v1926_v46  ;;  %v1934_v38 = vsel %vm1358_vm8, %v1926_v46, 0.0 }
 0x63c   : > { %v1937_v40 = vmul.f32 %v1928_v37, %v5516_v27  ;;  %v1938_v41 = vmul.f32 %v1934_v38, %v5513_v24  ;;  %4440 = vmatprep.subr.bf16.mxu1 %v4439_v19 }
 0x63d   : > { %v4781_v58 = vpop.permute.xlu1 %4780  ;;  %4442 = vmatpush1.bf16.msra.mxu1 %v4441_v42 }
 0x63e   : > { %v4445_v2 = vpack.c.bf16 %v1937_v40, %v1935_v36  ;;  %v4783_v44 = vunpack.i.h.bf16 %v4781_v58  ;;  %v4782_v56 = vunpack.i.l.bf16 %v4781_v58  ;;  %v4786_v54 = vpop.permute.xlu0 %4785  ;;  %v4443_v43 = vpack.c.bf16 %v1938_v41, %v1936_v39 }
 0x63f   : > { %v4788_v57 = vunpack.i.h.bf16 %v4786_v54  ;;  %v4787_v62 = vunpack.i.l.bf16 %v4786_v54 }
 0x640   : > { %v1947_v45 = vsel %vm1379_vm9, %v4782_v56, %v4783_v44  ;;  %4444 = vmatprep.subr.bf16.mxu1 %v4443_v43 }
 0x641   : > { %v1948_v47 = vsel %vm1379_vm9, %v4787_v62, %v4788_v57  ;;  %v4447_v48 = vpack.c.bf16 %v4788_v57, %v4783_v44  ;;  %v1958_v51 = vpop.permute.xlu1 %1957  ;;  %4446 = vmatpush1.bf16.msra.mxu1 %v4445_v2 }
 0x642   : > { %v1969_v52 = vsel %vm1396_vm10, %v1958_v51, 0.0  ;;  %v1962_v60 = vpop.permute.xlu0 %1961  ;;  %v4450_v6 = vpack.c.bf16 %v1948_v47, %v1947_v45 }
 0x643   : > { %v1972_v7 = vmul.f32 %v1969_v52, %v5526_v49  ;;  %v1970_v8 = vsel %vm1396_vm10, %v1962_v60, 0.0  ;;  %4449 = vmatprep.subr.msk.bf16.mxu1 %vm5579_vm11, %v4447_v48 }
 0x644   : > { %v1974_v9 = vmul.f32 %v1970_v8, %v5526_v49 }
 0x645   : > { %v1956_v15 = vpop.permute.xlu1 %1955  ;;  %4451 = vmatpush1.bf16.msra.mxu1 %v4450_v6 }
 0x646   : > { %v1963_v11 = vsel %vm1396_vm10, %v1956_v15, %v1958_v51  ;;  %v1960_v20 = vpop.permute.xlu0 %1959  ;;  %v4452_v21 = vpack.c.bf16 %v1974_v9, %v1972_v7 }
 0x647   : > { %v1971_v12 = vmul.f32 %v1963_v11, %v5528_v50  ;;  %v1964_v23 = vsel %vm1396_vm10, %v1960_v20, %v1962_v60 }
 0x648   : > { %v1973_v25 = vmul.f32 %v1964_v23, %v5528_v50  ;;  %4453 = vmatprep.subr.bf16.mxu1 %v4452_v21 }
 0x64a   : > { %v4454_v10 = vpack.c.bf16 %v1973_v25, %v1971_v12 }
 0x64c   : > { %4455 = vmatpush1.bf16.msra.mxu1 %v4454_v10 }
 0x64f   : > { %2056 = vmatmul.mubr.f32.vlgmr.msra.gmra.mrb[4].mxu1 %v1813_v18 }
 0x650   : > { %4239 = vmatprep.mubr.msk.f32.mxu1 %vm965_vm0, %v1816_v26 }
 0x653   : > { %2062 = vmatmul.mubr.f32.gmra.mrb[6].mxu1 %v1815_v17 }
 0x654   : > { %2592 = vmatprep.mubr.f32.mxu1 %v5202_v0 }
 0x656   : > { %v1978_v30 = vpop.permute.xlu1 %1977 }
 0x657   : > { %v1983_v31 = vpop.permute.xlu0 %1982 }
 0x65a   : > { %v2103_v32 = vpop.permute.xlu1 %2102 }
 0x65b   : > { %v2183_v33 = vadd.f32 %v5820_v63, %v2103_v32  ;;  %v2185_v35 = vadd.f32 %v5823_v53, %v2103_v32  ;;  %v2108_v61 = vpop.permute.xlu0 %2107 }
 0x65c   : > { %v5903_v34 = vadd.f32 %v5826_v4, %v2108_v61  ;;  %v5906_v16 = vadd.f32 %v5828_v5, %v2108_v61 }
 0x65d   : > { %v4246_v55 = vmul.f32 -1.442695, %v2183_v33  ;;  %v4247_v3 = vmul.f32 -1.442695, %v2185_v35 }
 0x65e   : > { %v4248_v42 = vmul.f32 -1.442695, %v5903_v34  ;;  %v4249_v22 = vmul.f32 -1.442695, %v5906_v16 }
 0x65f   : > { %4945 = vpow2.f32 %v4246_v55 }
 0x660   : > { %4947 = vpow2.f32 %v4247_v3 }
 0x661   : > { %4949 = vpow2.f32 %v4248_v42 }
 0x662   : > { %4951 = vpow2.f32 %v4249_v22  ;;  %v2226_v22 = vld [vmem:[%s6753_s2 + $0x8] sm:$0xff] }
 0x663   : > { %4256 = vmatprep.mubr.msk.f32.mxu0 %vm965_vm0, %v2226_v22 }
 0x669   : > { %v4946_v58 = vpop.eup %4945 }
 0x66a   : > { %v4948_v2 = vpop.eup %4947  ;;  %v2205_v44 = vadd.f32 1.0, %v4946_v58 }
 0x66b   : > { %v4950_v56 = vpop.eup %4949  ;;  %v2206_v54 = vadd.f32 1.0, %v4948_v2 }
 0x66c   : > { %v4952_v43 = vpop.eup %4951  ;;  %v2207_v45 = vadd.f32 1.0, %v4950_v56 }
 0x66d   : > { %v2208_v48 = vadd.f32 1.0, %v4952_v43 }
 0x722   : > { %v2057_v46 = vpop.f32.mrb[4].mxu1 }
 0x723   : > { %v2058_v19 = vadd.f32 %v2057_v46, %v1978_v30  ;;  %v2059_v63 = vpop.f32.mrb[5].mxu1  ;;  %v2229_v46 = vld [vmem:[%s6754_s7] sm:$0xff] }
 0x724   : > { %v2060_v36 = vadd.f32 %v2059_v63, %v1978_v30  ;;  %v2510_v63 = vld [vmem:[%s6755_s10] sm:$0xff] }
 0x725   : > { %v4240_v53 = vmul.f32 -1.442695, %v2058_v19 }
 0x726   : > { %v4241_v37 = vmul.f32 -1.442695, %v2060_v36  ;;  %v2063_v4 = vpop.f32.mrb[6].mxu1 }
 0x727   : > { %4953 = vpow2.f32 %v4240_v53  ;;  %v2064_v38 = vadd.f32 %v2063_v4, %v1983_v31  ;;  %v2065_v39 = vpop.f32.mrb[7].mxu1 }
 0x728   : > { %4955 = vpow2.f32 %v4241_v37  ;;  %v2066_v5 = vadd.f32 %v2065_v39, %v1983_v31 }
 0x729   : > { %v4242_v40 = vmul.f32 -1.442695, %v2064_v38 }
 0x72a   : > { %v4243_v41 = vmul.f32 -1.442695, %v2066_v5 }
 0x72b   : > { %4957 = vpow2.f32 %v4242_v40 }
 0x72c   : > { %4959 = vpow2.f32 %v4243_v41 }
 0x72d   : > { %4961 = vrcp.f32 %v2205_v44 }
 0x72e   : > { %4963 = vrcp.f32 %v2206_v54 }
 0x731   : > { %v4954_v57 = vpop.eup %4953 }
 0x732   : > { %v4956_v62 = vpop.eup %4955  ;;  %v2080_v47 = vadd.f32 1.0, %v4954_v57 }
 0x733   : > { %v2081_v51 = vadd.f32 1.0, %v4956_v62 }
 0x734   : > { %4965 = vrcp.f32 %v2080_v47 }
 0x735   : > { %v4958_v52 = vpop.eup %4957  ;;  %4967 = vrcp.f32 %v2081_v51 }
 0x736   : > { %v4960_v60 = vpop.eup %4959  ;;  %4969 = vrcp.f32 %v2207_v45  ;;  %v2082_v6 = vadd.f32 1.0, %v4958_v52 }
 0x737   : > { %4971 = vrcp.f32 %v2208_v48  ;;  %v2083_v7 = vadd.f32 1.0, %v4960_v60  ;;  %v4962_v8 = vpop.eup %4961 }
 0x738   : > { %4973 = vrcp.f32 %v2082_v6  ;;  %v4964_v9 = vpop.eup %4963  ;;  %v2217_v20 = vmul.f32 %v4962_v8, %v2183_v33 }
 0x739   : > { %4975 = vrcp.f32 %v2083_v7  ;;  %v2218_v23 = vmul.f32 %v4964_v9, %v2185_v35 }
 0x73e   : > { %v4966_v15 = vpop.eup %4965 }
 0x73f   : > { %v4968_v11 = vpop.eup %4967  ;;  %v2092_v21 = vmul.f32 %v4966_v15, %v2058_v19  ;;  %v2230_v19 = vld [vmem:[%s6754_s7 + $0x8] sm:$0xff]  ;;  %s6772_s7 = sld [smem:[#allocation19_spill]] }
 0x740   : > { %v4970_v12 = vpop.eup %4969  ;;  %v2093_v25 = vmul.f32 %v4968_v11, %v2060_v36  ;;  %v2511_v36 = vld [vmem:[%s6755_s10 + $0x8] sm:$0xff] }
 0x741   : > { %v4972_v10 = vpop.eup %4971  ;;  %v5910_v18 = vadd.f32 %v2217_v20, %v2092_v21  ;;  %v2219_v31 = vmul.f32 %v4970_v12, %v5903_v34 }
 0x742   : > { %v4974_v26 = vpop.eup %4973  ;;  %v5912_v17 = vadd.f32 %v2218_v23, %v2093_v25  ;;  %v2220_v61 = vmul.f32 %v4972_v10, %v5906_v16 }
 0x743   : > { %v4976_v30 = vpop.eup %4975  ;;  %v2094_v32 = vmul.f32 %v4974_v26, %v2064_v38  ;;  %2235 = vrot.lane.b32.xlu1 %v5910_v18, %s6706_s11 }
 0x744   : > { %v2095_v33 = vmul.f32 %v4976_v30, %v2066_v5  ;;  %2237 = vrot.lane.b32.xlu0 %v5912_v17, %s6706_s11  ;;  %v4789_v35 = vpack.i.bf16 %v5912_v17, %v5910_v18 }
 0x745   : > { %v5922_v55 = vadd.f32 %v2219_v31, %v2094_v32 }
 0x746   : > { %v5924_v3 = vadd.f32 %v2220_v61, %v2095_v33 }
 0x747   : > { %2271 = vrot.lane.b32.xlu1 %v5910_v18, %s6717_s0  ;;  %v4475_v34 = vpack.c.bf16 %v5922_v55, %v5910_v18 }
 0x748   : > { %2273 = vrot.lane.b32.xlu0 %v5912_v17, %s6717_s0  ;;  %v4794_v16 = vpack.i.bf16 %v5924_v3, %v5922_v55  ;;  %v4473_v42 = vpack.c.bf16 %v5924_v3, %v5912_v17 }
 0x74b   : > { %2291 = vrot.lane.b32.xlu1 %v5910_v18, %s6710_s18 }
 0x74c   : > { %2293 = vrot.lane.b32.xlu0 %v5912_v17, %s6710_s18 }
 0x74f   : > { %4790 = vrot.lane.b32.xlu1 %v4789_v35, %s6708_s22 }
 0x750   : > { %2315 = vrot.lane.b32.xlu0 %v5922_v55, %s6712_s23 }
 0x753   : > { %2239 = vrot.lane.b32.xlu1 %v5922_v55, %s6706_s11 }
 0x754   : > { %2241 = vrot.lane.b32.xlu0 %v5924_v3, %s6706_s11 }
 0x757   : > { %2313 = vrot.lane.b32.xlu1 %v5912_v17, %s6712_s23 }
 0x758   : > { %4795 = vrot.lane.b32.xlu0 %v4794_v16, %s6708_s22 }
 0x75b   : > { %2275 = vrot.lane.b32.xlu1 %v5922_v55, %s6717_s0 }
 0x75c   : > { %2277 = vrot.lane.b32.xlu0 %v5924_v3, %s6717_s0 }
 0x75f   : > { %2295 = vrot.lane.b32.xlu1 %v5922_v55, %s6710_s18 }
 0x760   : > { %2297 = vrot.lane.b32.xlu0 %v5924_v3, %s6710_s18 }
 0x763   : > { %2311 = vrot.lane.b32.xlu1 %v5910_v18, %s6712_s23 }
 0x764   : > { %2335 = vrot.lane.b32.xlu0 %v5922_v55, %s6704_s26 }
 0x767   : > { %2333 = vrot.lane.b32.xlu1 %v5912_v17, %s6704_s26 }
 0x768   : > { %2317 = vrot.lane.b32.xlu0 %v5924_v3, %s6712_s23 }
 0x76b   : > { %2331 = vrot.lane.b32.xlu1 %v5910_v18, %s6704_s26 }
 0x76c   : > { %2337 = vrot.lane.b32.xlu0 %v5924_v3, %s6704_s26  ;;  %s6758_s26 = sld [smem:[#allocation13_spill]] }
 0x76f   : > { %4800 = vrot.lane.b32.xlu1 %v4789_v35, %s6702_s28 }
 0x770   : > { %4805 = vrot.lane.b32.xlu0 %v4794_v16, %s6702_s28  ;;  %s6757_s28 = sld [smem:[#allocation12_spill]] }
 0x773   : > { %2369 = vrot.lane.b32.xlu1 %v5912_v17, %s6700_s1 }
 0x774   : > { %2373 = vrot.lane.b32.xlu0 %v5924_v3, %s6700_s1 }
 0x777   : > { %2367 = vrot.lane.b32.xlu1 %v5910_v18, %s6700_s1 }
 0x778   : > { %2371 = vrot.lane.b32.xlu0 %v5922_v55, %s6700_s1  ;;  %s6756_s1 = sld [smem:[#allocation10_spill]] }
 0x77b   : > { %2389 = vperm.xlu1 %4728, %v2229_v46  }
 0x77c   : > { %2394 = vperm.xlu0 %4727, %v2230_v19  }
 0x77f   : > { %2514 = vperm.xlu1 %4728, %v2510_v63  }
 0x780   : > { %2519 = vperm.xlu0 %4727, %v2511_v36  }
 0x7b5   : > { %v2236_v53 = vpop.permute.xlu1 %2235 }
 0x7b6   : > { %v2238_v37 = vpop.permute.xlu0 %2237  ;;  %v2249_v44 = vsel %vm1221_vm2, 0.0, %v2236_v53 }
 0x7b7   : > { %v2243_v58 = vsel %vm1221_vm2, %v2236_v53, %v2238_v37  ;;  %v2251_v47 = vmul.f32 %v2249_v44, %v5516_v27 }
 0x7b8   : > { %v2252_v62 = vmul.f32 %v2243_v58, %v5513_v24 }
 0x7b9   : > { %v2272_v4 = vpop.permute.xlu1 %2271 }
 0x7ba   : > { %v2274_v38 = vpop.permute.xlu0 %2273  ;;  %v2285_v12 = vsel %vm1277_vm3, 0.0, %v2272_v4 }
 0x7bb   : > { %v2279_v15 = vsel %vm1277_vm3, %v2272_v4, %v2274_v38  ;;  %v2287_v33 = vmul.f32 %v2285_v12, %v5528_v50 }
 0x7bc   : > { %v2288_v32 = vmul.f32 %v2279_v15, %v5526_v49 }
 0x7bd   : > { %v2292_v39 = vpop.permute.xlu1 %2291 }
 0x7be   : > { %v2294_v5 = vpop.permute.xlu0 %2293  ;;  %v2305_v22 = vsel %vm1316_vm5, 0.0, %v2292_v39 }
 0x7bf   : > { %v2299_v35 = vsel %vm1316_vm5, %v2292_v39, %v2294_v5  ;;  %v2307_v5 = vmul.f32 %v2305_v22, %v5516_v27 }
 0x7c0   : > { %v2308_v4 = vmul.f32 %v2299_v35, %v5513_v24 }
 0x7c1   : > { %v4791_v40 = vpop.permute.xlu1 %4790 }
 0x7c2   : > { %v5986_v41 = vpop.permute.xlu0 %2315  ;;  %v4793_v48 = vunpack.i.h.bf16 %v4791_v40  ;;  %v4792_v51 = vunpack.i.l.bf16 %v4791_v40 }
 0x7c4   : > { %v2263_v20 = vsel %vm965_vm0, %v4792_v51, %v4793_v48 }
 0x7c5   : > { %v2240_v2 = vpop.permute.xlu1 %2239 }
 0x7c6   : > { %v2250_v56 = vsel %vm1221_vm2, 0.0, %v2240_v2  ;;  %v2242_v54 = vpop.permute.xlu0 %2241 }
 0x7c7   : > { %v2253_v43 = vmul.f32 %v2250_v56, %v5516_v27  ;;  %v2244_v57 = vsel %vm1221_vm2, %v2240_v2, %v2242_v54 }
 0x7c8   : > { %v2254_v45 = vmul.f32 %v2244_v57, %v5513_v24 }
 0x7c9   : > { %v2314_v52 = vpop.permute.xlu1 %2313  ;;  %v4458_v7 = vpack.c.bf16 %v2253_v43, %v2251_v47 }
 0x7ca   : > { %v4796_v60 = vpop.permute.xlu0 %4795  ;;  %v4456_v6 = vpack.c.bf16 %v2254_v45, %v2252_v62  ;;  %v2325_v44 = vsel %vm1337_vm7, %v2314_v52, 0.0 }
 0x7cb   : > { %v4798_v8 = vunpack.i.h.bf16 %v4796_v60  ;;  %v4797_v9 = vunpack.i.l.bf16 %v4796_v60  ;;  %v2328_v45 = vmul.f32 %v2325_v44, %v5526_v49 }
 0x7cc   : > { %4457 = vmatprep.subr.bf16.mxu0 %v4456_v6 }
 0x7cd   : > { %4459 = vmatpush1.bf16.msra.mxu0 %v4458_v7  ;;  %v2276_v11 = vpop.permute.xlu1 %2275  ;;  %v2264_v21 = vsel %vm965_vm0, %v4797_v9, %v4798_v8  ;;  %v4462_v26 = vpack.c.bf16 %v4797_v9, %v4792_v51 }
 0x7ce   : > { %v2286_v23 = vsel %vm1277_vm3, 0.0, %v2276_v11  ;;  %v2278_v25 = vpop.permute.xlu0 %2277  ;;  %v4460_v10 = vpack.c.bf16 %v2264_v21, %v2263_v20 }
 0x7cf   : > { %v2289_v30 = vmul.f32 %v2286_v23, %v5528_v50  ;;  %v2280_v31 = vsel %vm1277_vm3, %v2276_v11, %v2278_v25 }
 0x7d0   : > { %v2290_v61 = vmul.f32 %v2280_v31, %v5526_v49  ;;  %4461 = vmatprep.subr.bf16.mxu0 %v4460_v10 }
 0x7d1   : > { %v2296_v16 = vpop.permute.xlu1 %2295  ;;  %4464 = vmatpush1.bf16.msk.msra.mxu0 %vm5535_vm6, %v4462_v26  ;;  %v4467_v36 = vpack.c.bf16 %v2289_v30, %v2287_v33 }
 0x7d2   : > { %v2306_v46 = vsel %vm1316_vm5, 0.0, %v2296_v16  ;;  %v2298_v19 = vpop.permute.xlu0 %2297  ;;  %v4465_v63 = vpack.c.bf16 %v2290_v61, %v2288_v32 }
 0x7d3   : > { %v2309_v53 = vmul.f32 %v2306_v46, %v5516_v27  ;;  %v2300_v37 = vsel %vm1316_vm5, %v2296_v16, %v2298_v19 }
 0x7d4   : > { %v2310_v38 = vmul.f32 %v2300_v37, %v5513_v24  ;;  %4466 = vmatprep.subr.bf16.mxu0 %v4465_v63 }
 0x7d5   : > { %v2312_v40 = vpop.permute.xlu1 %2311  ;;  %4468 = vmatpush1.bf16.msra.mxu0 %v4467_v36  ;;  %v4471_v2 = vpack.c.bf16 %v2309_v53, %v2307_v5  ;;  %v2225_v5 = vld [vmem:[%s6753_s2] sm:$0xff] }
 0x7d6   : > { %v2336_v58 = vpop.permute.xlu0 %2335  ;;  %v4469_v39 = vpack.c.bf16 %v2310_v38, %v2308_v4  ;;  %v2319_v56 = vsel %vm1337_vm7, %v2312_v40, %v2314_v52  ;;  %v2228_v40 = vld [vmem:[%s6753_s2 + $0x18] sm:$0xff] }
 0x7d7   : > { %v2327_v47 = vmul.f32 %v2319_v56, %v5528_v50 }
 0x7d8   : > { %4470 = vmatprep.subr.bf16.mxu0 %v4469_v39 }
 0x7d9   : > { %v2334_v54 = vpop.permute.xlu1 %2333  ;;  %4472 = vmatpush1.bf16.msra.mxu0 %v4471_v2 }
 0x7da   : > { %v2318_v43 = vpop.permute.xlu0 %2317  ;;  %4474 = vmatprep.subr.bf16.mxu0 %v4473_v42  ;;  %v2345_v52 = vsel %vm1358_vm8, %v2334_v54, 0.0 }
 0x7db   : > { %v2320_v57 = vsel %vm1337_vm7, %v5986_v41, %v2318_v43  ;;  %v2326_v62 = vsel %vm1337_vm7, %v2318_v43, 0.0  ;;  %v2348_v9 = vmul.f32 %v2345_v52, %v5513_v24 }
 0x7dc   : > { %v2329_v48 = vmul.f32 %v2320_v57, %v5528_v50  ;;  %v2330_v51 = vmul.f32 %v2326_v62, %v5526_v49 }
 0x7dd   : > { %v2332_v60 = vpop.permute.xlu1 %2331  ;;  %4476 = vmatpush1.bf16.msra.mxu0 %v4475_v34 }
 0x7de   : > { %v4479_v17 = vpack.c.bf16 %v2329_v48, %v2327_v47  ;;  %v2339_v3 = vsel %vm1358_vm8, %v2332_v60, %v2334_v54  ;;  %v2338_v42 = vpop.permute.xlu0 %2337  ;;  %v4477_v41 = vpack.c.bf16 %v2330_v51, %v2328_v45 }
 0x7df   : > { %v2347_v6 = vmul.f32 %v2339_v3, %v5516_v27  ;;  %v2340_v7 = vsel %vm1358_vm8, %v2336_v58, %v2338_v42  ;;  %v2346_v8 = vsel %vm1358_vm8, %v2338_v42, 0.0  ;;  %v2227_v58 = vld [vmem:[%s6753_s2 + $0x10] sm:$0xff]  ;;  %s6764_s2 = smov 16  }
 0x7e0   : > { %v2349_v15 = vmul.f32 %v2340_v7, %v5516_v27  ;;  %v2350_v11 = vmul.f32 %v2346_v8, %v5513_v24  ;;  %4478 = vmatprep.subr.bf16.mxu0 %v4477_v41 }
 0x7e1   : > { %v4801_v18 = vpop.permute.xlu1 %4800  ;;  %4480 = vmatpush1.bf16.msra.mxu0 %v4479_v17 }
 0x7e2   : > { %v4483_v55 = vpack.c.bf16 %v2349_v15, %v2347_v6  ;;  %v4803_v34 = vunpack.i.h.bf16 %v4801_v18  ;;  %v4802_v20 = vunpack.i.l.bf16 %v4801_v18  ;;  %v4806_v21 = vpop.permute.xlu0 %4805  ;;  %v4481_v12 = vpack.c.bf16 %v2350_v11, %v2348_v9 }
 0x7e3   : > { %v4808_v23 = vunpack.i.h.bf16 %v4806_v21  ;;  %v4807_v25 = vunpack.i.l.bf16 %v4806_v21 }
 0x7e4   : > { %v2359_v10 = vsel %vm1379_vm9, %v4802_v20, %v4803_v34  ;;  %4482 = vmatprep.subr.bf16.mxu0 %v4481_v12 }
 0x7e5   : > { %v2360_v26 = vsel %vm1379_vm9, %v4807_v25, %v4808_v23  ;;  %v4485_v30 = vpack.c.bf16 %v4808_v23, %v4803_v34  ;;  %v2370_v31 = vpop.permute.xlu1 %2369  ;;  %4484 = vmatpush1.bf16.msra.mxu0 %v4483_v55 }
 0x7e6   : > { %v2381_v32 = vsel %vm1396_vm10, %v2370_v31, 0.0  ;;  %v2374_v61 = vpop.permute.xlu0 %2373  ;;  %v4488_v33 = vpack.c.bf16 %v2360_v26, %v2359_v10  ;;  %v2508_v10 = vld [vmem:[%s6756_s1] sm:$0xff]  ;;  %v2509_v26 = vld [vmem:[%s6756_s1 + $0x8] sm:$0xff]  ;;  %s6763_s1 = smov 1  }
 0x7e7   : > { %v2384_v35 = vmul.f32 %v2381_v32, %v5526_v49  ;;  %v2382_v16 = vsel %vm1396_vm10, %v2374_v61, 0.0  ;;  %4487 = vmatprep.subr.msk.bf16.mxu0 %vm5579_vm11, %v4485_v30 }
 0x7e8   : > { %v2386_v22 = vmul.f32 %v2382_v16, %v5526_v49 }
 0x7e9   : > { %v2368_v46 = vpop.permute.xlu1 %2367  ;;  %4489 = vmatpush1.bf16.msra.mxu0 %v4488_v33 }
 0x7ea   : > { %v2375_v19 = vsel %vm1396_vm10, %v2368_v46, %v2370_v31  ;;  %v2372_v63 = vpop.permute.xlu0 %2371  ;;  %v4490_v36 = vpack.c.bf16 %v2386_v22, %v2384_v35 }
 0x7eb   : > { %v2383_v53 = vmul.f32 %v2375_v19, %v5528_v50  ;;  %v2376_v37 = vsel %vm1396_vm10, %v2372_v63, %v2374_v61 }
 0x7ec   : > { %v2385_v4 = vmul.f32 %v2376_v37, %v5528_v50  ;;  %4491 = vmatprep.subr.bf16.mxu0 %v4490_v36 }
 0x7ee   : > { %v4492_v38 = vpack.c.bf16 %v2385_v4, %v2383_v53 }
 0x7f0   : > { %4493 = vmatpush1.bf16.msra.mxu0 %v4492_v38 }
 0x7f3   : > { %2468 = vmatmul.mubr.f32.vlgmr.msra.gmra.mrb[16].mxu0 %v2225_v5 }
 0x7f4   : > { %4257 = vmatprep.mubr.msk.f32.mxu0 %vm965_vm0, %v2228_v40 }
 0x7f7   : > { %2474 = vmatmul.mubr.f32.gmra.mrb[18].mxu0 %v2227_v58 }
 0x7fa   : > { %v2390_v39 = vpop.permute.xlu1 %2389 }
 0x7fb   : > { %v2395_v57 = vpop.permute.xlu0 %2394 }
 0x7fe   : > { %v2515_v30 = vpop.permute.xlu1 %2514 }
 0x7ff   : > { %v2520_v16 = vpop.permute.xlu0 %2519 }
 0x8c6   : > { %v2469_v2 = vpop.f32.mrb[16].mxu0 }
 0x8c7   : > { %v2470_v44 = vadd.f32 %v2469_v2, %v2390_v39  ;;  %v2471_v56 = vpop.f32.mrb[17].mxu0 }
 0x8c8   : > { %v2472_v54 = vadd.f32 %v2471_v56, %v2390_v39 }
 0x8c9   : > { %v4258_v43 = vmul.f32 -1.442695, %v2470_v44 }
 0x8ca   : > { %v4259_v62 = vmul.f32 -1.442695, %v2472_v54  ;;  %v2475_v45 = vpop.f32.mrb[18].mxu0 }
 0x8cb   : > { %4977 = vpow2.f32 %v4258_v43  ;;  %v2476_v47 = vadd.f32 %v2475_v45, %v2395_v57  ;;  %v2477_v48 = vpop.f32.mrb[19].mxu0 }
 0x8cc   : > { %4979 = vpow2.f32 %v4259_v62  ;;  %v2478_v51 = vadd.f32 %v2477_v48, %v2395_v57 }
 0x8cd   : > { %v4260_v52 = vmul.f32 -1.442695, %v2476_v47 }
 0x8ce   : > { %v4261_v60 = vmul.f32 -1.442695, %v2478_v51 }
 0x8cf   : > { %4981 = vpow2.f32 %v4260_v52 }
 0x8d0   : > { %4983 = vpow2.f32 %v4261_v60 }
 0x8d5   : > { %v4978_v17 = vpop.eup %4977 }
 0x8d6   : > { %v4980_v3 = vpop.eup %4979  ;;  %v2492_v42 = vadd.f32 1.0, %v4978_v17 }
 0x8d7   : > { %v2493_v41 = vadd.f32 1.0, %v4980_v3  ;;  %v2634_v3 = vld [vmem:[%s6757_s28 + $0x8] sm:$0xff] }
 0x8d8   : > { %4985 = vrcp.f32 %v2492_v42  ;;  %v2637_v42 = vld [vmem:[%s6758_s26] sm:$0xff] }
 0x8d9   : > { %v4982_v6 = vpop.eup %4981  ;;  %4987 = vrcp.f32 %v2493_v41  ;;  %v2638_v41 = vld [vmem:[%s6758_s26 + $0x8] sm:$0xff] }
 0x8da   : > { %v4984_v7 = vpop.eup %4983  ;;  %v2494_v8 = vadd.f32 1.0, %v4982_v6 }
 0x8db   : > { %v2495_v9 = vadd.f32 1.0, %v4984_v7 }
 0x8dc   : > { %4989 = vrcp.f32 %v2494_v8 }
 0x8dd   : > { %4991 = vrcp.f32 %v2495_v9 }
 0x8e2   : > { %v4986_v15 = vpop.eup %4985 }
 0x8e3   : > { %v4988_v11 = vpop.eup %4987  ;;  %v2504_v34 = vmul.f32 %v4986_v15, %v2470_v44 }
 0x8e4   : > { %v2505_v21 = vmul.f32 %v4988_v11, %v2472_v54 }
 0x8e6   : > { %v4990_v18 = vpop.eup %4989 }
 0x8e7   : > { %v4992_v55 = vpop.eup %4991  ;;  %v2506_v20 = vmul.f32 %v4990_v18, %v2476_v47 }
 0x8e8   : > { %v2507_v12 = vmul.f32 %v4992_v55, %v2478_v51 }
 0x8e9   : > { %v6055_v23 = vpack.c.bf16 %v2506_v20, %v2504_v34 }
 0x8ea   : > { %v6057_v25 = vpack.c.bf16 %v2507_v12, %v2505_v21 }
 0x8ec   : > { %4495 = vmatprep.subr.bf16.mxu1 %v6057_v25 }
 0x8ed   : > { %4497 = vmatpush1.bf16.msra.mxu1 %v6055_v23 }
 0x8f0   : > { %4262 = vmatmul.mubr.msk.f32.vlgmr.msra.gmra.mrb[8].mxu1 %vm965_vm0, %v2508_v10 }
 0x8f1   : > { %2598 = vmatprep.mubr.f32.mxu1 %v5202_v0 }
 0x8f4   : > { %4263 = vmatmul.mubr.msk.f32.gmra.mrb[10].mxu1 %vm965_vm0, %v2509_v26 }
 0x8f5   : > { %4274 = vmatprep.mubr.msk.f32.mxu1 %vm965_vm0, %v2634_v3 }
 0x9c3   : > { %v2594_v31 = vpop.f32.mrb[8].mxu1 }
 0x9c4   : > { %v2595_v32 = vadd.f32 %v2594_v31, %v2515_v30  ;;  %v2596_v61 = vpop.f32.mrb[9].mxu1 }
 0x9c5   : > { %v2597_v33 = vadd.f32 %v2596_v61, %v2515_v30 }
 0x9c6   : > { %v4264_v35 = vmul.f32 -1.442695, %v2595_v32 }
 0x9c7   : > { %v4265_v22 = vmul.f32 -1.442695, %v2597_v33  ;;  %v2600_v46 = vpop.f32.mrb[10].mxu1 }
 0x9c8   : > { %4993 = vpow2.f32 %v4264_v35  ;;  %v2601_v19 = vadd.f32 %v2600_v46, %v2520_v16  ;;  %v2602_v63 = vpop.f32.mrb[11].mxu1 }
 0x9c9   : > { %4995 = vpow2.f32 %v4265_v22  ;;  %v2603_v36 = vadd.f32 %v2602_v63, %v2520_v16 }
 0x9ca   : > { %v4266_v53 = vmul.f32 -1.442695, %v2601_v19 }
 0x9cb   : > { %v4267_v37 = vmul.f32 -1.442695, %v2603_v36 }
 0x9cc   : > { %4997 = vpow2.f32 %v4266_v53 }
 0x9cd   : > { %4999 = vpow2.f32 %v4267_v37 }
 0x9d2   : > { %v4994_v4 = vpop.eup %4993 }
 0x9d3   : > { %v4996_v38 = vpop.eup %4995  ;;  %v2617_v5 = vadd.f32 1.0, %v4994_v4 }
 0x9d4   : > { %v2618_v40 = vadd.f32 1.0, %v4996_v38 }
 0x9d5   : > { %5001 = vrcp.f32 %v2617_v5 }
 0x9d6   : > { %v4998_v58 = vpop.eup %4997  ;;  %5003 = vrcp.f32 %v2618_v40 }
 0x9d7   : > { %v5000_v39 = vpop.eup %4999  ;;  %v2619_v2 = vadd.f32 1.0, %v4998_v58 }
 0x9d8   : > { %v2620_v44 = vadd.f32 1.0, %v5000_v39 }
 0x9d9   : > { %5005 = vrcp.f32 %v2619_v2 }
 0x9da   : > { %5007 = vrcp.f32 %v2620_v44 }
 0x9df   : > { %v5002_v56 = vpop.eup %5001 }
 0x9e0   : > { %v5004_v54 = vpop.eup %5003  ;;  %v6066_v43 = vmul.f32 %v5002_v56, %v2595_v32 }
 0x9e1   : > { %v6068_v57 = vmul.f32 %v5004_v54, %v2597_v33 }
 0x9e2   : > { %2643 = vrot.lane.b32.xlu1 %v6066_v43, %s6706_s11 }
 0x9e3   : > { %v5006_v62 = vpop.eup %5005  ;;  %2645 = vrot.lane.b32.xlu0 %v6068_v57, %s6706_s11  ;;  %v4809_v45 = vpack.i.bf16 %v6068_v57, %v6066_v43 }
 0x9e4   : > { %v5008_v47 = vpop.eup %5007  ;;  %v6076_v48 = vmul.f32 %v5006_v62, %v2601_v19 }
 0x9e5   : > { %v6078_v51 = vmul.f32 %v5008_v47, %v2603_v36 }
 0x9e6   : > { %2679 = vrot.lane.b32.xlu1 %v6066_v43, %s6717_s0  ;;  %v4517_v52 = vpack.c.bf16 %v6076_v48, %v6066_v43 }
 0x9e7   : > { %2681 = vrot.lane.b32.xlu0 %v6068_v57, %s6717_s0  ;;  %v4814_v60 = vpack.i.bf16 %v6078_v51, %v6076_v48  ;;  %v4515_v17 = vpack.c.bf16 %v6078_v51, %v6068_v57 }
 0x9ea   : > { %2699 = vrot.lane.b32.xlu1 %v6066_v43, %s6710_s18 }
 0x9eb   : > { %2701 = vrot.lane.b32.xlu0 %v6068_v57, %s6710_s18 }
 0x9ee   : > { %4810 = vrot.lane.b32.xlu1 %v4809_v45, %s6708_s22 }
 0x9ef   : > { %2723 = vrot.lane.b32.xlu0 %v6076_v48, %s6712_s23 }
 0x9f2   : > { %2647 = vrot.lane.b32.xlu1 %v6076_v48, %s6706_s11 }
 0x9f3   : > { %2649 = vrot.lane.b32.xlu0 %v6078_v51, %s6706_s11  ;;  %s6759_s11 = smov 113  }
 0x9f6   : > { %2721 = vrot.lane.b32.xlu1 %v6068_v57, %s6712_s23 }
 0x9f7   : > { %4815 = vrot.lane.b32.xlu0 %v4814_v60, %s6708_s22  ;;  %s6760_s22 = smov 112  }
 0x9fa   : > { %2683 = vrot.lane.b32.xlu1 %v6076_v48, %s6717_s0 }
 0x9fb   : > { %2685 = vrot.lane.b32.xlu0 %v6078_v51, %s6717_s0 }
 0x9fe   : > { %2703 = vrot.lane.b32.xlu1 %v6076_v48, %s6710_s18 }
 0x9ff   : > { %2705 = vrot.lane.b32.xlu0 %v6078_v51, %s6710_s18  ;;  %s6761_s18 = smov 111  }
 0xa02   : > { %2719 = vrot.lane.b32.xlu1 %v6066_v43, %s6712_s23 }
 0xa03   : > { %2743 = vrot.lane.b32.xlu0 %v6076_v48, %s6759_s11 }
 0xa06   : > { %2741 = vrot.lane.b32.xlu1 %v6068_v57, %s6759_s11 }
 0xa07   : > { %2725 = vrot.lane.b32.xlu0 %v6078_v51, %s6712_s23  ;;  %s6762_s23 = smov 17  }
 0xa0a   : > { %2739 = vrot.lane.b32.xlu1 %v6066_v43, %s6759_s11 }
 0xa0b   : > { %2745 = vrot.lane.b32.xlu0 %v6078_v51, %s6759_s11 }
 0xa0e   : > { %4820 = vrot.lane.b32.xlu1 %v4809_v45, %s6760_s22 }
 0xa0f   : > { %4825 = vrot.lane.b32.xlu0 %v4814_v60, %s6760_s22 }
 0xa12   : > { %2777 = vrot.lane.b32.xlu1 %v6068_v57, %s6761_s18 }
 0xa13   : > { %2781 = vrot.lane.b32.xlu0 %v6078_v51, %s6761_s18 }
 0xa16   : > { %2775 = vrot.lane.b32.xlu1 %v6066_v43, %s6761_s18 }
 0xa17   : > { %2779 = vrot.lane.b32.xlu0 %v6076_v48, %s6761_s18 }
 0xa1a   : > { %2797 = vperm.xlu1 %4728, %v2637_v42  }
 0xa1b   : > { %2802 = vperm.xlu0 %4727, %v2638_v41  }
 0xa54   : > { %v2644_v6 = vpop.permute.xlu1 %2643 }
 0xa55   : > { %v2646_v7 = vpop.permute.xlu0 %2645  ;;  %v2657_v21 = vsel %vm1221_vm2, 0.0, %v2644_v6 }
 0xa56   : > { %v2651_v34 = vsel %vm1221_vm2, %v2644_v6, %v2646_v7  ;;  %v2659_v61 = vmul.f32 %v2657_v21, %v5516_v27 }
 0xa57   : > { %v2660_v31 = vmul.f32 %v2651_v34, %v5513_v24 }
 0xa58   : > { %v2680_v8 = vpop.permute.xlu1 %2679 }
 0xa59   : > { %v2682_v9 = vpop.permute.xlu0 %2681  ;;  %v2693_v5 = vsel %vm1277_vm3, 0.0, %v2680_v8 }
 0xa5a   : > { %v2687_v53 = vsel %vm1277_vm3, %v2680_v8, %v2682_v9  ;;  %v2695_v45 = vmul.f32 %v2693_v5, %v5528_v50 }
 0xa5b   : > { %v2696_v54 = vmul.f32 %v2687_v53, %v5526_v49 }
 0xa5c   : > { %v2700_v15 = vpop.permute.xlu1 %2699 }
 0xa5d   : > { %v2702_v11 = vpop.permute.xlu0 %2701  ;;  %v2713_v3 = vsel %vm1316_vm5, 0.0, %v2700_v15 }
 0xa5e   : > { %v2707_v47 = vsel %vm1316_vm5, %v2700_v15, %v2702_v11  ;;  %v2715_v11 = vmul.f32 %v2713_v3, %v5516_v27 }
 0xa60   : > { %v4811_v18 = vpop.permute.xlu1 %4810 }
 0xa61   : > { %v6138_v55 = vpop.permute.xlu0 %2723  ;;  %v4813_v33 = vunpack.i.h.bf16 %v4811_v18  ;;  %v4812_v35 = vunpack.i.l.bf16 %v4811_v18  ;;  %v2716_v18 = vmul.f32 %v2707_v47, %v5513_v24 }
 0xa63   : > { %v2671_v4 = vsel %vm965_vm0, %v4812_v35, %v4813_v33 }
 0xa64   : > { %v2648_v20 = vpop.permute.xlu1 %2647 }
 0xa65   : > { %v2658_v12 = vsel %vm1221_vm2, 0.0, %v2648_v20  ;;  %v2650_v10 = vpop.permute.xlu0 %2649 }
 0xa66   : > { %v2661_v26 = vmul.f32 %v2658_v12, %v5516_v27  ;;  %v2652_v30 = vsel %vm1221_vm2, %v2648_v20, %v2650_v10 }
 0xa67   : > { %v2662_v32 = vmul.f32 %v2652_v30, %v5513_v24 }
 0xa68   : > { %v2722_v16 = vpop.permute.xlu1 %2721  ;;  %v4500_v19 = vpack.c.bf16 %v2661_v26, %v2659_v61 }
 0xa69   : > { %v4816_v22 = vpop.permute.xlu0 %4815  ;;  %v4498_v46 = vpack.c.bf16 %v2662_v32, %v2660_v31  ;;  %v2733_v10 = vsel %vm1337_vm7, %v2722_v16, 0.0 }
 0xa6a   : > { %v4818_v63 = vunpack.i.h.bf16 %v4816_v22  ;;  %v4817_v36 = vunpack.i.l.bf16 %v4816_v22  ;;  %v2736_v33 = vmul.f32 %v2733_v10, %v5526_v49 }
 0xa6b   : > { %4499 = vmatprep.subr.bf16.mxu1 %v4498_v46 }
 0xa6c   : > { %4501 = vmatpush1.bf16.msra.mxu1 %v4500_v19  ;;  %v2684_v37 = vpop.permute.xlu1 %2683  ;;  %v2672_v38 = vsel %vm965_vm0, %v4817_v36, %v4818_v63  ;;  %v4504_v2 = vpack.c.bf16 %v4817_v36, %v4812_v35 }
 0xa6d   : > { %v2694_v40 = vsel %vm1277_vm3, 0.0, %v2684_v37  ;;  %v2686_v58 = vpop.permute.xlu0 %2685  ;;  %v4502_v39 = vpack.c.bf16 %v2672_v38, %v2671_v4 }
 0xa6e   : > { %v2697_v44 = vmul.f32 %v2694_v40, %v5528_v50  ;;  %v2688_v56 = vsel %vm1277_vm3, %v2684_v37, %v2686_v58 }
 0xa6f   : > { %v2698_v62 = vmul.f32 %v2688_v56, %v5526_v49  ;;  %4503 = vmatprep.subr.bf16.mxu1 %v4502_v39 }
 0xa70   : > { %v2704_v60 = vpop.permute.xlu1 %2703  ;;  %4506 = vmatpush1.bf16.msk.msra.mxu1 %vm5535_vm6, %v4504_v2  ;;  %v4509_v7 = vpack.c.bf16 %v2697_v44, %v2695_v45 }
 0xa71   : > { %v2714_v42 = vsel %vm1316_vm5, 0.0, %v2704_v60  ;;  %v2706_v41 = vpop.permute.xlu0 %2705  ;;  %v4507_v6 = vpack.c.bf16 %v2698_v62, %v2696_v54 }
 0xa72   : > { %v2717_v8 = vmul.f32 %v2714_v42, %v5516_v27  ;;  %v2708_v9 = vsel %vm1316_vm5, %v2704_v60, %v2706_v41 }
 0xa73   : > { %v2718_v34 = vmul.f32 %v2708_v9, %v5513_v24  ;;  %4508 = vmatprep.subr.bf16.mxu1 %v4507_v6 }
 0xa74   : > { %v2720_v20 = vpop.permute.xlu1 %2719  ;;  %4510 = vmatpush1.bf16.msra.mxu1 %v4509_v7  ;;  %v4513_v12 = vpack.c.bf16 %v2717_v8, %v2715_v11 }
 0xa75   : > { %v2744_v21 = vpop.permute.xlu0 %2743  ;;  %v4511_v15 = vpack.c.bf16 %v2718_v34, %v2716_v18  ;;  %v2727_v26 = vsel %vm1337_vm7, %v2720_v20, %v2722_v16 }
 0xa76   : > { %v2735_v35 = vmul.f32 %v2727_v26, %v5528_v50 }
 0xa77   : > { %4512 = vmatprep.subr.bf16.mxu1 %v4511_v15  ;;  %v2636_v15 = vld [vmem:[%s6757_s28 + $0x18] sm:$0xff] }
 0xa78   : > { %v2742_v30 = vpop.permute.xlu1 %2741  ;;  %4514 = vmatpush1.bf16.msra.mxu1 %v4513_v12  ;;  %v2635_v12 = vld [vmem:[%s6757_s28 + $0x10] sm:$0xff] }
 0xa79   : > { %v2726_v31 = vpop.permute.xlu0 %2725  ;;  %4516 = vmatprep.subr.bf16.mxu1 %v4515_v17  ;;  %v2753_v46 = vsel %vm1358_vm8, %v2742_v30, 0.0 }
 0xa7a   : > { %v2728_v32 = vsel %vm1337_vm7, %v6138_v55, %v2726_v31  ;;  %v2734_v61 = vsel %vm1337_vm7, %v2726_v31, 0.0  ;;  %v2756_v37 = vmul.f32 %v2753_v46, %v5513_v24 }
 0xa7b   : > { %v2737_v22 = vmul.f32 %v2728_v32, %v5528_v50  ;;  %v2738_v16 = vmul.f32 %v2734_v61, %v5526_v49 }
 0xa7c   : > { %v2740_v19 = vpop.permute.xlu1 %2739  ;;  %4518 = vmatpush1.bf16.msra.mxu1 %v4517_v52 }
 0xa7d   : > { %v4521_v57 = vpack.c.bf16 %v2737_v22, %v2735_v35  ;;  %v2747_v51 = vsel %vm1358_vm8, %v2740_v19, %v2742_v30  ;;  %v2746_v17 = vpop.permute.xlu0 %2745  ;;  %v4519_v55 = vpack.c.bf16 %v2738_v16, %v2736_v33 }
 0xa7e   : > { %v2755_v63 = vmul.f32 %v2747_v51, %v5516_v27  ;;  %v2748_v36 = vsel %vm1358_vm8, %v2744_v21, %v2746_v17  ;;  %v2754_v53 = vsel %vm1358_vm8, %v2746_v17, 0.0  ;;  %v2633_v21 = vld [vmem:[%s6757_s28] sm:$0xff] }
 0xa7f   : > { %v2757_v4 = vmul.f32 %v2748_v36, %v5516_v27  ;;  %v2758_v38 = vmul.f32 %v2754_v53, %v5513_v24  ;;  %4520 = vmatprep.subr.bf16.mxu1 %v4519_v55 }
 0xa80   : > { %v4821_v43 = vpop.permute.xlu1 %4820  ;;  %4522 = vmatpush1.bf16.msra.mxu1 %v4521_v57 }
 0xa81   : > { %v4525_v48 = vpack.c.bf16 %v2757_v4, %v2755_v63  ;;  %v4823_v52 = vunpack.i.h.bf16 %v4821_v43  ;;  %v4822_v5 = vunpack.i.l.bf16 %v4821_v43  ;;  %v4826_v40 = vpop.permute.xlu0 %4825  ;;  %v4523_v58 = vpack.c.bf16 %v2758_v38, %v2756_v37 }
 0xa82   : > { %v4828_v39 = vunpack.i.h.bf16 %v4826_v40  ;;  %v4827_v2 = vunpack.i.l.bf16 %v4826_v40 }
 0xa83   : > { %v2767_v44 = vsel %vm1379_vm9, %v4822_v5, %v4823_v52  ;;  %4524 = vmatprep.subr.bf16.mxu1 %v4523_v58 }
 0xa84   : > { %v2768_v56 = vsel %vm1379_vm9, %v4827_v2, %v4828_v39  ;;  %v4527_v54 = vpack.c.bf16 %v4828_v39, %v4823_v52  ;;  %v2778_v62 = vpop.permute.xlu1 %2777  ;;  %4526 = vmatpush1.bf16.msra.mxu1 %v4525_v48 }
 0xa85   : > { %v2789_v45 = vsel %vm1396_vm10, %v2778_v62, 0.0  ;;  %v2782_v47 = vpop.permute.xlu0 %2781  ;;  %v4530_v60 = vpack.c.bf16 %v2768_v56, %v2767_v44 }
 0xa86   : > { %v2792_v3 = vmul.f32 %v2789_v45, %v5526_v49  ;;  %v2790_v42 = vsel %vm1396_vm10, %v2782_v47, 0.0  ;;  %4529 = vmatprep.subr.msk.bf16.mxu1 %vm5579_vm11, %v4527_v54 }
 0xa87   : > { %v2794_v41 = vmul.f32 %v2790_v42, %v5526_v49 }
 0xa88   : > { %v2776_v6 = vpop.permute.xlu1 %2775  ;;  %4531 = vmatpush1.bf16.msra.mxu1 %v4530_v60  ;;  %v2921_v60 = vld [vmem:[%s6768_s6 + $0x8] sm:$0xff] }
 0xa89   : > { %v2783_v7 = vsel %vm1396_vm10, %v2776_v6, %v2778_v62  ;;  %v2780_v8 = vpop.permute.xlu0 %2779  ;;  %v4532_v9 = vpack.c.bf16 %v2794_v41, %v2792_v3 }
 0xa8a   : > { %v2791_v18 = vmul.f32 %v2783_v7, %v5528_v50  ;;  %v2784_v34 = vsel %vm1396_vm10, %v2780_v8, %v2782_v47  ;;  %v2920_v47 = vld [vmem:[%s6768_s6] sm:$0xff]  ;;  %s6769_s6 = sld [smem:[#allocation18_spill]] }
 0xa8b   : > { %v2793_v11 = vmul.f32 %v2784_v34, %v5528_v50  ;;  %4533 = vmatprep.subr.bf16.mxu1 %v4532_v9 }
 0xa8d   : > { %v4534_v20 = vpack.c.bf16 %v2793_v11, %v2791_v18 }
 0xa8f   : > { %4535 = vmatpush1.bf16.msra.mxu1 %v4534_v20 }
 0xa92   : > { %2876 = vmatmul.mubr.f32.vlgmr.msra.gmra.mrb[12].mxu1 %v2633_v21 }
 0xa93   : > { %4275 = vmatprep.mubr.msk.f32.mxu1 %vm965_vm0, %v2636_v15 }
 0xa96   : > { %2882 = vmatmul.mubr.f32.gmra.mrb[14].mxu1 %v2635_v12 }
 0xa99   : > { %v2798_v10 = vpop.permute.xlu1 %2797 }
 0xa9a   : > { %v2803_v33 = vpop.permute.xlu0 %2802 }
 0xb65   : > { %v2877_v26 = vpop.f32.mrb[12].mxu1 }
 0xb66   : > { %v2878_v30 = vadd.f32 %v2877_v26, %v2798_v10  ;;  %v2879_v31 = vpop.f32.mrb[13].mxu1 }
 0xb67   : > { %v2880_v32 = vadd.f32 %v2879_v31, %v2798_v10 }
 0xb68   : > { %v4276_v61 = vmul.f32 -1.442695, %v2878_v30 }
 0xb69   : > { %v4277_v35 = vmul.f32 -1.442695, %v2880_v32  ;;  %v2883_v22 = vpop.f32.mrb[14].mxu1 }
 0xb6a   : > { %5009 = vpow2.f32 %v4276_v61  ;;  %v2884_v16 = vadd.f32 %v2883_v22, %v2803_v33  ;;  %v2885_v46 = vpop.f32.mrb[15].mxu1 }
 0xb6b   : > { %5011 = vpow2.f32 %v4277_v35  ;;  %v2886_v19 = vadd.f32 %v2885_v46, %v2803_v33 }
 0xb6c   : > { %v4278_v57 = vmul.f32 -1.442695, %v2884_v16 }
 0xb6d   : > { %v4279_v51 = vmul.f32 -1.442695, %v2886_v19 }
 0xb6e   : > { %5013 = vpow2.f32 %v4278_v57 }
 0xb6f   : > { %5015 = vpow2.f32 %v4279_v51 }
 0xb74   : > { %v5010_v17 = vpop.eup %5009 }
 0xb75   : > { %v5012_v55 = vpop.eup %5011  ;;  %v2900_v63 = vadd.f32 1.0, %v5010_v17 }
 0xb76   : > { %v2901_v36 = vadd.f32 1.0, %v5012_v55 }
 0xb77   : > { %5017 = vrcp.f32 %v2900_v63 }
 0xb78   : > { %v5014_v53 = vpop.eup %5013  ;;  %5019 = vrcp.f32 %v2901_v36 }
 0xb79   : > { %v5016_v37 = vpop.eup %5015  ;;  %v2902_v4 = vadd.f32 1.0, %v5014_v53 }
 0xb7a   : > { %v2903_v38 = vadd.f32 1.0, %v5016_v37 }
 0xb7b   : > { %5021 = vrcp.f32 %v2902_v4 }
 0xb7c   : > { %5023 = vrcp.f32 %v2903_v38 }
 0xb81   : > { %v5018_v43 = vpop.eup %5017 }
 0xb82   : > { %v5020_v48 = vpop.eup %5019  ;;  %v6207_v52 = vmul.f32 %v5018_v43, %v2878_v30 }
 0xb83   : > { %v6209_v5 = vmul.f32 %v5020_v48, %v2880_v32 }
 0xb84   : > { %2926 = vrot.lane.b32.xlu1 %v6207_v52, %s6762_s23 }
 0xb85   : > { %v5022_v40 = vpop.eup %5021  ;;  %2928 = vrot.lane.b32.xlu0 %v6209_v5, %s6762_s23  ;;  %v4829_v58 = vpack.i.bf16 %v6209_v5, %v6207_v52 }
 0xb86   : > { %v5024_v39 = vpop.eup %5023  ;;  %v6217_v2 = vmul.f32 %v5022_v40, %v2884_v16 }
 0xb87   : > { %v6219_v44 = vmul.f32 %v5024_v39, %v2886_v19 }
 0xb88   : > { %2962 = vrot.lane.b32.xlu1 %v6207_v52, %s6717_s0  ;;  %v4555_v56 = vpack.c.bf16 %v6217_v2, %v6207_v52 }
 0xb89   : > { %2964 = vrot.lane.b32.xlu0 %v6209_v5, %s6717_s0  ;;  %v4834_v54 = vpack.i.bf16 %v6219_v44, %v6217_v2  ;;  %v4553_v62 = vpack.c.bf16 %v6219_v44, %v6209_v5  ;;  %s6766_s0 = sld [smem:[#allocation14_spill]] }
 0xb8c   : > { %2982 = vrot.lane.b32.xlu1 %v6207_v52, %s6763_s1 }
 0xb8d   : > { %2984 = vrot.lane.b32.xlu0 %v6209_v5, %s6763_s1 }
 0xb8f   : > { %v2917_v45 = vld [vmem:[%s6766_s0 + $0x8] sm:$0xff] }
 0xb90   : > { %4830 = vrot.lane.b32.xlu1 %v4829_v58, %s6764_s2  ;;  %4286 = vmatprep.mubr.msk.f32.mxu0 %vm965_vm0, %v2917_v45 }
 0xb91   : > { %3006 = vrot.lane.b32.xlu0 %v6217_v2, %s6765_s3 }
 0xb94   : > { %2930 = vrot.lane.b32.xlu1 %v6217_v2, %s6762_s23 }
 0xb95   : > { %2932 = vrot.lane.b32.xlu0 %v6219_v44, %s6762_s23 }
 0xb98   : > { %3004 = vrot.lane.b32.xlu1 %v6209_v5, %s6765_s3 }
 0xb99   : > { %4835 = vrot.lane.b32.xlu0 %v4834_v54, %s6764_s2 }
 0xb9c   : > { %2966 = vrot.lane.b32.xlu1 %v6217_v2, %s6767_s5 }
 0xb9d   : > { %2968 = vrot.lane.b32.xlu0 %v6219_v44, %s6767_s5 }
 0xba0   : > { %2986 = vrot.lane.b32.xlu1 %v6217_v2, %s6763_s1 }
 0xba1   : > { %2988 = vrot.lane.b32.xlu0 %v6219_v44, %s6763_s1 }
 0xba4   : > { %3002 = vrot.lane.b32.xlu1 %v6207_v52, %s6765_s3 }
 0xba5   : > { %3026 = vrot.lane.b32.xlu0 %v6217_v2, %s6759_s11 }
 0xba8   : > { %3024 = vrot.lane.b32.xlu1 %v6209_v5, %s6759_s11 }
 0xba9   : > { %3008 = vrot.lane.b32.xlu0 %v6219_v44, %s6765_s3 }
 0xbac   : > { %3022 = vrot.lane.b32.xlu1 %v6207_v52, %s6759_s11 }
 0xbad   : > { %3028 = vrot.lane.b32.xlu0 %v6219_v44, %s6759_s11 }
 0xbb0   : > { %4840 = vrot.lane.b32.xlu1 %v4829_v58, %s6760_s22 }
 0xbb1   : > { %4845 = vrot.lane.b32.xlu0 %v4834_v54, %s6760_s22 }
 0xbb4   : > { %3060 = vrot.lane.b32.xlu1 %v6209_v5, %s6761_s18 }
 0xbb5   : > { %3064 = vrot.lane.b32.xlu0 %v6219_v44, %s6761_s18 }
 0xbb8   : > { %3058 = vrot.lane.b32.xlu1 %v6207_v52, %s6761_s18 }
 0xbb9   : > { %3062 = vrot.lane.b32.xlu0 %v6217_v2, %s6761_s18 }
 0xbbc   : > { %3080 = vperm.xlu1 %4728, %v2920_v47  }
 0xbbd   : > { %3085 = vperm.xlu0 %4727, %v2921_v60  }
 0xbf6   : > { %v2927_v3 = vpop.permute.xlu1 %2926 }
 0xbf7   : > { %v2929_v42 = vpop.permute.xlu0 %2928  ;;  %v2940_v20 = vsel %vm1221_vm2, 0.0, %v2927_v3 }
 0xbf8   : > { %v2934_v34 = vsel %vm1221_vm2, %v2927_v3, %v2929_v42  ;;  %v2942_v31 = vmul.f32 %v2940_v20, %v5516_v27 }
 0xbf9   : > { %v2943_v26 = vmul.f32 %v2934_v34, %v5513_v24 }
 0xbfa   : > { %v2963_v41 = vpop.permute.xlu1 %2962 }
 0xbfb   : > { %v2965_v6 = vpop.permute.xlu0 %2964  ;;  %v2976_v63 = vsel %vm1277_vm3, 0.0, %v2963_v41 }
 0xbfc   : > { %v2970_v57 = vsel %vm1277_vm3, %v2963_v41, %v2965_v6  ;;  %v2978_v58 = vmul.f32 %v2976_v63, %v5528_v50 }
 0xbfd   : > { %v2979_v48 = vmul.f32 %v2970_v57, %v5526_v49 }
 0xbfe   : > { %v2983_v7 = vpop.permute.xlu1 %2982 }
 0xbff   : > { %v2985_v8 = vpop.permute.xlu0 %2984  ;;  %v2996_v45 = vsel %vm1316_vm5, 0.0, %v2983_v7 }
 0xc00   : > { %v2990_v39 = vsel %vm1316_vm5, %v2983_v7, %v2985_v8  ;;  %v2998_v8 = vmul.f32 %v2996_v45, %v5516_v27 }
 0xc02   : > { %v4831_v9 = vpop.permute.xlu1 %4830 }
 0xc03   : > { %v6279_v18 = vpop.permute.xlu0 %3006  ;;  %v4833_v32 = vunpack.i.h.bf16 %v4831_v9  ;;  %v4832_v61 = vunpack.i.l.bf16 %v4831_v9  ;;  %v2999_v9 = vmul.f32 %v2990_v39, %v5513_v24 }
 0xc05   : > { %v2954_v17 = vsel %vm965_vm0, %v4832_v61, %v4833_v32 }
 0xc06   : > { %v2931_v11 = vpop.permute.xlu1 %2930 }
 0xc07   : > { %v2941_v21 = vsel %vm1221_vm2, 0.0, %v2931_v11  ;;  %v2933_v15 = vpop.permute.xlu0 %2932 }
 0xc08   : > { %v2944_v12 = vmul.f32 %v2941_v21, %v5516_v27  ;;  %v2935_v10 = vsel %vm1221_vm2, %v2931_v11, %v2933_v15 }
 0xc09   : > { %v2945_v30 = vmul.f32 %v2935_v10, %v5513_v24 }
 0xc0a   : > { %v3005_v33 = vpop.permute.xlu1 %3004  ;;  %v4538_v16 = vpack.c.bf16 %v2944_v12, %v2942_v31 }
 0xc0b   : > { %v4836_v35 = vpop.permute.xlu0 %4835  ;;  %v4536_v22 = vpack.c.bf16 %v2945_v30, %v2943_v26  ;;  %v3016_v15 = vsel %vm1337_vm7, %v3005_v33, 0.0 }
 0xc0c   : > { %v4838_v46 = vunpack.i.h.bf16 %v4836_v35  ;;  %v4837_v19 = vunpack.i.l.bf16 %v4836_v35  ;;  %v3019_v32 = vmul.f32 %v3016_v15, %v5526_v49  ;;  %v3482_v15 = vld [vmem:[%s6769_s6] sm:$0xff] }
 0xc0d   : > { %4537 = vmatprep.subr.bf16.mxu0 %v4536_v22 }
 0xc0e   : > { %4539 = vmatpush1.bf16.msra.mxu0 %v4538_v16  ;;  %v2967_v51 = vpop.permute.xlu1 %2966  ;;  %v2955_v55 = vsel %vm965_vm0, %v4837_v19, %v4838_v46  ;;  %v4542_v4 = vpack.c.bf16 %v4837_v19, %v4832_v61 }
 0xc0f   : > { %v2977_v36 = vsel %vm1277_vm3, 0.0, %v2967_v51  ;;  %v2969_v53 = vpop.permute.xlu0 %2968  ;;  %v4540_v37 = vpack.c.bf16 %v2955_v55, %v2954_v17 }
 0xc10   : > { %v2980_v38 = vmul.f32 %v2977_v36, %v5528_v50  ;;  %v2971_v43 = vsel %vm1277_vm3, %v2967_v51, %v2969_v53 }
 0xc11   : > { %v2981_v40 = vmul.f32 %v2971_v43, %v5526_v49  ;;  %4541 = vmatprep.subr.bf16.mxu0 %v4540_v37 }
 0xc12   : > { %v2987_v54 = vpop.permute.xlu1 %2986  ;;  %4544 = vmatpush1.bf16.msk.msra.mxu0 %vm5535_vm6, %v4542_v4  ;;  %v4547_v42 = vpack.c.bf16 %v2980_v38, %v2978_v58 }
 0xc13   : > { %v2997_v47 = vsel %vm1316_vm5, 0.0, %v2987_v54  ;;  %v2989_v60 = vpop.permute.xlu0 %2988  ;;  %v4545_v3 = vpack.c.bf16 %v2981_v40, %v2979_v48 }
 0xc14   : > { %v3000_v41 = vmul.f32 %v2997_v47, %v5516_v27  ;;  %v2991_v6 = vsel %vm1316_vm5, %v2987_v54, %v2989_v60 }
 0xc15   : > { %v3001_v34 = vmul.f32 %v2991_v6, %v5513_v24  ;;  %4546 = vmatprep.subr.bf16.mxu0 %v4545_v3 }
 0xc16   : > { %v3003_v11 = vpop.permute.xlu1 %3002  ;;  %4548 = vmatpush1.bf16.msra.mxu0 %v4547_v42  ;;  %v4551_v21 = vpack.c.bf16 %v3000_v41, %v2998_v8 }
 0xc17   : > { %v3027_v20 = vpop.permute.xlu0 %3026  ;;  %v4549_v7 = vpack.c.bf16 %v3001_v34, %v2999_v9  ;;  %v3010_v12 = vsel %vm1337_vm7, %v3003_v11, %v3005_v33 }
 0xc18   : > { %v3018_v61 = vmul.f32 %v3010_v12, %v5528_v50  ;;  %v3483_v12 = vld [vmem:[%s6769_s6 + $0x8] sm:$0xff]  ;;  %s6771_s6 = sld [smem:[#allocation17_spill]] }
 0xc19   : > { %4550 = vmatprep.subr.bf16.mxu0 %v4549_v7  ;;  %v2919_v7 = vld [vmem:[%s6766_s0 + $0x18] sm:$0xff] }
 0xc1a   : > { %v3025_v10 = vpop.permute.xlu1 %3024  ;;  %4552 = vmatpush1.bf16.msra.mxu0 %v4551_v21  ;;  %v2918_v21 = vld [vmem:[%s6766_s0 + $0x10] sm:$0xff] }
 0xc1b   : > { %v3009_v26 = vpop.permute.xlu0 %3008  ;;  %4554 = vmatprep.subr.bf16.mxu0 %v4553_v62  ;;  %v3036_v22 = vsel %vm1358_vm8, %v3025_v10, 0.0 }
 0xc1c   : > { %v3011_v30 = vsel %vm1337_vm7, %v6279_v18, %v3009_v26  ;;  %v3017_v31 = vsel %vm1337_vm7, %v3009_v26, 0.0  ;;  %v3039_v51 = vmul.f32 %v3036_v22, %v5513_v24 }
 0xc1d   : > { %v3020_v35 = vmul.f32 %v3011_v30, %v5528_v50  ;;  %v3021_v33 = vmul.f32 %v3017_v31, %v5526_v49 }
 0xc1e   : > { %v3023_v16 = vpop.permute.xlu1 %3022  ;;  %4556 = vmatpush1.bf16.msra.mxu0 %v4555_v56 }
 0xc1f   : > { %v4559_v5 = vpack.c.bf16 %v3020_v35, %v3018_v61  ;;  %v3030_v44 = vsel %vm1358_vm8, %v3023_v16, %v3025_v10  ;;  %v3029_v62 = vpop.permute.xlu0 %3028  ;;  %v4557_v18 = vpack.c.bf16 %v3021_v33, %v3019_v32 }
 0xc20   : > { %v3038_v46 = vmul.f32 %v3030_v44, %v5516_v27  ;;  %v3031_v19 = vsel %vm1358_vm8, %v3027_v20, %v3029_v62  ;;  %v3037_v57 = vsel %vm1358_vm8, %v3029_v62, 0.0  ;;  %v2916_v20 = vld [vmem:[%s6766_s0] sm:$0xff]  ;;  %s6770_s0 = sld [smem:[#allocation16_spill]] }
 0xc21   : > { %v3040_v17 = vmul.f32 %v3031_v19, %v5516_v27  ;;  %v3041_v55 = vmul.f32 %v3037_v57, %v5513_v24  ;;  %4558 = vmatprep.subr.bf16.mxu0 %v4557_v18 }
 0xc22   : > { %v4841_v52 = vpop.permute.xlu1 %4840  ;;  %4560 = vmatpush1.bf16.msra.mxu0 %v4559_v5 }
 0xc23   : > { %v4563_v2 = vpack.c.bf16 %v3040_v17, %v3038_v46  ;;  %v4843_v56 = vunpack.i.h.bf16 %v4841_v52  ;;  %v4842_v63 = vunpack.i.l.bf16 %v4841_v52  ;;  %v4846_v36 = vpop.permute.xlu0 %4845  ;;  %v4561_v53 = vpack.c.bf16 %v3041_v55, %v3039_v51 }
 0xc24   : > { %v4848_v37 = vunpack.i.h.bf16 %v4846_v36  ;;  %v4847_v4 = vunpack.i.l.bf16 %v4846_v36 }
 0xc25   : > { %v3050_v38 = vsel %vm1379_vm9, %v4842_v63, %v4843_v56  ;;  %4562 = vmatprep.subr.bf16.mxu0 %v4561_v53 }
 0xc26   : > { %v3051_v43 = vsel %vm1379_vm9, %v4847_v4, %v4848_v37  ;;  %v4565_v48 = vpack.c.bf16 %v4848_v37, %v4843_v56  ;;  %v3061_v40 = vpop.permute.xlu1 %3060  ;;  %4564 = vmatpush1.bf16.msra.mxu0 %v4563_v2 }
 0xc27   : > { %v4568_v58 = vpack.c.bf16 %v3051_v43, %v3050_v38  ;;  %v3072_v39 = vsel %vm1396_vm10, %v3061_v40, 0.0  ;;  %v3065_v54 = vpop.permute.xlu0 %3064 }
 0xc28   : > { %v3075_v45 = vmul.f32 %v3072_v39, %v5526_v49  ;;  %v3073_v47 = vsel %vm1396_vm10, %v3065_v54, 0.0  ;;  %4567 = vmatprep.subr.msk.bf16.mxu0 %vm5579_vm11, %v4565_v48 }
 0xc29   : > { %v3077_v60 = vmul.f32 %v3073_v47, %v5526_v49  ;;  %v3204_v47 = vld [vmem:[%s6771_s6 + $0x8] sm:$0xff] }
 0xc2a   : > { %v3059_v3 = vpop.permute.xlu1 %3058  ;;  %4569 = vmatpush1.bf16.msra.mxu0 %v4568_v58 }
 0xc2b   : > { %v3066_v42 = vsel %vm1396_vm10, %v3059_v3, %v3061_v40  ;;  %v3063_v41 = vpop.permute.xlu0 %3062  ;;  %v4570_v6 = vpack.c.bf16 %v3077_v60, %v3075_v45  ;;  %v3203_v45 = vld [vmem:[%s6771_s6] sm:$0xff] }
 0xc2c   : > { %v3074_v9 = vmul.f32 %v3066_v42, %v5528_v50  ;;  %v3067_v34 = vsel %vm1396_vm10, %v3063_v41, %v3065_v54  ;;  %v3200_v54 = vld [vmem:[%s6770_s0 + $0x8] sm:$0xff]  ;;  %v3484_v60 = vld [vmem:[%s6772_s7] sm:$0xff] }
 0xc2d   : > { %v3076_v8 = vmul.f32 %v3067_v34, %v5528_v50  ;;  %4571 = vmatprep.subr.bf16.mxu0 %v4570_v6  ;;  %4298 = vmatprep.mubr.msk.f32.mxu1 %vm965_vm0, %v3200_v54  ;;  %v3485_v42 = vld [vmem:[%s6772_s7 + $0x8] sm:$0xff] }
 0xc2f   : > { %v4572_v11 = vpack.c.bf16 %v3076_v8, %v3074_v9 }
 0xc31   : > { %4573 = vmatpush1.bf16.msra.mxu0 %v4572_v11 }
 0xc32   : > { %4613 = vmatprep.subr.bf16.mxu0 %v6057_v25 }
 0xc34   : > { %3159 = vmatmul.mubr.f32.vlgmr.msra.gmra.mrb[20].mxu0 %v2916_v20 }
 0xc35   : > { %4615 = vmatpush1.bf16.msra.mxu0 %v6055_v23  ;;  %4287 = vmatprep.mubr.msk.f32.mxu0 %vm965_vm0, %v2919_v7 }
 0xc38   : > { %3165 = vmatmul.mubr.f32.gmra.mrb[22].mxu0 %v2918_v21 }
 0xc39   : > { %3566 = vmatprep.mubr.f32.mxu0 %v5202_v0 }
 0xc3b   : > { %v3081_v10 = vpop.permute.xlu1 %3080 }
 0xc3c   : > { %4304 = vmatmul.mubr.msk.f32.vlgmr.msra.gmra.mrb[24].mxu0 %vm965_vm0, %v3482_v15  ;;  %v3086_v35 = vpop.permute.xlu0 %3085 }
 0xc3d   : > { %3572 = vmatprep.mubr.f32.mxu0 %v5202_v0 }
 0xc40   : > { %4305 = vmatmul.mubr.msk.f32.gmra.mrb[26].mxu0 %vm965_vm0, %v3483_v12 }
 0xd07   : > { %v3160_v26 = vpop.f32.mrb[20].mxu0 }
 0xd08   : > { %v3161_v30 = vadd.f32 %v3160_v26, %v3081_v10  ;;  %v3162_v31 = vpop.f32.mrb[21].mxu0 }
 0xd09   : > { %v3163_v32 = vadd.f32 %v3162_v31, %v3081_v10 }
 0xd0a   : > { %v4288_v61 = vmul.f32 -1.442695, %v3161_v30 }
 0xd0b   : > { %v4289_v33 = vmul.f32 -1.442695, %v3163_v32  ;;  %v3166_v22 = vpop.f32.mrb[22].mxu0 }
 0xd0c   : > { %5025 = vpow2.f32 %v4288_v61  ;;  %v3167_v16 = vadd.f32 %v3166_v22, %v3086_v35  ;;  %v3168_v5 = vpop.f32.mrb[23].mxu0 }
 0xd0d   : > { %5027 = vpow2.f32 %v4289_v33  ;;  %v3169_v44 = vadd.f32 %v3168_v5, %v3086_v35 }
 0xd0e   : > { %v4290_v62 = vmul.f32 -1.442695, %v3167_v16 }
 0xd0f   : > { %v4291_v18 = vmul.f32 -1.442695, %v3169_v44  ;;  %v6429_v3 = vpop.f32.mrb[24].mxu0 }
 0xd10   : > { %5029 = vpow2.f32 %v4290_v62  ;;  %v6432_v41 = vpop.f32.mrb[25].mxu0 }
 0xd11   : > { %5031 = vpow2.f32 %v4291_v18 }
 0xd13   : > { %v6434_v6 = vpop.f32.mrb[26].mxu0 }
 0xd14   : > { %v6436_v9 = vpop.f32.mrb[27].mxu0 }
 0xd16   : > { %v5026_v46 = vpop.eup %5025 }
 0xd17   : > { %v5028_v19 = vpop.eup %5027  ;;  %v3183_v57 = vadd.f32 1.0, %v5026_v46 }
 0xd18   : > { %v3184_v51 = vadd.f32 1.0, %v5028_v19 }
 0xd19   : > { %5033 = vrcp.f32 %v3183_v57 }
 0xd1a   : > { %v5030_v17 = vpop.eup %5029  ;;  %5035 = vrcp.f32 %v3184_v51 }
 0xd1b   : > { %v5032_v55 = vpop.eup %5031  ;;  %v3185_v52 = vadd.f32 1.0, %v5030_v17 }
 0xd1c   : > { %v3186_v2 = vadd.f32 1.0, %v5032_v55 }
 0xd1d   : > { %5037 = vrcp.f32 %v3185_v52 }
 0xd1e   : > { %5039 = vrcp.f32 %v3186_v2 }
 0xd23   : > { %v5034_v56 = vpop.eup %5033 }
 0xd24   : > { %v5036_v63 = vpop.eup %5035  ;;  %v6356_v36 = vmul.f32 %v5034_v56, %v3161_v30 }
 0xd25   : > { %v6358_v53 = vmul.f32 %v5036_v63, %v3163_v32 }
 0xd26   : > { %3209 = vrot.lane.b32.xlu1 %v6356_v36, %s6762_s23 }
 0xd27   : > { %v5038_v37 = vpop.eup %5037  ;;  %3211 = vrot.lane.b32.xlu0 %v6358_v53, %s6762_s23  ;;  %v4849_v4 = vpack.i.bf16 %v6358_v53, %v6356_v36 }
 0xd28   : > { %v5040_v38 = vpop.eup %5039  ;;  %v6366_v43 = vmul.f32 %v5038_v37, %v3167_v16 }
 0xd29   : > { %v6368_v48 = vmul.f32 %v5040_v38, %v3169_v44 }
 0xd2a   : > { %3245 = vrot.lane.b32.xlu1 %v6356_v36, %s6767_s5  ;;  %v4593_v40 = vpack.c.bf16 %v6366_v43, %v6356_v36 }
 0xd2b   : > { %3247 = vrot.lane.b32.xlu0 %v6358_v53, %s6767_s5  ;;  %v4854_v58 = vpack.i.bf16 %v6368_v48, %v6366_v43  ;;  %v4591_v39 = vpack.c.bf16 %v6368_v48, %v6358_v53 }
 0xd2e   : > { %3265 = vrot.lane.b32.xlu1 %v6356_v36, %s6763_s1 }
 0xd2f   : > { %3267 = vrot.lane.b32.xlu0 %v6358_v53, %s6763_s1 }
 0xd32   : > { %4850 = vrot.lane.b32.xlu1 %v4849_v4, %s6764_s2 }
 0xd33   : > { %3289 = vrot.lane.b32.xlu0 %v6366_v43, %s6765_s3 }
 0xd36   : > { %3213 = vrot.lane.b32.xlu1 %v6366_v43, %s6762_s23 }
 0xd37   : > { %3215 = vrot.lane.b32.xlu0 %v6368_v48, %s6762_s23 }
 0xd3a   : > { %3287 = vrot.lane.b32.xlu1 %v6358_v53, %s6765_s3 }
 0xd3b   : > { %4855 = vrot.lane.b32.xlu0 %v4854_v58, %s6764_s2 }
 0xd3e   : > { %3249 = vrot.lane.b32.xlu1 %v6366_v43, %s6767_s5 }
 0xd3f   : > { %3251 = vrot.lane.b32.xlu0 %v6368_v48, %s6767_s5 }
 0xd42   : > { %3269 = vrot.lane.b32.xlu1 %v6366_v43, %s6763_s1 }
 0xd43   : > { %3271 = vrot.lane.b32.xlu0 %v6368_v48, %s6763_s1 }
 0xd46   : > { %3285 = vrot.lane.b32.xlu1 %v6356_v36, %s6765_s3 }
 0xd47   : > { %3309 = vrot.lane.b32.xlu0 %v6366_v43, %s6759_s11 }
 0xd4a   : > { %3307 = vrot.lane.b32.xlu1 %v6358_v53, %s6759_s11 }
 0xd4b   : > { %3291 = vrot.lane.b32.xlu0 %v6368_v48, %s6765_s3 }
 0xd4e   : > { %3305 = vrot.lane.b32.xlu1 %v6356_v36, %s6759_s11 }
 0xd4f   : > { %3311 = vrot.lane.b32.xlu0 %v6368_v48, %s6759_s11 }
 0xd52   : > { %4860 = vrot.lane.b32.xlu1 %v4849_v4, %s6760_s22 }
 0xd53   : > { %4865 = vrot.lane.b32.xlu0 %v4854_v58, %s6760_s22 }
 0xd56   : > { %3343 = vrot.lane.b32.xlu1 %v6358_v53, %s6761_s18 }
 0xd57   : > { %3347 = vrot.lane.b32.xlu0 %v6368_v48, %s6761_s18 }
 0xd5a   : > { %3341 = vrot.lane.b32.xlu1 %v6356_v36, %s6761_s18 }
 0xd5b   : > { %3345 = vrot.lane.b32.xlu0 %v6366_v43, %s6761_s18 }
 0xd5e   : > { %3363 = vperm.xlu1 %4728, %v3203_v45  }
 0xd5f   : > { %3368 = vperm.xlu0 %4727, %v3204_v47  }
 0xd62   : > { %3488 = vperm.xlu1 %4728, %v3484_v60  }
 0xd63   : > { %3493 = vperm.xlu0 %4727, %v3485_v42  }
 0xd98   : > { %v3210_v34 = vpop.permute.xlu1 %3209 }
 0xd99   : > { %v3212_v8 = vpop.permute.xlu0 %3211  ;;  %v3223_v30 = vsel %vm1221_vm2, 0.0, %v3210_v34 }
 0xd9a   : > { %v3217_v10 = vsel %vm1221_vm2, %v3210_v34, %v3212_v8  ;;  %v3225_v16 = vmul.f32 %v3223_v30, %v5516_v27 }
 0xd9b   : > { %v3226_v33 = vmul.f32 %v3217_v10, %v5513_v24 }
 0xd9c   : > { %v3246_v11 = vpop.permute.xlu1 %3245 }
 0xd9d   : > { %v3248_v20 = vpop.permute.xlu0 %3247  ;;  %v3259_v56 = vsel %vm1277_vm3, 0.0, %v3246_v11 }
 0xd9e   : > { %v3253_v17 = vsel %vm1277_vm3, %v3246_v11, %v3248_v20  ;;  %v3261_v60 = vmul.f32 %v3259_v56, %v5528_v50 }
 0xd9f   : > { %v3262_v45 = vmul.f32 %v3253_v17, %v5526_v49 }
 0xda0   : > { %v3266_v7 = vpop.permute.xlu1 %3265 }
 0xda1   : > { %v3268_v21 = vpop.permute.xlu0 %3267  ;;  %v3279_v8 = vsel %vm1316_vm5, 0.0, %v3266_v7 }
 0xda2   : > { %v3273_v42 = vsel %vm1316_vm5, %v3266_v7, %v3268_v21  ;;  %v3281_v21 = vmul.f32 %v3279_v8, %v5516_v27 }
 0xda4   : > { %v4851_v15 = vpop.permute.xlu1 %4850 }
 0xda5   : > { %v6438_v12 = vpop.permute.xlu0 %3289  ;;  %v4853_v5 = vunpack.i.h.bf16 %v4851_v15  ;;  %v4852_v44 = vunpack.i.l.bf16 %v4851_v15 }
 0xda7   : > { %v3237_v52 = vsel %vm965_vm0, %v4852_v44, %v4853_v5 }
 0xda8   : > { %v3214_v26 = vpop.permute.xlu1 %3213 }
 0xda9   : > { %v3224_v31 = vsel %vm1221_vm2, 0.0, %v3214_v26  ;;  %v3216_v32 = vpop.permute.xlu0 %3215 }
 0xdaa   : > { %v3227_v61 = vmul.f32 %v3224_v31, %v5516_v27  ;;  %v3218_v35 = vsel %vm1221_vm2, %v3214_v26, %v3216_v32  ;;  %v3282_v31 = vmul.f32 %v3273_v42, %v5513_v24 }
 0xdab   : > { %v3228_v22 = vmul.f32 %v3218_v35, %v5513_v24 }
 0xdac   : > { %v3288_v62 = vpop.permute.xlu1 %3287  ;;  %v4576_v19 = vpack.c.bf16 %v3227_v61, %v3225_v16 }
 0xdad   : > { %v4856_v18 = vpop.permute.xlu0 %4855  ;;  %v4574_v46 = vpack.c.bf16 %v3228_v22, %v3226_v33  ;;  %v3299_v22 = vsel %vm1337_vm7, %v3288_v62, 0.0 }
 0xdae   : > { %v4858_v57 = vunpack.i.h.bf16 %v4856_v18  ;;  %v4857_v51 = vunpack.i.l.bf16 %v4856_v18 }
 0xdaf   : > { %4575 = vmatprep.subr.bf16.mxu1 %v4574_v46 }
 0xdb0   : > { %4577 = vmatpush1.bf16.msra.mxu1 %v4576_v19  ;;  %v3250_v55 = vpop.permute.xlu1 %3249  ;;  %v3238_v2 = vsel %vm965_vm0, %v4857_v51, %v4858_v57  ;;  %v4580_v38 = vpack.c.bf16 %v4857_v51, %v4852_v44  ;;  %v3302_v19 = vmul.f32 %v3299_v22, %v5526_v49 }
 0xdb1   : > { %v3260_v63 = vsel %vm1277_vm3, 0.0, %v3250_v55  ;;  %v3252_v37 = vpop.permute.xlu0 %3251  ;;  %v4578_v4 = vpack.c.bf16 %v3238_v2, %v3237_v52 }
 0xdb2   : > { %v3263_v58 = vmul.f32 %v3260_v63, %v5528_v50  ;;  %v3254_v54 = vsel %vm1277_vm3, %v3250_v55, %v3252_v37 }
 0xdb3   : > { %v3264_v47 = vmul.f32 %v3254_v54, %v5526_v49  ;;  %4579 = vmatprep.subr.bf16.mxu1 %v4578_v4 }
 0xdb4   : > { %v3270_v34 = vpop.permute.xlu1 %3269  ;;  %4582 = vmatpush1.bf16.msk.msra.mxu1 %vm5535_vm6, %v4580_v38  ;;  %v4585_v10 = vpack.c.bf16 %v3263_v58, %v3261_v60 }
 0xdb5   : > { %v3280_v11 = vsel %vm1316_vm5, 0.0, %v3270_v34  ;;  %v3272_v20 = vpop.permute.xlu0 %3271  ;;  %v4583_v15 = vpack.c.bf16 %v3264_v47, %v3262_v45 }
 0xdb6   : > { %v3283_v26 = vmul.f32 %v3280_v11, %v5516_v27  ;;  %v3274_v30 = vsel %vm1316_vm5, %v3270_v34, %v3272_v20 }
 0xdb7   : > { %v3284_v32 = vmul.f32 %v3274_v30, %v5513_v24  ;;  %4584 = vmatprep.subr.bf16.mxu1 %v4583_v15 }
 0xdb8   : > { %v3286_v61 = vpop.permute.xlu1 %3285  ;;  %4586 = vmatpush1.bf16.msra.mxu1 %v4585_v10  ;;  %v4589_v33 = vpack.c.bf16 %v3283_v26, %v3281_v21 }
 0xdb9   : > { %v3310_v35 = vpop.permute.xlu0 %3309  ;;  %v4587_v7 = vpack.c.bf16 %v3284_v32, %v3282_v31  ;;  %v3293_v16 = vsel %vm1337_vm7, %v3286_v61, %v3288_v62 }
 0xdba   : > { %v3301_v57 = vmul.f32 %v3293_v16, %v5528_v50  ;;  %v3199_v16 = vld [vmem:[%s6770_s0] sm:$0xff] }
 0xdbb   : > { %4588 = vmatprep.subr.bf16.mxu1 %v4587_v7 }
 0xdbc   : > { %v3308_v5 = vpop.permute.xlu1 %3307  ;;  %4590 = vmatpush1.bf16.msra.mxu1 %v4589_v33 }
 0xdbd   : > { %v3292_v44 = vpop.permute.xlu0 %3291  ;;  %4592 = vmatprep.subr.bf16.mxu1 %v4591_v39  ;;  %v3319_v17 = vsel %vm1358_vm8, %v3308_v5, 0.0 }
 0xdbe   : > { %v3294_v18 = vsel %vm1337_vm7, %v6438_v12, %v3292_v44  ;;  %v3300_v46 = vsel %vm1337_vm7, %v3292_v44, 0.0  ;;  %v3322_v63 = vmul.f32 %v3319_v17, %v5513_v24  ;;  %v3201_v44 = vld [vmem:[%s6770_s0 + $0x10] sm:$0xff] }
 0xdbf   : > { %v3303_v51 = vmul.f32 %v3294_v18, %v5528_v50  ;;  %v3304_v62 = vmul.f32 %v3300_v46, %v5526_v49 }
 0xdc0   : > { %v3306_v55 = vpop.permute.xlu1 %3305  ;;  %4594 = vmatpush1.bf16.msra.mxu1 %v4593_v40 }
 0xdc1   : > { %v4597_v53 = vpack.c.bf16 %v3303_v51, %v3301_v57  ;;  %v3313_v48 = vsel %vm1358_vm8, %v3306_v55, %v3308_v5  ;;  %v3312_v39 = vpop.permute.xlu0 %3311  ;;  %v4595_v12 = vpack.c.bf16 %v3304_v62, %v3302_v19  ;;  %v3202_v5 = vld [vmem:[%s6770_s0 + $0x18] sm:$0xff]  ;;  %s6773_s0 = sld [smem:[#allocation20_spill]] }
 0xdc2   : > { %v3321_v52 = vmul.f32 %v3313_v48, %v5516_v27  ;;  %v3314_v2 = vsel %vm1358_vm8, %v3310_v35, %v3312_v39  ;;  %v3320_v56 = vsel %vm1358_vm8, %v3312_v39, 0.0 }
 0xdc3   : > { %v3323_v37 = vmul.f32 %v3314_v2, %v5516_v27  ;;  %v3324_v4 = vmul.f32 %v3320_v56, %v5513_v24  ;;  %4596 = vmatprep.subr.bf16.mxu1 %v4595_v12 }
 0xdc4   : > { %v4861_v36 = vpop.permute.xlu1 %4860  ;;  %4598 = vmatpush1.bf16.msra.mxu1 %v4597_v53 }
 0xdc5   : > { %v4601_v43 = vpack.c.bf16 %v3323_v37, %v3321_v52  ;;  %v4863_v40 = vunpack.i.h.bf16 %v4861_v36  ;;  %v4862_v38 = vunpack.i.l.bf16 %v4861_v36  ;;  %v4866_v58 = vpop.permute.xlu0 %4865  ;;  %v4599_v54 = vpack.c.bf16 %v3324_v4, %v3322_v63 }
 0xdc6   : > { %v4868_v45 = vunpack.i.h.bf16 %v4866_v58  ;;  %v4867_v47 = vunpack.i.l.bf16 %v4866_v58 }
 0xdc7   : > { %v3333_v60 = vsel %vm1379_vm9, %v4862_v38, %v4863_v40  ;;  %4600 = vmatprep.subr.bf16.mxu1 %v4599_v54  ;;  %v3611_v59 = vld [vmem:[%s6773_s0] sm:$0xff] }
 0xdc8   : > { %v3334_v42 = vsel %vm1379_vm9, %v4867_v47, %v4868_v45  ;;  %v4603_v34 = vpack.c.bf16 %v4868_v45, %v4863_v40  ;;  %v3344_v8 = vpop.permute.xlu1 %3343  ;;  %4602 = vmatpush1.bf16.msra.mxu1 %v4601_v43 }
 0xdc9   : > { %v4606_v11 = vpack.c.bf16 %v3334_v42, %v3333_v60  ;;  %v3355_v20 = vsel %vm1396_vm10, %v3344_v8, 0.0  ;;  %v3348_v15 = vpop.permute.xlu0 %3347 }
 0xdca   : > { %v3358_v10 = vmul.f32 %v3355_v20, %v5526_v49  ;;  %v3356_v26 = vsel %vm1396_vm10, %v3348_v15, 0.0  ;;  %4605 = vmatprep.subr.msk.bf16.mxu1 %vm5579_vm11, %v4603_v34 }
 0xdcb   : > { %v3360_v30 = vmul.f32 %v3356_v26, %v5526_v49 }
 0xdcc   : > { %v3342_v31 = vpop.permute.xlu1 %3341  ;;  %4607 = vmatpush1.bf16.msra.mxu1 %v4606_v11 }
 0xdcd   : > { %v3349_v32 = vsel %vm1396_vm10, %v3342_v31, %v3344_v8  ;;  %v3346_v21 = vpop.permute.xlu0 %3345  ;;  %v4608_v61 = vpack.c.bf16 %v3360_v30, %v3358_v10 }
 0xdce   : > { %v3357_v35 = vmul.f32 %v3349_v32, %v5528_v50  ;;  %v3350_v7 = vsel %vm1396_vm10, %v3346_v21, %v3348_v15 }
 0xdcf   : > { %v3359_v33 = vmul.f32 %v3350_v7, %v5528_v50  ;;  %4609 = vmatprep.subr.bf16.mxu1 %v4608_v61 }
 0xdd1   : > { %v4610_v22 = vpack.c.bf16 %v3359_v33, %v3357_v35 }
 0xdd3   : > { %4611 = vmatpush1.bf16.msra.mxu1 %v4610_v22 }
 0xdd6   : > { %3442 = vmatmul.mubr.f32.vlgmr.msra.gmra.mrb[16].mxu1 %v3199_v16 }
 0xdd7   : > { %4299 = vmatprep.mubr.msk.f32.mxu1 %vm965_vm0, %v3202_v5 }
 0xdda   : > { %3448 = vmatmul.mubr.f32.gmra.mrb[18].mxu1 %v3201_v44 }
 0xddb   : > { %3999 = vmatprep.mubr.f32.mxu1 %v5202_v0 }
 0xddd   : > { %v3364_v18 = vpop.permute.xlu1 %3363 }
 0xdde   : > { %v3369_v46 = vpop.permute.xlu0 %3368 }
 0xde1   : > { %v3489_v19 = vpop.permute.xlu1 %3488 }
 0xde2   : > { %v3569_v57 = vadd.f32 %v6429_v3, %v3489_v19  ;;  %v3571_v51 = vadd.f32 %v6432_v41, %v3489_v19  ;;  %v3494_v62 = vpop.permute.xlu0 %3493 }
 0xde3   : > { %v6511_v55 = vadd.f32 %v6434_v6, %v3494_v62  ;;  %v6514_v48 = vadd.f32 %v6436_v9, %v3494_v62 }
 0xde4   : > { %v4306_v17 = vmul.f32 -1.442695, %v3569_v57  ;;  %v4307_v53 = vmul.f32 -1.442695, %v3571_v51 }
 0xde5   : > { %v4308_v39 = vmul.f32 -1.442695, %v6511_v55  ;;  %v4309_v12 = vmul.f32 -1.442695, %v6514_v48 }
 0xde6   : > { %5041 = vpow2.f32 %v4306_v17 }
 0xde7   : > { %5043 = vpow2.f32 %v4307_v53 }
 0xde8   : > { %5045 = vpow2.f32 %v4308_v39 }
 0xde9   : > { %5047 = vpow2.f32 %v4309_v12 }
 0xdf0   : > { %v5042_v40 = vpop.eup %5041 }
 0xdf1   : > { %v5044_v38 = vpop.eup %5043  ;;  %v3591_v58 = vadd.f32 1.0, %v5042_v40 }
 0xdf2   : > { %v5046_v54 = vpop.eup %5045  ;;  %v3592_v45 = vadd.f32 1.0, %v5044_v38 }
 0xdf3   : > { %v5048_v47 = vpop.eup %5047  ;;  %v3593_v34 = vadd.f32 1.0, %v5046_v54 }
 0xdf4   : > { %v3594_v11 = vadd.f32 1.0, %v5048_v47 }
 0xea9   : > { %v3443_v52 = vpop.f32.mrb[16].mxu1 }
 0xeaa   : > { %v3444_v2 = vadd.f32 %v3443_v52, %v3364_v18  ;;  %v3445_v3 = vpop.f32.mrb[17].mxu1 }
 0xeab   : > { %v3446_v56 = vadd.f32 %v3445_v3, %v3364_v18  ;;  %v953_v3 = vld [vmem:[%s5235_s17] sm:$0xff] }
 0xeac   : > { %v4300_v41 = vmul.f32 -1.442695, %v3444_v2 }
 0xead   : > { %v4301_v63 = vmul.f32 -1.442695, %v3446_v56  ;;  %v3449_v6 = vpop.f32.mrb[18].mxu1 }
 0xeae   : > { %5049 = vpow2.f32 %v4300_v41  ;;  %v3450_v37 = vadd.f32 %v3449_v6, %v3369_v46  ;;  %v3451_v4 = vpop.f32.mrb[19].mxu1  ;;  %v3616_v41 = vld [vmem:[%s5355_s20 + $0x8] sm:$0xff] }
 0xeaf   : > { %5051 = vpow2.f32 %v4301_v63  ;;  %v3452_v9 = vadd.f32 %v3451_v4, %v3369_v46  ;;  %v3898_v63 = vld [vmem:[%s5365_s4] sm:$0xff]  ;;  %v3899_v6 = vld [vmem:[%s5365_s4 + $0x8] sm:$0xff]  ;;  %v3901_v4 = vld [vmem:[%s5365_s4 + $0x18] sm:$0xff] }
 0xeb0   : > { %v4302_v36 = vmul.f32 -1.442695, %v3450_v37 }
 0xeb1   : > { %v4303_v43 = vmul.f32 -1.442695, %v3452_v9 }
 0xeb2   : > { %5053 = vpow2.f32 %v4302_v36 }
 0xeb3   : > { %5055 = vpow2.f32 %v4303_v43 }
 0xeb4   : > { %5057 = vrcp.f32 %v3591_v58 }
 0xeb5   : > { %5059 = vrcp.f32 %v3592_v45 }
 0xeb8   : > { %v5050_v60 = vpop.eup %5049 }
 0xeb9   : > { %v5052_v42 = vpop.eup %5051  ;;  %v3466_v8 = vadd.f32 1.0, %v5050_v60 }
 0xeba   : > { %v3467_v20 = vadd.f32 1.0, %v5052_v42 }
 0xebb   : > { %5061 = vrcp.f32 %v3466_v8 }
 0xebc   : > { %v5054_v15 = vpop.eup %5053  ;;  %5063 = vrcp.f32 %v3467_v20 }
 0xebd   : > { %v5056_v10 = vpop.eup %5055  ;;  %5065 = vrcp.f32 %v3593_v34  ;;  %v3468_v26 = vadd.f32 1.0, %v5054_v15 }
 0xebe   : > { %5067 = vrcp.f32 %v3594_v11  ;;  %v3469_v30 = vadd.f32 1.0, %v5056_v10  ;;  %v5058_v31 = vpop.eup %5057 }
 0xebf   : > { %5069 = vrcp.f32 %v3468_v26  ;;  %v5060_v32 = vpop.eup %5059  ;;  %v3603_v35 = vmul.f32 %v5058_v31, %v3569_v57 }
 0xec0   : > { %5071 = vrcp.f32 %v3469_v30  ;;  %v3604_v22 = vmul.f32 %v5060_v32, %v3571_v51 }
 0xec5   : > { %v5062_v21 = vpop.eup %5061 }
 0xec6   : > { %v5064_v61 = vpop.eup %5063  ;;  %v3478_v7 = vmul.f32 %v5062_v21, %v3444_v2  ;;  %v3612_v2 = vld [vmem:[%s6773_s0 + $0x8] sm:$0xff] }
 0xec7   : > { %v5066_v33 = vpop.eup %5065  ;;  %v3479_v16 = vmul.f32 %v5064_v61, %v3446_v56  ;;  %4316 = vmatprep.mubr.msk.f32.mxu0 %vm965_vm0, %v3612_v2  ;;  %v3615_v56 = vld [vmem:[%s5355_s20] sm:$0xff] }
 0xec8   : > { %v5068_v5 = vpop.eup %5067  ;;  %v6518_v44 = vadd.f32 %v3603_v35, %v3478_v7  ;;  %v3605_v62 = vmul.f32 %v5066_v33, %v6511_v55 }
 0xec9   : > { %v5070_v18 = vpop.eup %5069  ;;  %v6520_v46 = vadd.f32 %v3604_v22, %v3479_v16  ;;  %v3606_v53 = vmul.f32 %v5068_v5, %v6514_v48 }
 0xeca   : > { %v5072_v19 = vpop.eup %5071  ;;  %v3480_v17 = vmul.f32 %v5070_v18, %v3450_v37  ;;  %3621 = vrot.lane.b32.xlu1 %v6518_v44, %s6762_s23  ;;  %v3900_v37 = vld [vmem:[%s5365_s4 + $0x10] sm:$0xff] }
 0xecb   : > { %v3481_v57 = vmul.f32 %v5072_v19, %v3452_v9  ;;  %3623 = vrot.lane.b32.xlu0 %v6520_v46, %s6762_s23  ;;  %v4869_v51 = vpack.i.bf16 %v6520_v46, %v6518_v44 }
 0xecc   : > { %v6530_v39 = vadd.f32 %v3605_v62, %v3480_v17 }
 0xecd   : > { %v6532_v12 = vadd.f32 %v3606_v53, %v3481_v57 }
 0xece   : > { %3657 = vrot.lane.b32.xlu1 %v6518_v44, %s6767_s5  ;;  %v4635_v55 = vpack.c.bf16 %v6530_v39, %v6518_v44 }
 0xecf   : > { %3659 = vrot.lane.b32.xlu0 %v6520_v46, %s6767_s5  ;;  %v4874_v48 = vpack.i.bf16 %v6532_v12, %v6530_v39  ;;  %v4633_v52 = vpack.c.bf16 %v6532_v12, %v6520_v46 }
 0xed2   : > { %3677 = vrot.lane.b32.xlu1 %v6518_v44, %s6763_s1 }
 0xed3   : > { %3679 = vrot.lane.b32.xlu0 %v6520_v46, %s6763_s1 }
 0xed6   : > { %4870 = vrot.lane.b32.xlu1 %v4869_v51, %s6764_s2 }
 0xed7   : > { %3701 = vrot.lane.b32.xlu0 %v6530_v39, %s6765_s3 }
 0xeda   : > { %3625 = vrot.lane.b32.xlu1 %v6530_v39, %s6762_s23 }
 0xedb   : > { %3627 = vrot.lane.b32.xlu0 %v6532_v12, %s6762_s23 }
 0xede   : > { %3699 = vrot.lane.b32.xlu1 %v6520_v46, %s6765_s3 }
 0xedf   : > { %4875 = vrot.lane.b32.xlu0 %v4874_v48, %s6764_s2 }
 0xee2   : > { %3661 = vrot.lane.b32.xlu1 %v6530_v39, %s6767_s5 }
 0xee3   : > { %3663 = vrot.lane.b32.xlu0 %v6532_v12, %s6767_s5  ;;  %s4337_s5 = sshll.u32 %s6775_s16, 6 }
 0xee6   : > { %3681 = vrot.lane.b32.xlu1 %v6530_v39, %s6763_s1 }
 0xee7   : > { %3683 = vrot.lane.b32.xlu0 %v6532_v12, %s6763_s1 }
 0xeea   : > { %3697 = vrot.lane.b32.xlu1 %v6518_v44, %s6765_s3 }
 0xeeb   : > { %3721 = vrot.lane.b32.xlu0 %v6530_v39, %s6759_s11 }
 0xeee   : > { %3719 = vrot.lane.b32.xlu1 %v6520_v46, %s6759_s11 }
 0xeef   : > { %3703 = vrot.lane.b32.xlu0 %v6532_v12, %s6765_s3  ;;  %s945_s3 = scalar_lea.vmem %s5370_s12, %s4337_s5 }
 0xef2   : > { %3717 = vrot.lane.b32.xlu1 %v6518_v44, %s6759_s11 }
 0xef3   : > { %3723 = vrot.lane.b32.xlu0 %v6532_v12, %s6759_s11 }
 0xef6   : > { %4880 = vrot.lane.b32.xlu1 %v4869_v51, %s6760_s22 }
 0xef7   : > { %4885 = vrot.lane.b32.xlu0 %v4874_v48, %s6760_s22 }
 0xefa   : > { %3755 = vrot.lane.b32.xlu1 %v6520_v46, %s6761_s18 }
 0xefb   : > { %3759 = vrot.lane.b32.xlu0 %v6532_v12, %s6761_s18 }
 0xefe   : > { %3753 = vrot.lane.b32.xlu1 %v6518_v44, %s6761_s18 }
 0xeff   : > { %3757 = vrot.lane.b32.xlu0 %v6530_v39, %s6761_s18 }
 0xf02   : > { %957 = vperm.xlu1 %4728, %v953_v3  }
 0xf03   : > { %3775 = vperm.xlu0 %4727, %v3615_v56  }
 0xf06   : > { %3780 = vperm.xlu1 %4728, %v3616_v41  }
 0xf07   : > { %3904 = vperm.xlu0 %4727, %v3898_v63  }
 0xf0a   : > { %3909 = vperm.xlu1 %4728, %v3899_v6  }
 0xf0b   : > { %3914 = vperm.xlu0 %4727, %v3900_v37  }
 0xf0e   : > { %3919 = vperm.xlu1 %4728, %v3901_v4  }
 0xf3c   : > { %v3622_v9 = vpop.permute.xlu1 %3621 }
 0xf3d   : > { %v3624_v36 = vpop.permute.xlu0 %3623  ;;  %v3635_v42 = vsel %vm1221_vm2, 0.0, %v3622_v9 }
 0xf3e   : > { %v3629_v47 = vsel %vm1221_vm2, %v3622_v9, %v3624_v36  ;;  %v3637_v26 = vmul.f32 %v3635_v42, %v5516_v27 }
 0xf3f   : > { %v3638_v15 = vmul.f32 %v3629_v47, %v5513_v24 }
 0xf40   : > { %v3658_v43 = vpop.permute.xlu1 %3657 }
 0xf41   : > { %v3660_v40 = vpop.permute.xlu0 %3659  ;;  %v3671_v19 = vsel %vm1277_vm3, 0.0, %v3658_v43 }
 0xf42   : > { %v3665_v22 = vsel %vm1277_vm3, %v3658_v43, %v3660_v40  ;;  %v3673_v56 = vmul.f32 %v3671_v19, %v5528_v50 }
 0xf43   : > { %v3674_v2 = vmul.f32 %v3665_v22, %v5526_v49 }
 0xf44   : > { %v3678_v38 = vpop.permute.xlu1 %3677 }
 0xf45   : > { %v3680_v58 = vpop.permute.xlu0 %3679  ;;  %v3691_v6 = vsel %vm1316_vm5, 0.0, %v3678_v38 }
 0xf46   : > { %v3685_v41 = vsel %vm1316_vm5, %v3678_v38, %v3680_v58  ;;  %v3693_v58 = vmul.f32 %v3691_v6, %v5516_v27 }
 0xf48   : > { %v4871_v54 = vpop.permute.xlu1 %4870 }
 0xf49   : > { %v6597_v45 = vpop.permute.xlu0 %3701  ;;  %v4873_v30 = vunpack.i.h.bf16 %v4871_v54  ;;  %v4872_v31 = vunpack.i.l.bf16 %v4871_v54  ;;  %v3694_v54 = vmul.f32 %v3685_v41, %v5513_v24 }
 0xf4b   : > { %v3649_v5 = vsel %vm965_vm0, %v4872_v31, %v4873_v30 }
 0xf4c   : > { %v3626_v60 = vpop.permute.xlu1 %3625 }
 0xf4d   : > { %v3636_v34 = vsel %vm1221_vm2, 0.0, %v3626_v60  ;;  %v3628_v8 = vpop.permute.xlu0 %3627 }
 0xf4e   : > { %v3639_v11 = vmul.f32 %v3636_v34, %v5516_v27  ;;  %v3630_v20 = vsel %vm1221_vm2, %v3626_v60, %v3628_v8 }
 0xf4f   : > { %v3640_v10 = vmul.f32 %v3630_v20, %v5513_v24 }
 0xf50   : > { %v3700_v32 = vpop.permute.xlu1 %3699  ;;  %v4618_v35 = vpack.c.bf16 %v3639_v11, %v3637_v26 }
 0xf51   : > { %v4876_v21 = vpop.permute.xlu0 %4875  ;;  %v4616_v61 = vpack.c.bf16 %v3640_v10, %v3638_v15  ;;  %v3711_v34 = vsel %vm1337_vm7, %v3700_v32, 0.0 }
 0xf52   : > { %v4878_v7 = vunpack.i.h.bf16 %v4876_v21  ;;  %v4877_v33 = vunpack.i.l.bf16 %v4876_v21  ;;  %v3714_v26 = vmul.f32 %v3711_v34, %v5526_v49 }
 0xf53   : > { %4617 = vmatprep.subr.bf16.mxu0 %v4616_v61 }
 0xf54   : > { %4619 = vmatpush1.bf16.msra.mxu0 %v4618_v35  ;;  %v3662_v16 = vpop.permute.xlu1 %3661  ;;  %v3650_v18 = vsel %vm965_vm0, %v4877_v33, %v4878_v7  ;;  %v4622_v57 = vpack.c.bf16 %v4877_v33, %v4872_v31 }
 0xf55   : > { %v3672_v62 = vsel %vm1277_vm3, 0.0, %v3662_v16  ;;  %v3664_v17 = vpop.permute.xlu0 %3663  ;;  %v4620_v53 = vpack.c.bf16 %v3650_v18, %v3649_v5 }
 0xf56   : > { %v3675_v51 = vmul.f32 %v3672_v62, %v5528_v50  ;;  %v3666_v48 = vsel %vm1277_vm3, %v3662_v16, %v3664_v17 }
 0xf57   : > { %v3676_v3 = vmul.f32 %v3666_v48, %v5526_v49  ;;  %4621 = vmatprep.subr.bf16.mxu0 %v4620_v53 }
 0xf58   : > { %v3682_v63 = vpop.permute.xlu1 %3681  ;;  %4624 = vmatpush1.bf16.msk.msra.mxu0 %vm5535_vm6, %v4622_v57  ;;  %v4627_v36 = vpack.c.bf16 %v3675_v51, %v3673_v56 }
 0xf59   : > { %v3692_v37 = vsel %vm1316_vm5, 0.0, %v3682_v63  ;;  %v3684_v4 = vpop.permute.xlu0 %3683  ;;  %v4625_v9 = vpack.c.bf16 %v3676_v3, %v3674_v2 }
 0xf5a   : > { %v3695_v43 = vmul.f32 %v3692_v37, %v5516_v27  ;;  %v3686_v40 = vsel %vm1316_vm5, %v3682_v63, %v3684_v4 }
 0xf5b   : > { %v3696_v47 = vmul.f32 %v3686_v40, %v5513_v24  ;;  %4626 = vmatprep.subr.bf16.mxu0 %v4625_v9 }
 0xf5c   : > { %v3698_v1 = vpop.permute.xlu1 %3697  ;;  %4628 = vmatpush1.bf16.msra.mxu0 %v4627_v36  ;;  %v4631_v42 = vpack.c.bf16 %v3695_v43, %v3693_v58 }
 0xf5d   : > { %v3722_v60 = vpop.permute.xlu0 %3721  ;;  %v4629_v38 = vpack.c.bf16 %v3696_v47, %v3694_v54  ;;  %v3705_v8 = vsel %vm1337_vm7, %v3698_v1, %v3700_v32  ;;  %v3614_v47 = vld [vmem:[%s6773_s0 + $0x18] sm:$0xff] }
 0xf5e   : > { %v3713_v30 = vmul.f32 %v3705_v8, %v5528_v50 }
 0xf5f   : > { %4630 = vmatprep.subr.bf16.mxu0 %v4629_v38 }
 0xf60   : > { %v3720_v11 = vpop.permute.xlu1 %3719  ;;  %4632 = vmatpush1.bf16.msra.mxu0 %v4631_v42 }
 0xf61   : > { %v3704_v20 = vpop.permute.xlu0 %3703  ;;  %4634 = vmatprep.subr.bf16.mxu0 %v4633_v52  ;;  %v3731_v21 = vsel %vm1358_vm8, %v3720_v11, 0.0 }
 0xf62   : > { %v3706_v15 = vsel %vm1337_vm7, %v6597_v45, %v3704_v20  ;;  %v3712_v10 = vsel %vm1337_vm7, %v3704_v20, 0.0  ;;  %v3734_v22 = vmul.f32 %v3731_v21, %v5513_v24 }
 0xf63   : > { %v3715_v31 = vmul.f32 %v3706_v15, %v5528_v50  ;;  %v3716_v32 = vmul.f32 %v3712_v10, %v5526_v49 }
 0xf64   : > { %v3718_v61 = vpop.permute.xlu1 %3717  ;;  %4636 = vmatpush1.bf16.msra.mxu0 %v4635_v55 }
 0xf65   : > { %v4639_v46 = vpack.c.bf16 %v3715_v31, %v3713_v30  ;;  %v3725_v12 = vsel %vm1358_vm8, %v3718_v61, %v3720_v11  ;;  %v3724_v52 = vpop.permute.xlu0 %3723  ;;  %v4637_v45 = vpack.c.bf16 %v3716_v32, %v3714_v26 }
 0xf66   : > { %v3733_v35 = vmul.f32 %v3725_v12, %v5516_v27  ;;  %v3726_v7 = vsel %vm1358_vm8, %v3722_v60, %v3724_v52  ;;  %v3732_v33 = vsel %vm1358_vm8, %v3724_v52, 0.0 }
 0xf67   : > { %v3735_v16 = vmul.f32 %v3726_v7, %v5516_v27  ;;  %v3736_v5 = vmul.f32 %v3732_v33, %v5513_v24  ;;  %4638 = vmatprep.subr.bf16.mxu0 %v4637_v45 }
 0xf68   : > { %v4881_v44 = vpop.permute.xlu1 %4880  ;;  %4640 = vmatpush1.bf16.msra.mxu0 %v4639_v46 }
 0xf69   : > { %v4643_v39 = vpack.c.bf16 %v3735_v16, %v3733_v35  ;;  %v4883_v55 = vunpack.i.h.bf16 %v4881_v44  ;;  %v4882_v18 = vunpack.i.l.bf16 %v4881_v44  ;;  %v4886_v19 = vpop.permute.xlu0 %4885  ;;  %v4641_v62 = vpack.c.bf16 %v3736_v5, %v3734_v22 }
 0xf6a   : > { %v4888_v17 = vunpack.i.h.bf16 %v4886_v19  ;;  %v4887_v53 = vunpack.i.l.bf16 %v4886_v19 }
 0xf6b   : > { %v3745_v57 = vsel %vm1379_vm9, %v4882_v18, %v4883_v55  ;;  %4642 = vmatprep.subr.bf16.mxu0 %v4641_v62 }
 0xf6c   : > { %v3746_v51 = vsel %vm1379_vm9, %v4887_v53, %v4888_v17  ;;  %v4645_v48 = vpack.c.bf16 %v4888_v17, %v4883_v55  ;;  %v3756_v2 = vpop.permute.xlu1 %3755  ;;  %4644 = vmatpush1.bf16.msra.mxu0 %v4643_v39 }
 0xf6d   : > { %v4648_v27 = vpack.c.bf16 %v3746_v51, %v3745_v57  ;;  %v3767_v24 = vsel %vm1396_vm10, %v3756_v2, 0.0  ;;  %v3760_v3 = vpop.permute.xlu0 %3759 }
 0xf6e   : > { %v3770_v56 = vmul.f32 %v3767_v24, %v5526_v49  ;;  %v3768_v41 = vsel %vm1396_vm10, %v3760_v3, 0.0  ;;  %4647 = vmatprep.subr.msk.bf16.mxu0 %vm5579_vm11, %v4645_v48  ;;  %v3894_v24 = vld [vmem:[%s5360_s27] sm:$0xff] }
 0xf6f   : > { %v3772_v63 = vmul.f32 %v3768_v41, %v5526_v49  ;;  %v3613_v49 = vld [vmem:[%s6773_s0 + $0x10] sm:$0xff]  ;;  %v3897_v41 = vld [vmem:[%s5360_s27 + $0x18] sm:$0xff] }
 0xf70   : > { %v3754_v6 = vpop.permute.xlu1 %3753  ;;  %4649 = vmatpush1.bf16.msra.mxu0 %v4648_v27 }
 0xf71   : > { %v3761_v37 = vsel %vm1396_vm10, %v3754_v6, %v3756_v2  ;;  %v3758_v4 = vpop.permute.xlu0 %3757  ;;  %v4650_v9 = vpack.c.bf16 %v3772_v63, %v3770_v56  ;;  %v3896_v56 = vld [vmem:[%s5360_s27 + $0x10] sm:$0xff] }
 0xf72   : > { %v3769_v36 = vmul.f32 %v3761_v37, %v5528_v50  ;;  %v3762_v43 = vsel %vm1396_vm10, %v3758_v4, %v3760_v3  ;;  %v3895_v3 = vld [vmem:[%s5360_s27 + $0x8] sm:$0xff] }
 0xf73   : > { %v3771_v40 = vmul.f32 %v3762_v43, %v5528_v50  ;;  %4651 = vmatprep.subr.bf16.mxu0 %v4650_v9 }
 0xf75   : > { %v4652_v54 = vpack.c.bf16 %v3771_v40, %v3769_v36 }
 0xf77   : > { %4653 = vmatpush1.bf16.msra.mxu0 %v4652_v54 }
 0xf7a   : > { %3854 = vmatmul.mubr.f32.vlgmr.msra.gmra.mrb[28].mxu0 %v3611_v59 }
 0xf7b   : > { %4317 = vmatprep.mubr.msk.f32.mxu0 %vm965_vm0, %v3614_v47 }
 0xf7e   : > { %3860 = vmatmul.mubr.f32.gmra.mrb[30].mxu0 %v3613_v49 }
 0xf81   : > { %v958_v58 = vpop.permute.xlu1 %957 }
 0xf82   : > { %v1039_v1 = vadd.f32 %v5423_v13, %v958_v58  ;;  %v1041_v60 = vadd.f32 %v5425_v14, %v958_v58  ;;  %v3776_v14 = vpop.permute.xlu0 %3775 }
 0xf84   : > { %v4198_v38 = vmul.f32 -1.442695, %v1039_v1  ;;  %v4199_v42 = vmul.f32 -1.442695, %v1041_v60 }
 0xf85   : > { %v3781_v12 = vpop.permute.xlu1 %3780 }
 0xf86   : > { %5073 = vpow2.f32 %v4198_v38  ;;  %v3905_v63 = vpop.permute.xlu0 %3904 }
 0xf87   : > { %5075 = vpow2.f32 %v4199_v42 }
 0xf89   : > { %v3910_v43 = vpop.permute.xlu1 %3909 }
 0xf90   : > { %v5074_v50 = vpop.eup %5073 }
 0xf91   : > { %v5076_v34 = vpop.eup %5075  ;;  %v1061_v8 = vadd.f32 1.0, %v5074_v50 }
 0xf92   : > { %v1062_v11 = vadd.f32 1.0, %v5076_v34 }
 0xf93   : > { %5077 = vrcp.f32 %v1061_v8  ;;  %v3920_v8 = vpop.permute.xlu1 %3919 }
 0xf94   : > { %5079 = vrcp.f32 %v1062_v11 }
 0xf9d   : > { %v5078_v20 = vpop.eup %5077 }
 0xf9e   : > { %v5080_v15 = vpop.eup %5079  ;;  %v1073_v10 = vmul.f32 %v5078_v20, %v1039_v1  ;;  %v3915_v1 = vpop.permute.xlu0 %3914 }
 0xf9f   : > { %v1074_v26 = vmul.f32 %v5080_v15, %v1041_v60 }
 0xfa0   : > { %v4656_v30 = vpack.c.bf16 %v5429_v29, %v1073_v10 }
 0xfa1   : > { %v4654_v13 = vpack.c.bf16 %v5427_v28, %v1074_v26 }
 0xfa3   : > { %4655 = vmatprep.subr.bf16.mxu1 %v4654_v13 }
 0xfa4   : > { %4657 = vmatpush1.bf16.msra.mxu1 %v4656_v30 }
 0xfa5   : > { %4659 = vmatprep.subr.bf16.mxu1 %v6057_v25 }
 0xfa8   : > { %4661 = vmatpush1.bf16.msra.mxu1 %v6055_v23 }
0x104d   : > { %v3855_v31 = vpop.f32.mrb[28].mxu0 }
0x104e   : > { %v3856_v32 = vadd.f32 %v3855_v31, %v3776_v14  ;;  %v3857_v21 = vpop.f32.mrb[29].mxu0 }
0x104f   : > { %v3858_v61 = vadd.f32 %v3857_v21, %v3776_v14 }
0x1050   : > { %v4318_v46 = vmul.f32 -1.442695, %v3856_v32 }
0x1051   : > { %v4319_v52 = vmul.f32 -1.442695, %v3858_v61  ;;  %v3861_v45 = vpop.f32.mrb[30].mxu0 }
0x1052   : > { %5081 = vpow2.f32 %v4318_v46  ;;  %v3862_v35 = vadd.f32 %v3861_v45, %v3781_v12  ;;  %v3863_v29 = vpop.f32.mrb[31].mxu0 }
0x1053   : > { %5083 = vpow2.f32 %v4319_v52  ;;  %v3864_v28 = vadd.f32 %v3863_v29, %v3781_v12 }
0x1054   : > { %v4320_v7 = vmul.f32 -1.442695, %v3862_v35 }
0x1055   : > { %v4321_v33 = vmul.f32 -1.442695, %v3864_v28 }
0x1056   : > { %5085 = vpow2.f32 %v4320_v7 }
0x1057   : > { %5087 = vpow2.f32 %v4321_v33 }
0x105c   : > { %v5082_v25 = vpop.eup %5081 }
0x105d   : > { %v5084_v23 = vpop.eup %5083  ;;  %v3878_v22 = vadd.f32 1.0, %v5082_v25 }
0x105e   : > { %v3879_v16 = vadd.f32 1.0, %v5084_v23 }
0x105f   : > { %5089 = vrcp.f32 %v3878_v22 }
0x1060   : > { %v5086_v5 = vpop.eup %5085  ;;  %5091 = vrcp.f32 %v3879_v16 }
0x1061   : > { %v5088_v44 = vpop.eup %5087  ;;  %v3880_v39 = vadd.f32 1.0, %v5086_v5 }
0x1062   : > { %v3881_v55 = vadd.f32 1.0, %v5088_v44 }
0x1063   : > { %5093 = vrcp.f32 %v3880_v39 }
0x1064   : > { %5095 = vrcp.f32 %v3881_v55 }
0x1069   : > { %v5090_v18 = vpop.eup %5089 }
0x106a   : > { %v5092_v19 = vpop.eup %5091  ;;  %v3890_v53 = vmul.f32 %v5090_v18, %v3856_v32 }
0x106b   : > { %v3891_v51 = vmul.f32 %v5092_v19, %v3858_v61 }
0x106d   : > { %v5094_v62 = vpop.eup %5093 }
0x106e   : > { %v5096_v17 = vpop.eup %5095  ;;  %v3892_v57 = vmul.f32 %v5094_v62, %v3862_v35 }
0x106f   : > { %v3893_v48 = vmul.f32 %v5096_v17, %v3864_v28 }
0x1070   : > { %v4664_v2 = vpack.c.bf16 %v3892_v57, %v3890_v53 }
0x1071   : > { %v4662_v27 = vpack.c.bf16 %v3893_v48, %v3891_v51 }
0x1073   : > { %4663 = vmatprep.subr.bf16.mxu1 %v4662_v27 }
0x1074   : > { %4665 = vmatpush1.bf16.msra.mxu1 %v4664_v2 }
0x1077   : > { %4322 = vmatmul.mubr.msk.f32.vlgmr.msra.gmra.mrb[20].mxu1 %vm3922_vm12, %v3894_v24 }
0x1078   : > { %4005 = vmatprep.mubr.f32.mxu1 %v5202_v0 }
0x107b   : > { %4323 = vmatmul.mubr.msk.f32.gmra.mrb[22].mxu1 %vm3922_vm12, %v3895_v3 }
0x107c   : > { %4011 = vmatprep.mubr.f32.mxu1 %v5202_v0 }
0x107f   : > { %4324 = vmatmul.mubr.msk.f32.gmra.mrb[24].mxu1 %vm3922_vm12, %v3896_v56 }
0x1080   : > { %4017 = vmatprep.mubr.f32.mxu1 %v5202_v0 }
0x1083   : > { %4325 = vmatmul.mubr.msk.f32.gmra.mrb[26].mxu1 %vm3922_vm12, %v3897_v41 }
0x114a   : > { %v4001_v6 = vpop.f32.mrb[20].mxu1 }
0x114b   : > { %v4002_v37 = vadd.f32 %v4001_v6, %v3905_v63  ;;  %v4003_v4 = vpop.f32.mrb[21].mxu1 }
0x114c   : > { %v4004_v9 = vadd.f32 %v4003_v4, %v3905_v63 }
0x114d   : > { %v4326_v36 = vmul.f32 -1.442695, %v4002_v37 }
0x114e   : > { %v4327_v40 = vmul.f32 -1.442695, %v4004_v9  ;;  %v4007_v54 = vpop.f32.mrb[22].mxu1 }
0x114f   : > { %5097 = vpow2.f32 %v4326_v36  ;;  %v4008_v59 = vadd.f32 %v4007_v54, %v3910_v43  ;;  %v4009_v47 = vpop.f32.mrb[23].mxu1 }
0x1150   : > { %5099 = vpow2.f32 %v4327_v40  ;;  %v4010_v49 = vadd.f32 %v4009_v47, %v3910_v43 }
0x1151   : > { %v4328_v58 = vmul.f32 -1.442695, %v4008_v59 }
0x1152   : > { %v4329_v60 = vmul.f32 -1.442695, %v4010_v49  ;;  %v4013_v0 = vpop.f32.mrb[24].mxu1 }
0x1153   : > { %5101 = vpow2.f32 %v4328_v58  ;;  %v4014_v38 = vadd.f32 %v4013_v0, %v3915_v1  ;;  %v4015_v42 = vpop.f32.mrb[25].mxu1 }
0x1154   : > { %5103 = vpow2.f32 %v4329_v60  ;;  %v4016_v50 = vadd.f32 %v4015_v42, %v3915_v1 }
0x1155   : > { %v4330_v34 = vmul.f32 -1.442695, %v4014_v38 }
0x1156   : > { %v4331_v11 = vmul.f32 -1.442695, %v4016_v50  ;;  %v4019_v20 = vpop.f32.mrb[26].mxu1 }
0x1157   : > { %5105 = vpow2.f32 %v4330_v34  ;;  %v4020_v15 = vadd.f32 %v4019_v20, %v3920_v8  ;;  %v4021_v10 = vpop.f32.mrb[27].mxu1 }
0x1158   : > { %5107 = vpow2.f32 %v4331_v11  ;;  %v4022_v26 = vadd.f32 %v4021_v10, %v3920_v8 }
0x1159   : > { %v5098_v30 = vpop.eup %5097  ;;  %v4332_v13 = vmul.f32 -1.442695, %v4020_v15 }
0x115a   : > { %v5100_v14 = vpop.eup %5099  ;;  %v4048_v31 = vadd.f32 1.0, %v5098_v30  ;;  %v4333_v32 = vmul.f32 -1.442695, %v4022_v26 }
0x115b   : > { %v4049_v21 = vadd.f32 1.0, %v5100_v14  ;;  %5109 = vpow2.f32 %v4332_v13 }
0x115c   : > { %5111 = vrcp.f32 %v4048_v31 }
0x115d   : > { %v5102_v61 = vpop.eup %5101  ;;  %5113 = vrcp.f32 %v4049_v21 }
0x115e   : > { %v5104_v46 = vpop.eup %5103  ;;  %v4050_v12 = vadd.f32 1.0, %v5102_v61  ;;  %5115 = vpow2.f32 %v4333_v32 }
0x115f   : > { %v4051_v52 = vadd.f32 1.0, %v5104_v46 }
0x1160   : > { %5117 = vrcp.f32 %v4050_v12 }
0x1161   : > { %v5106_v45 = vpop.eup %5105  ;;  %5119 = vrcp.f32 %v4051_v52 }
0x1162   : > { %v5108_v35 = vpop.eup %5107  ;;  %v4052_v29 = vadd.f32 1.0, %v5106_v45 }
0x1163   : > { %v4053_v28 = vadd.f32 1.0, %v5108_v35 }
0x1164   : > { %5121 = vrcp.f32 %v4052_v29 }
0x1165   : > { %v5110_v7 = vpop.eup %5109  ;;  %5123 = vrcp.f32 %v4053_v28 }
0x1166   : > { %v5112_v33 = vpop.eup %5111  ;;  %v4054_v25 = vadd.f32 1.0, %v5110_v7 }
0x1167   : > { %v5114_v23 = vpop.eup %5113  ;;  %v4072_v22 = vmul.f32 %v5112_v33, %v4002_v37 }
0x1168   : > { %v5116_v16 = vpop.eup %5115  ;;  %v4073_v5 = vmul.f32 %v5114_v23, %v4004_v9  ;;  %5125 = vrcp.f32 %v4054_v25 }
0x1169   : > { %4080 = vst [vmem:[%s945_s3] sm:$0xff] %v4072_v22  ;;  %v4055_v44 = vadd.f32 1.0, %v5116_v16 }
0x116a   : > { %v5118_v39 = vpop.eup %5117  ;;  %4081 = vst [vmem:[%s945_s3 + $0x8] sm:$0xff] %v4073_v5 }
0x116b   : > { %v5120_v55 = vpop.eup %5119  ;;  %v4074_v18 = vmul.f32 %v5118_v39, %v4008_v59  ;;  %5127 = vrcp.f32 %v4055_v44 }
0x116c   : > { %v4075_v19 = vmul.f32 %v5120_v55, %v4010_v49 }
0x116d   : > { %4082 = vst [vmem:[%s945_s3 + $0x10] sm:$0xff] %v4074_v18 }
0x116e   : > { %v5122_v62 = vpop.eup %5121  ;;  %4083 = vst [vmem:[%s945_s3 + $0x18] sm:$0xff] %v4075_v19 }
0x116f   : > { %v5124_v17 = vpop.eup %5123  ;;  %v4076_v53 = vmul.f32 %v5122_v62, %v4014_v38 }
0x1170   : > { %v4077_v57 = vmul.f32 %v5124_v17, %v4016_v50 }
0x1171   : > { %4084 = vst [vmem:[%s945_s3 + $0x20] sm:$0xff] %v4076_v53 }
0x1172   : > { %v5126_v51 = vpop.eup %5125  ;;  %4085 = vst [vmem:[%s945_s3 + $0x28] sm:$0xff] %v4077_v57 }
0x1173   : > { %v4078_v48 = vmul.f32 %v5126_v51, %v4020_v15 }
0x1175   : > { %v5128_v2 = vpop.eup %5127  ;;  %4086 = vst [vmem:[%s945_s3 + $0x30] sm:$0xff] %v4078_v48 }
0x1176   : > { %v4079_v27 = vmul.f32 %v5128_v2, %v4022_v26 }
0x1178   : > { %4087 = vst [vmem:[%s945_s3 + $0x38] sm:$0xff] %v4079_v27 }
0x1179 PF: > { %s72_s15 = sadd.s32 1, %s5167_s15  }
0x117a   : > { %p69_p3 = scmp.ge.s32.totalorder %s72_s15, 4  }
0x117c   :  { %71 = sbr.rel (!%p69_p3) target bundleno = 56 (0x38), region = 205 }
0x1183   :  { %4109 = vsyncpa [#allocation3], 1 }
0x1184   :  { %4111 = vsyncpa [#allocation3 + $0x1], 1 }

</bundles_post_ra>
